<compile_context>
chip_gen: v6e
topology: v6e:2x2x1
jax: 0.10.0
libtpu: 0.0.40
codegen_flags: <defaults>
</compile_context>

<pallas_src>
import jax
import jax.numpy as jnp
from jax import lax
from jax.experimental import pallas as pl
from jax.experimental.pallas import tpu as pltpu

# ---------------- small, self-consistent hyper-parameters -------------------
B = 2                    # batch_size
MAX_TASK = 6             # max_task_num
N = MAX_TASK + 2         # max_nodes = 8
T = (N - 2) // 2         # steps = 3
H = 32                   # hidden_size (gcn_hidden_dim)
NODE_DIM = 8             # node_dim (3 raw coords + 5 derived features)
DYN = 2                  # dynamic_feature_dim
EV = 5                   # edge_values_dim
SF = 5                   # start_fea_dim
DEC = H + NODE_DIM + DYN   # 42 = decoder input dim
NUM_COU = 10
COU_EMB = 8
NH = N * H               # 256
NND = N * NODE_DIM       # 64

# packed-output column layout (one lane-dense 128-wide slab per (b,t) block)
PACK_W = 128
C_VVAL = 0               # 8  cols : V_val * dispatch_mask
C_VDY = 8                # 2  cols : V_dy
C_EEDM = 16              # 8  cols : E_ed * E_mask_t
C_ESDM = 24              # 8  cols : E_sd * E_mask_t
C_DEC = 32               # 42 cols : decoder_input (same value on all N rows)

f32 = jnp.float32


# ========================= single fused kernel ==============================
def _make_kernel(bb):
  """bb = batch elements handled per grid step (B on v5e/v6e, 1 on v7x)."""

  def kernel(sidx_ref,                              # SMEM (B, T) int32
             ed_ref,                                # (bb, 6+2T, N, N) edge pack
             nf_ref,                                # (bb, T+1, N, 8) node pack
             wa_ref, wb_ref, wc_ref,                # packed weights
             nodeh_ref, packed_ref, edgeh_ref):     # outputs
    gstep = pl.program_id(0)

    # ---- packed weights: static row slices of 3 lane-dense slabs ----------
    wxi = wa_ref[0:NND, :]                          # (64, 96) w_node folded into W_i
    wh = wa_ref[NND:NND + H, :]                     # (32, 96)
    bi = wa_ref[NND + H:NND + H + 1, :]             # (1, 96)
    bh = wa_ref[NND + H + 1:NND + H + 2, :]         # (1, 96)
    w_edge2 = wb_ref[0:EV * N, :]                   # (40, 256) block-sparse edge emb
    wlin = wb_ref[EV * N:EV * N + H, :]             # (32, 256) graph_linear
    blin = wb_ref[EV * N + H:EV * N + H + 1, :]     # (1, 256)
    w_start = wc_ref[0:SF, :]                       # (5, 42)
    b_start = wc_ref[SF:SF + 1, :]                  # (1, 42)

    # ---- constant helper masks (shared by all batch elements) -------------
    node_id = jnp.concatenate(
        [lax.broadcasted_iota(jnp.int32, (N, 1), 0)] * T, axis=0)      # (T*N, 1)
    node_sel = [(node_id == n).astype(f32) for n in range(N)]          # (T*N, 1) each
    trow = lax.broadcasted_iota(jnp.int32, (T, 1), 0)                  # (T, 1)
    tcol = jnp.concatenate(
        [jnp.full((1, N), t, jnp.int32) for t in range(T)], axis=1)    # (1, T*N)
    tsum = (tcol == trow).astype(f32)                                  # (T, T*N)
    zpad_a = jnp.zeros((N, C_EEDM - (C_VDY + DYN)), f32)               # (N, 6)
    zpad_b = jnp.zeros((N, PACK_W - (C_DEC + DEC)), f32)               # (N, 54)

    for bl in range(bb):
      gb = gstep * bb + bl                          # global batch index

      eed = ed_ref[bl, 0]                           # (N, N)
      esd = ed_ref[bl, 1]
      eedT = ed_ref[bl, 2]                          # E_ed^T (wrapper-transposed)
      esdT = ed_ref[bl, 3]
      eptd = ed_ref[bl, 4]
      edtd = ed_ref[bl, 5]
      sn = nf_ref[bl, 0]                            # (N, 8) [x,y,c3,V_pt,V_ft,V_dt,0,0]

      # -- start-node gathers for all T steps via one-hot MXU matmuls -------
      oh_rows, oh_cols = [], []
      for t in range(T):
        s = sidx_ref[gb, t]
        oh_rows.append(
            (lax.broadcasted_iota(jnp.int32, (1, N), 1) == s).astype(f32))
        oh_cols.append(
            (lax.broadcasted_iota(jnp.int32, (N, 1), 0) == s).astype(f32))
      oh_row = jnp.concatenate(oh_rows, axis=0)     # (T, N)
      oh_col = jnp.concatenate(oh_cols, axis=1)     # (N, T)

      cur = jnp.dot(oh_row, sn, preferred_element_type=f32)            # (T, 8)
      est = jnp.dot(jnp.concatenate([eedT, esdT], axis=0), oh_col,
                    preferred_element_type=f32)                        # (2N, T)
      eed_cols = est[0:N, :]                        # column t = E_ed[s_t, :]
      esd_cols = est[N:2 * N, :]

      # start_embed for all T at once: (T,5) @ (5,DEC)
      start_fea = jnp.concatenate(
          [cur[:, 0:3], cur[:, 4:5], cur[:, 5:6]], axis=1)             # (T, 5)
      dec_all = (jnp.dot(start_fea, w_start, preferred_element_type=f32)
                 + b_start)                                            # (T, DEC)

      # -- per-timestep node/edge feature construction (T=3, unrolled) ------
      gnode_blocks, packed_blocks, ch_blocks = [], [], []
      for t in range(T):
        emask_t = ed_ref[bl, 6 + t]                 # (N, N)
        a_t = ed_ref[bl, 6 + T + t]                 # (N, N)
        nd_t = nf_ref[bl, 1 + t]                    # (N, 8) [V_num, dispatch_mask, 0..]
        vnum_t = nd_t[:, 0:1]
        dmask_t = nd_t[:, 1:2]
        tc_t = cur[t:t + 1, 4:5]                    # (1, 1)  V_ft[s_t]
        eed_dif = eed_cols[:, t:t + 1] * dmask_t    # (N, 1)
        esd_dif = esd_cols[:, t:t + 1] * dmask_t
        v_val = jnp.concatenate(
            [sn[:, 0:3], sn[:, 3:4] - tc_t, tc_t - sn[:, 5:6],
             eed_dif, esd_dif, vnum_t], axis=1)                        # (N, 8)
        gnode_t = v_val * dmask_t                   # V_val * dispatch mask
        vdy_t = jnp.concatenate([eed_dif, esd_dif], axis=1)            # (N, 2)
        eedm_t = eed * emask_t
        esdm_t = esd * emask_t
        dec_blk = jnp.broadcast_to(dec_all[t:t + 1, :], (N, DEC))
        # ONE lane-dense 128-wide row block: [V_val|V_dy|pad|E_ed_m|E_sd_m|dec|pad]
        packed_blocks.append(jnp.concatenate(
            [gnode_t, vdy_t, zpad_a, eedm_t, esdm_t, dec_blk, zpad_b], axis=1))
        gnode_blocks.append(gnode_t)
        # 5 edge channels side by side (N, 5N), order [sd, ed, pt, dt, A]
        ch_blocks.append(jnp.concatenate(
            [esdm_t, eedm_t, eptd * emask_t, edtd * emask_t, a_t], axis=1))

      packed_ref[bl] = jnp.concatenate(packed_blocks, axis=0)          # (T*N, 128)

      # -- edge embedding: ONE MXU matmul, lane-dense (T*N, N*H) output -----
      ch_all = jnp.concatenate(ch_blocks, axis=0)                      # (T*N, 5N)
      edgeh_ref[bl] = jnp.dot(ch_all, w_edge2, preferred_element_type=f32)

      # -- GRU input-gate preactivations for all T at once ------------------
      # gi[t] = sum_n gnode[t,n,:] @ wxi[n-block]  (nodes_embedding folded in)
      gnode_all = jnp.concatenate(gnode_blocks, axis=0)                # (T*N, 8)
      gnode_wide = jnp.concatenate(
          [gnode_all * node_sel[n] for n in range(N)], axis=1)         # (T*N, 64)
      prod = jnp.dot(gnode_wide, wxi, preferred_element_type=f32)      # (T*N, 96)
      gi_all = jnp.dot(tsum, prod, preferred_element_type=f32) + bi    # (T, 96)

      # -- sequential GRU over T (hidden carried as a traced value) ---------
      h = jnp.zeros((1, H), f32)
      h_rows = []
      for t in range(T):
        gi = gi_all[t:t + 1, :]
        gh = jnp.dot(h, wh, preferred_element_type=f32) + bh
        r = jax.nn.sigmoid(gi[:, 0:H] + gh[:, 0:H])
        z = jax.nn.sigmoid(gi[:, H:2 * H] + gh[:, H:2 * H])
        c = jnp.tanh(gi[:, 2 * H:] + r * gh[:, 2 * H:])
        h = (1.0 - z) * c + z * h
        h_rows.append(h)
      h_stack = jnp.concatenate(h_rows, axis=0)                        # (T, H)

      # -- graph_linear hoisted out of the time loop: ONE (T,H)x(H,N*H) pass
      nodeh_ref[bl] = (jnp.dot(h_stack, wlin, preferred_element_type=f32)
                       + blin)                                         # (T, N*H)

  return kernel


# =============================== wrapper =====================================
def _pick_batch_block():
  """Batch elements per grid step: collapse the grid on single-TensorCore
  chips (v5e/v6e); keep a 'parallel' per-batch grid only where two
  TensorCores can split it (v7x)."""
  try:
    kind = jax.devices()[0].device_kind.lower()
  except Exception:
    kind = ""
  if B > 1 and ("v7" in kind or "7x" in kind or "tpu7" in kind):
    return 1
  return B


def gcnru_fused(params, E_ed, E_sd, E_pt_dif, E_dt_dif, E_mask, A, V, V_pt,
                V_ft, V_dt, V_num, V_dispatch_mask, start_idx):
  bb = _pick_batch_block()

  # ---- packed batch-varying inputs (2 tensors instead of 10) --------------
  ed = jnp.concatenate(
      [E_ed[:, None], E_sd[:, None],
       jnp.swapaxes(E_ed, 1, 2)[:, None], jnp.swapaxes(E_sd, 1, 2)[:, None],
       E_pt_dif[:, None], E_dt_dif[:, None], E_mask, A], axis=1)  # (B, 6+2T, N, N)
  sn = jnp.concatenate(
      [V, V_pt[..., None], V_ft[..., None], V_dt[..., None],
       jnp.zeros((B, N, 2), f32)], axis=-1)                       # (B, N, 8)
  nd = jnp.concatenate(
      [V_num[..., None], V_dispatch_mask[..., None],
       jnp.zeros((B, T, N, 6), f32)], axis=-1)                    # (B, T, N, 8)
  nf = jnp.concatenate([sn[:, None], nd], axis=1)                 # (B, T+1, N, 8)

  # ---- packed weights (3 lane-dense slabs instead of 10 tensors) ----------
  # fold nodes_embedding into the GRU input weight:
  #   wxi[n*8+d, g] = sum_h w_node[d,h] * w_i[n*H+h, g]
  w_i3 = params["w_i"].reshape(N, H, 3 * H)
  wxi = jnp.einsum("dh,nhg->ndg", params["w_node"], w_i3).reshape(NND, 3 * H)
  wa = jnp.concatenate([wxi, params["w_h"], params["b_i"], params["b_h"]],
                       axis=0)                                    # (98, 96)
  # block-sparse edge-embedding weight: W2[c*N+j, k*H+h] = w_edge[c,h]*(j==k)
  eye = jnp.eye(N, dtype=f32)
  w_edge2 = (params["w_edge"][:, None, None, :]
             * eye[None, :, :, None]).reshape(EV * N, NH)
  wb = jnp.concatenate([w_edge2, params["w_lin"], params["b_lin"]],
                       axis=0)                                    # (73, 256)
  wc = jnp.concatenate([params["w_start"], params["b_start"]], axis=0)  # (6, 42)

  def dmap4(i, s):
    return (i, 0, 0, 0)

  def dmap3(i, s):
    return (i, 0, 0)

  def wmap(i, s):
    return (0, 0)

  grid_spec = pltpu.PrefetchScalarGridSpec(
      num_scalar_prefetch=1,
      grid=(B // bb,),
      in_specs=[
          pl.BlockSpec((bb, 6 + 2 * T, N, N), dmap4),   # packed edge tensors
          pl.BlockSpec((bb, T + 1, N, 8), dmap4),       # packed node features
          pl.BlockSpec((NND + H + 2, 3 * H), wmap),     # [wxi; w_h; b_i; b_h]
          pl.BlockSpec((EV * N + H + 1, NH), wmap),     # [w_edge2; w_lin; b_lin]
          pl.BlockSpec((SF + 1, DEC), wmap),            # [w_start; b_start]
      ],
      out_specs=[
          pl.BlockSpec((bb, T, NH), dmap3),             # node_h (post graph_linear)
          pl.BlockSpec((bb, T * N, PACK_W), dmap3),     # packed 128-wide slab
          pl.BlockSpec((bb, T * N, NH), dmap3),         # edge embeddings
      ],
  )
  out_shape = (
      jax.ShapeDtypeStruct((B, T, NH), f32),
      jax.ShapeDtypeStruct((B, T * N, PACK_W), f32),
      jax.ShapeDtypeStruct((B, T * N, NH), f32),
  )
  return pl.pallas_call(
      _make_kernel(bb),
      grid_spec=grid_spec,
      out_shape=out_shape,
      compiler_params=pltpu.CompilerParams(
          dimension_semantics=("parallel",)),
  )(start_idx, ed, nf, wa, wb, wc)


# ============================= forward ======================================
def gcnru_forward(params, E_ed, V, V_reach_mask, V_pt, E_sd, V_ft, start_idx,
                  V_dt, V_num, E_mask, V_dispatch_mask, E_pt_dif, E_dt_dif,
                  cou, A):
  nodeh, packed, edgeh = gcnru_fused(
      params, E_ed, E_sd, E_pt_dif, E_dt_dif, E_mask, A, V, V_pt, V_ft, V_dt,
      V_num, V_dispatch_mask, start_idx)

  # TODO(synk): self.gcn_layers (GCNLayer stack) — class definition not in the
  # provided source; node/edge embeddings are passed through unchanged.

  # All reshapes/slices below are free row-major splits / cheap lane slices.
  packed4 = packed.reshape(B, T, N, PACK_W)
  batch_V_val = packed4[..., C_VVAL:C_VVAL + NODE_DIM].reshape(B * T, N, NODE_DIM)
  batch_V_dy = packed4[..., C_VDY:C_VDY + DYN].reshape(B * T, N, DYN)
  batch_E_ed_t_masked = packed4[..., C_EEDM:C_EEDM + N].reshape(B * T, N, N)
  batch_E_sd_t_masked = packed4[..., C_ESDM:C_ESDM + N].reshape(B * T, N, N)
  batch_decoder_input = packed4[:, :, 0, C_DEC:C_DEC + DEC].reshape(B * T, DEC)

  batch_node_h = nodeh.reshape(B * T, N, H)          # post GRU + graph_linear
  batch_edge_h = edgeh.reshape(B * T, N, N, H)
  batch_inputs = jnp.concatenate(
      [batch_node_h, batch_V_val, batch_V_dy], axis=2)          # (B*T, N, DEC)
  batch_enc_h = batch_inputs
  batch_V_reach_mask = V_reach_mask.reshape(B * T, N)

  cou_rep = jnp.repeat(cou[:, None, :], T, axis=1).reshape(B * T, 4)
  cou_id = cou_rep[:, 0].astype(jnp.int32)
  embed_cou = jnp.concatenate(
      [params["cou_embed"][cou_id], cou_rep[:, 1:2], cou_rep[:, 2:3],
       cou_rep[:, 3:4]], axis=1)

  # TODO(synk): self.decoder (pointer network) — class definition not in the
  # provided source; returning the encoder-side tensors that would feed it.
  return dict(
      batch_inputs=batch_inputs,
      batch_enc_h=batch_enc_h,
      batch_decoder_input=batch_decoder_input,
      batch_node_h=batch_node_h,
      batch_edge_h=batch_edge_h,
      batch_V_val=batch_V_val,
      batch_V_dy=batch_V_dy,
      batch_E_ed_t_masked=batch_E_ed_t_masked,
      batch_E_sd_t_masked=batch_E_sd_t_masked,
      batch_V_reach_mask=batch_V_reach_mask,
      embed_cou=embed_cou,
  )


# =========================== parameter init =================================
def init_params(key):
  ks = jax.random.split(key, 9)

  def lin(k, shape, scale=0.1):
    return jax.random.normal(k, shape, dtype=f32) * scale

  return dict(
      w_node=lin(ks[0], (NODE_DIM, H)),          # nodes_embedding (no bias)
      w_edge=lin(ks[1], (EV, H)),                # edges_values_embedding
      w_start=lin(ks[2], (SF, DEC)),             # start_embed
      b_start=lin(ks[3], (1, DEC)),
      cou_embed=lin(ks[4], (NUM_COU, COU_EMB)),  # courier embedding
      # fused GRU weights, gate order [r | z | n]
      w_i=lin(ks[5], (NH, 3 * H)),
      w_h=lin(ks[6], (H, 3 * H)),
      b_i=jnp.zeros((1, 3 * H), f32),
      b_h=jnp.zeros((1, 3 * H), f32),
      w_lin=lin(ks[7], (H, NH)),                 # graph_linear
      b_lin=jnp.zeros((1, NH), f32),
  )


if __name__ == "__main__":
  key = jax.random.PRNGKey(0)
  kp, kd = jax.random.split(key)
  params = init_params(kp)

  keys = jax.random.split(kd, 16)
  E_ed = jax.random.uniform(keys[0], (B, N, N), dtype=f32)
  E_sd = jax.random.uniform(keys[1], (B, N, N), dtype=f32)
  E_pt_dif = jax.random.normal(keys[2], (B, N, N), dtype=f32)
  E_dt_dif = jax.random.normal(keys[3], (B, N, N), dtype=f32)
  E_mask = (jax.random.uniform(keys[4], (B, T, N, N)) > 0.3).astype(f32)
  A = jax.random.normal(keys[5], (B, T, N, N), dtype=f32)
  V = jax.random.normal(keys[6], (B, N, 3), dtype=f32)
  V_pt = jax.random.uniform(keys[7], (B, N), dtype=f32)
  V_ft = jax.random.uniform(keys[8], (B, N), dtype=f32)
  V_dt = jax.random.uniform(keys[9], (B, N), dtype=f32)
  V_num = jax.random.uniform(keys[10], (B, T, N), dtype=f32)
  V_dispatch_mask = (jax.random.uniform(keys[11], (B, T, N)) > 0.3).astype(f32)
  V_reach_mask = jax.random.uniform(keys[12], (B, T, N)) > 0.5
  start_idx = jax.random.randint(keys[13], (B, T), 0, N, dtype=jnp.int32)
  cou_id = jax.random.randint(keys[14], (B, 1), 0, NUM_COU).astype(f32)
  cou_rest = jax.random.uniform(keys[15], (B, 3), dtype=f32)
  cou = jnp.concatenate([cou_id, cou_rest], axis=1)

  fwd = jax.jit(gcnru_forward)
  out = fwd(params, E_ed, V, V_reach_mask, V_pt, E_sd, V_ft, start_idx, V_dt,
            V_num, E_mask, V_dispatch_mask, E_pt_dif, E_dt_dif, cou, A)
  jax.block_until_ready(out)
  print("KERNEL_OK")
</pallas_src>

<mosaic_0001>
module attributes {stable_mosaic.version = 11 : i64} {
  func.func @kernel(%arg0: i32, %arg1: memref<2x3xi32, #tpu.memory_space<smem>>, %arg2: memref<2x12x8x8xf32, #tpu.memory_space<vmem>>, %arg3: memref<2x4x8x8xf32, #tpu.memory_space<vmem>>, %arg4: memref<98x96xf32, #tpu.memory_space<vmem>>, %arg5: memref<73x256xf32, #tpu.memory_space<vmem>>, %arg6: memref<6x42xf32, #tpu.memory_space<vmem>>, %arg7: memref<2x3x256xf32, #tpu.memory_space<vmem>>, %arg8: memref<2x24x128xf32, #tpu.memory_space<vmem>>, %arg9: memref<2x24x256xf32, #tpu.memory_space<vmem>>) attributes {dimension_semantics = [#tpu.dimension_semantics<parallel>], iteration_bounds = array<i64: 1>, scalar_prefetch = 1 : i64, scratch_operands = 0 : i64, tpu.core_type = #tpu.core_type<tc>, window_params = [{transform_indices = @transform_0, window_bounds = array<i64: 2, 12, 8, 8>}, {transform_indices = @transform_1, window_bounds = array<i64: 2, 4, 8, 8>}, {pipeline_mode = #tpu.pipeline_mode<synchronous>, transform_indices = @transform_2, window_bounds = array<i64: 98, 96>}, {pipeline_mode = #tpu.pipeline_mode<synchronous>, transform_indices = @transform_3, window_bounds = array<i64: 73, 256>}, {pipeline_mode = #tpu.pipeline_mode<synchronous>, transform_indices = @transform_4, window_bounds = array<i64: 6, 42>}, {transform_indices = @transform_5, window_bounds = array<i64: 2, 3, 256>}, {transform_indices = @transform_6, window_bounds = array<i64: 2, 24, 128>}, {transform_indices = @transform_7, window_bounds = array<i64: 2, 24, 256>}]} {
    %c0 = arith.constant 0 : index
    %c0_0 = arith.constant 0 : index
    %0 = vector.load %arg4[%c0, %c0_0] : memref<98x96xf32, #tpu.memory_space<vmem>>, vector<64x96xf32>
    %c64 = arith.constant 64 : index
    %c0_1 = arith.constant 0 : index
    %1 = vector.load %arg4[%c64, %c0_1] : memref<98x96xf32, #tpu.memory_space<vmem>>, vector<32x96xf32>
    %c96 = arith.constant 96 : index
    %c0_2 = arith.constant 0 : index
    %2 = vector.load %arg4[%c96, %c0_2] : memref<98x96xf32, #tpu.memory_space<vmem>>, vector<1x96xf32>
    %c97 = arith.constant 97 : index
    %c0_3 = arith.constant 0 : index
    %3 = vector.load %arg4[%c97, %c0_3] : memref<98x96xf32, #tpu.memory_space<vmem>>, vector<1x96xf32>
    %c0_4 = arith.constant 0 : index
    %c0_5 = arith.constant 0 : index
    %4 = vector.load %arg5[%c0_4, %c0_5] : memref<73x256xf32, #tpu.memory_space<vmem>>, vector<40x256xf32>
    %c40 = arith.constant 40 : index
    %c0_6 = arith.constant 0 : index
    %5 = vector.load %arg5[%c40, %c0_6] : memref<73x256xf32, #tpu.memory_space<vmem>>, vector<32x256xf32>
    %c72 = arith.constant 72 : index
    %c0_7 = arith.constant 0 : index
    %6 = vector.load %arg5[%c72, %c0_7] : memref<73x256xf32, #tpu.memory_space<vmem>>, vector<1x256xf32>
    %c0_8 = arith.constant 0 : index
    %c0_9 = arith.constant 0 : index
    %7 = vector.load %arg6[%c0_8, %c0_9] : memref<6x42xf32, #tpu.memory_space<vmem>>, vector<5x42xf32>
    %c5 = arith.constant 5 : index
    %c0_10 = arith.constant 0 : index
    %8 = vector.load %arg6[%c5, %c0_10] : memref<6x42xf32, #tpu.memory_space<vmem>>, vector<1x42xf32>
    %9 = tpu.iota {dimensions = array<i32: 0>} : vector<8x1xi32>
    %10 = tpu.concatenate %9, %9, %9 in 0 : vector<8x1xi32>, vector<8x1xi32>, vector<8x1xi32> -> vector<24x1xi32>
    %c0_i32 = arith.constant 0 : i32
    %11 = vector.broadcast %c0_i32 : i32 to vector<24x1xi32>
    %12 = arith.cmpi eq, %10, %11 : vector<24x1xi32>
    %13 = arith.extui %12 : vector<24x1xi1> to vector<24x1xi32>
    %14 = arith.sitofp %13 : vector<24x1xi32> to vector<24x1xf32>
    %c1_i32 = arith.constant 1 : i32
    %15 = vector.broadcast %c1_i32 : i32 to vector<24x1xi32>
    %16 = arith.cmpi eq, %10, %15 : vector<24x1xi32>
    %17 = arith.extui %16 : vector<24x1xi1> to vector<24x1xi32>
    %18 = arith.sitofp %17 : vector<24x1xi32> to vector<24x1xf32>
    %c2_i32 = arith.constant 2 : i32
    %19 = vector.broadcast %c2_i32 : i32 to vector<24x1xi32>
    %20 = arith.cmpi eq, %10, %19 : vector<24x1xi32>
    %21 = arith.extui %20 : vector<24x1xi1> to vector<24x1xi32>
    %22 = arith.sitofp %21 : vector<24x1xi32> to vector<24x1xf32>
    %c3_i32 = arith.constant 3 : i32
    %23 = vector.broadcast %c3_i32 : i32 to vector<24x1xi32>
    %24 = arith.cmpi eq, %10, %23 : vector<24x1xi32>
    %25 = arith.extui %24 : vector<24x1xi1> to vector<24x1xi32>
    %26 = arith.sitofp %25 : vector<24x1xi32> to vector<24x1xf32>
    %c4_i32 = arith.constant 4 : i32
    %27 = vector.broadcast %c4_i32 : i32 to vector<24x1xi32>
    %28 = arith.cmpi eq, %10, %27 : vector<24x1xi32>
    %29 = arith.extui %28 : vector<24x1xi1> to vector<24x1xi32>
    %30 = arith.sitofp %29 : vector<24x1xi32> to vector<24x1xf32>
    %c5_i32 = arith.constant 5 : i32
    %31 = vector.broadcast %c5_i32 : i32 to vector<24x1xi32>
    %32 = arith.cmpi eq, %10, %31 : vector<24x1xi32>
    %33 = arith.extui %32 : vector<24x1xi1> to vector<24x1xi32>
    %34 = arith.sitofp %33 : vector<24x1xi32> to vector<24x1xf32>
    %c6_i32 = arith.constant 6 : i32
    %35 = vector.broadcast %c6_i32 : i32 to vector<24x1xi32>
    %36 = arith.cmpi eq, %10, %35 : vector<24x1xi32>
    %37 = arith.extui %36 : vector<24x1xi1> to vector<24x1xi32>
    %38 = arith.sitofp %37 : vector<24x1xi32> to vector<24x1xf32>
    %c7_i32 = arith.constant 7 : i32
    %39 = vector.broadcast %c7_i32 : i32 to vector<24x1xi32>
    %40 = arith.cmpi eq, %10, %39 : vector<24x1xi32>
    %41 = arith.extui %40 : vector<24x1xi1> to vector<24x1xi32>
    %42 = arith.sitofp %41 : vector<24x1xi32> to vector<24x1xf32>
    %43 = tpu.iota {dimensions = array<i32: 0>} : vector<3x1xi32>
    %c0_i32_11 = arith.constant 0 : i32
    %44 = vector.broadcast %c0_i32_11 : i32 to vector<1x8xi32>
    %c1_i32_12 = arith.constant 1 : i32
    %45 = vector.broadcast %c1_i32_12 : i32 to vector<1x8xi32>
    %c2_i32_13 = arith.constant 2 : i32
    %46 = vector.broadcast %c2_i32_13 : i32 to vector<1x8xi32>
    %47 = tpu.concatenate %44, %45, %46 in 1 : vector<1x8xi32>, vector<1x8xi32>, vector<1x8xi32> -> vector<1x24xi32>
    %48 = vector.broadcast %47 : vector<1x24xi32> to vector<3x24xi32>
    %49 = vector.broadcast %43 : vector<3x1xi32> to vector<3x24xi32>
    %50 = arith.cmpi eq, %48, %49 : vector<3x24xi32>
    %51 = arith.extui %50 : vector<3x24xi1> to vector<3x24xi32>
    %52 = arith.sitofp %51 : vector<3x24xi32> to vector<3x24xf32>
    %cst = arith.constant 0.000000e+00 : f32
    %53 = vector.broadcast %cst : f32 to vector<8x6xf32>
    %cst_14 = arith.constant 0.000000e+00 : f32
    %54 = vector.broadcast %cst_14 : f32 to vector<8x54xf32>
    %c2_i32_15 = arith.constant 2 : i32
    %55 = arith.muli %arg0, %c2_i32_15 : i32
    %c0_i32_16 = arith.constant 0 : i32
    %56 = arith.addi %55, %c0_i32_16 : i32
    %c0_17 = arith.constant 0 : index
    %c0_18 = arith.constant 0 : index
    %c0_19 = arith.constant 0 : index
    %c0_20 = arith.constant 0 : index
    %57 = vector.load %arg2[%c0_17, %c0_18, %c0_19, %c0_20] : memref<2x12x8x8xf32, #tpu.memory_space<vmem>>, vector<1x1x8x8xf32>
    %58 = vector.shape_cast %57 : vector<1x1x8x8xf32> to vector<8x8xf32>
    %c0_21 = arith.constant 0 : index
    %c1 = arith.constant 1 : index
    %c0_22 = arith.constant 0 : index
    %c0_23 = arith.constant 0 : index
    %59 = vector.load %arg2[%c0_21, %c1, %c0_22, %c0_23] : memref<2x12x8x8xf32, #tpu.memory_space<vmem>>, vector<1x1x8x8xf32>
    %60 = vector.shape_cast %59 : vector<1x1x8x8xf32> to vector<8x8xf32>
    %c0_24 = arith.constant 0 : index
    %c2 = arith.constant 2 : index
    %c0_25 = arith.constant 0 : index
    %c0_26 = arith.constant 0 : index
    %61 = vector.load %arg2[%c0_24, %c2, %c0_25, %c0_26] : memref<2x12x8x8xf32, #tpu.memory_space<vmem>>, vector<1x1x8x8xf32>
    %62 = vector.shape_cast %61 : vector<1x1x8x8xf32> to vector<8x8xf32>
    %c0_27 = arith.constant 0 : index
    %c3 = arith.constant 3 : index
    %c0_28 = arith.constant 0 : index
    %c0_29 = arith.constant 0 : index
    %63 = vector.load %arg2[%c0_27, %c3, %c0_28, %c0_29] : memref<2x12x8x8xf32, #tpu.memory_space<vmem>>, vector<1x1x8x8xf32>
    %64 = vector.shape_cast %63 : vector<1x1x8x8xf32> to vector<8x8xf32>
    %c0_30 = arith.constant 0 : index
    %c4 = arith.constant 4 : index
    %c0_31 = arith.constant 0 : index
    %c0_32 = arith.constant 0 : index
    %65 = vector.load %arg2[%c0_30, %c4, %c0_31, %c0_32] : memref<2x12x8x8xf32, #tpu.memory_space<vmem>>, vector<1x1x8x8xf32>
    %66 = vector.shape_cast %65 : vector<1x1x8x8xf32> to vector<8x8xf32>
    %c0_33 = arith.constant 0 : index
    %c5_34 = arith.constant 5 : index
    %c0_35 = arith.constant 0 : index
    %c0_36 = arith.constant 0 : index
    %67 = vector.load %arg2[%c0_33, %c5_34, %c0_35, %c0_36] : memref<2x12x8x8xf32, #tpu.memory_space<vmem>>, vector<1x1x8x8xf32>
    %68 = vector.shape_cast %67 : vector<1x1x8x8xf32> to vector<8x8xf32>
    %c0_37 = arith.constant 0 : index
    %c0_38 = arith.constant 0 : index
    %c0_39 = arith.constant 0 : index
    %c0_40 = arith.constant 0 : index
    %69 = vector.load %arg3[%c0_37, %c0_38, %c0_39, %c0_40] : memref<2x4x8x8xf32, #tpu.memory_space<vmem>>, vector<1x1x8x8xf32>
    %70 = vector.shape_cast %69 : vector<1x1x8x8xf32> to vector<8x8xf32>
    %71 = arith.index_cast %56 : i32 to index
    %c0_41 = arith.constant 0 : index
    %72 = memref.load %arg1[%71, %c0_41] : memref<2x3xi32, #tpu.memory_space<smem>>
    %73 = tpu.iota {dimensions = array<i32: 1>} : vector<1x8xi32>
    %74 = vector.broadcast %72 : i32 to vector<1x8xi32>
    %75 = arith.cmpi eq, %73, %74 : vector<1x8xi32>
    %76 = arith.extui %75 : vector<1x8xi1> to vector<1x8xi32>
    %77 = arith.sitofp %76 : vector<1x8xi32> to vector<1x8xf32>
    %78 = tpu.iota {dimensions = array<i32: 0>} : vector<8x1xi32>
    %79 = vector.broadcast %72 : i32 to vector<8x1xi32>
    %80 = arith.cmpi eq, %78, %79 : vector<8x1xi32>
    %81 = arith.extui %80 : vector<8x1xi1> to vector<8x1xi32>
    %82 = arith.sitofp %81 : vector<8x1xi32> to vector<8x1xf32>
    %83 = arith.index_cast %56 : i32 to index
    %c1_42 = arith.constant 1 : index
    %84 = memref.load %arg1[%83, %c1_42] : memref<2x3xi32, #tpu.memory_space<smem>>
    %85 = tpu.iota {dimensions = array<i32: 1>} : vector<1x8xi32>
    %86 = vector.broadcast %84 : i32 to vector<1x8xi32>
    %87 = arith.cmpi eq, %85, %86 : vector<1x8xi32>
    %88 = arith.extui %87 : vector<1x8xi1> to vector<1x8xi32>
    %89 = arith.sitofp %88 : vector<1x8xi32> to vector<1x8xf32>
    %90 = tpu.iota {dimensions = array<i32: 0>} : vector<8x1xi32>
    %91 = vector.broadcast %84 : i32 to vector<8x1xi32>
    %92 = arith.cmpi eq, %90, %91 : vector<8x1xi32>
    %93 = arith.extui %92 : vector<8x1xi1> to vector<8x1xi32>
    %94 = arith.sitofp %93 : vector<8x1xi32> to vector<8x1xf32>
    %95 = arith.index_cast %56 : i32 to index
    %c2_43 = arith.constant 2 : index
    %96 = memref.load %arg1[%95, %c2_43] : memref<2x3xi32, #tpu.memory_space<smem>>
    %97 = tpu.iota {dimensions = array<i32: 1>} : vector<1x8xi32>
    %98 = vector.broadcast %96 : i32 to vector<1x8xi32>
    %99 = arith.cmpi eq, %97, %98 : vector<1x8xi32>
    %100 = arith.extui %99 : vector<1x8xi1> to vector<1x8xi32>
    %101 = arith.sitofp %100 : vector<1x8xi32> to vector<1x8xf32>
    %102 = tpu.iota {dimensions = array<i32: 0>} : vector<8x1xi32>
    %103 = vector.broadcast %96 : i32 to vector<8x1xi32>
    %104 = arith.cmpi eq, %102, %103 : vector<8x1xi32>
    %105 = arith.extui %104 : vector<8x1xi1> to vector<8x1xi32>
    %106 = arith.sitofp %105 : vector<8x1xi32> to vector<8x1xf32>
    %107 = tpu.concatenate %77, %89, %101 in 0 : vector<1x8xf32>, vector<1x8xf32>, vector<1x8xf32> -> vector<3x8xf32>
    %108 = tpu.concatenate %82, %94, %106 in 1 : vector<8x1xf32>, vector<8x1xf32>, vector<8x1xf32> -> vector<8x3xf32>
    %cst_44 = arith.constant dense<0.000000e+00> : vector<3x8xf32>
    %109 = tpu.matmul %107, %70, %cst_44 {dimension_numbers = #tpu.dot_dimension_numbers<[1], [0], [0], [1], [0, 0, 1, 1], [], []>} : vector<3x8xf32>, vector<8x8xf32>, vector<3x8xf32> -> vector<3x8xf32>
    %110 = tpu.concatenate %62, %64 in 0 : vector<8x8xf32>, vector<8x8xf32> -> vector<16x8xf32>
    %cst_45 = arith.constant dense<0.000000e+00> : vector<16x3xf32>
    %111 = tpu.matmul %110, %108, %cst_45 {dimension_numbers = #tpu.dot_dimension_numbers<[1], [0], [0], [1], [0, 0, 1, 1], [], []>} : vector<16x8xf32>, vector<8x3xf32>, vector<16x3xf32> -> vector<16x3xf32>
    %112 = vector.extract_strided_slice %111 {offsets = [0, 0], sizes = [8, 3], strides = [1, 1]} : vector<16x3xf32> to vector<8x3xf32>
    %113 = vector.extract_strided_slice %111 {offsets = [8, 0], sizes = [8, 3], strides = [1, 1]} : vector<16x3xf32> to vector<8x3xf32>
    %114 = vector.extract_strided_slice %109 {offsets = [0, 0], sizes = [3, 3], strides = [1, 1]} : vector<3x8xf32> to vector<3x3xf32>
    %115 = vector.extract_strided_slice %109 {offsets = [0, 4], sizes = [3, 1], strides = [1, 1]} : vector<3x8xf32> to vector<3x1xf32>
    %116 = vector.extract_strided_slice %109 {offsets = [0, 5], sizes = [3, 1], strides = [1, 1]} : vector<3x8xf32> to vector<3x1xf32>
    %117 = tpu.concatenate %114, %115, %116 in 1 : vector<3x3xf32>, vector<3x1xf32>, vector<3x1xf32> -> vector<3x5xf32>
    %cst_46 = arith.constant dense<0.000000e+00> : vector<3x42xf32>
    %118 = tpu.matmul %117, %7, %cst_46 {dimension_numbers = #tpu.dot_dimension_numbers<[1], [0], [0], [1], [0, 0, 1, 1], [], []>} : vector<3x5xf32>, vector<5x42xf32>, vector<3x42xf32> -> vector<3x42xf32>
    %119 = vector.broadcast %8 : vector<1x42xf32> to vector<3x42xf32>
    %120 = arith.addf %118, %119 : vector<3x42xf32>
    %c0_47 = arith.constant 0 : index
    %c6 = arith.constant 6 : index
    %c0_48 = arith.constant 0 : index
    %c0_49 = arith.constant 0 : index
    %121 = vector.load %arg2[%c0_47, %c6, %c0_48, %c0_49] : memref<2x12x8x8xf32, #tpu.memory_space<vmem>>, vector<1x1x8x8xf32>
    %122 = vector.shape_cast %121 : vector<1x1x8x8xf32> to vector<8x8xf32>
    %c0_50 = arith.constant 0 : index
    %c9 = arith.constant 9 : index
    %c0_51 = arith.constant 0 : index
    %c0_52 = arith.constant 0 : index
    %123 = vector.load %arg2[%c0_50, %c9, %c0_51, %c0_52] : memref<2x12x8x8xf32, #tpu.memory_space<vmem>>, vector<1x1x8x8xf32>
    %124 = vector.shape_cast %123 : vector<1x1x8x8xf32> to vector<8x8xf32>
    %c0_53 = arith.constant 0 : index
    %c1_54 = arith.constant 1 : index
    %c0_55 = arith.constant 0 : index
    %c0_56 = arith.constant 0 : index
    %125 = vector.load %arg3[%c0_53, %c1_54, %c0_55, %c0_56] : memref<2x4x8x8xf32, #tpu.memory_space<vmem>>, vector<1x1x8x8xf32>
    %126 = vector.shape_cast %125 : vector<1x1x8x8xf32> to vector<8x8xf32>
    %127 = vector.extract_strided_slice %126 {offsets = [0, 0], sizes = [8, 1], strides = [1, 1]} : vector<8x8xf32> to vector<8x1xf32>
    %128 = vector.extract_strided_slice %126 {offsets = [0, 1], sizes = [8, 1], strides = [1, 1]} : vector<8x8xf32> to vector<8x1xf32>
    %129 = vector.extract_strided_slice %109 {offsets = [0, 4], sizes = [1, 1], strides = [1, 1]} : vector<3x8xf32> to vector<1x1xf32>
    %130 = vector.extract_strided_slice %112 {offsets = [0, 0], sizes = [8, 1], strides = [1, 1]} : vector<8x3xf32> to vector<8x1xf32>
    %131 = arith.mulf %130, %128 : vector<8x1xf32>
    %132 = vector.extract_strided_slice %113 {offsets = [0, 0], sizes = [8, 1], strides = [1, 1]} : vector<8x3xf32> to vector<8x1xf32>
    %133 = arith.mulf %132, %128 : vector<8x1xf32>
    %134 = vector.extract_strided_slice %70 {offsets = [0, 0], sizes = [8, 3], strides = [1, 1]} : vector<8x8xf32> to vector<8x3xf32>
    %135 = vector.extract_strided_slice %70 {offsets = [0, 3], sizes = [8, 1], strides = [1, 1]} : vector<8x8xf32> to vector<8x1xf32>
    %136 = vector.broadcast %129 : vector<1x1xf32> to vector<8x1xf32>
    %137 = arith.subf %135, %136 : vector<8x1xf32>
    %138 = vector.extract_strided_slice %70 {offsets = [0, 5], sizes = [8, 1], strides = [1, 1]} : vector<8x8xf32> to vector<8x1xf32>
    %139 = vector.broadcast %129 : vector<1x1xf32> to vector<8x1xf32>
    %140 = arith.subf %139, %138 : vector<8x1xf32>
    %141 = tpu.concatenate %134, %137, %140, %131, %133, %127 in 1 : vector<8x3xf32>, vector<8x1xf32>, vector<8x1xf32>, vector<8x1xf32>, vector<8x1xf32>, vector<8x1xf32> -> vector<8x8xf32>
    %142 = vector.broadcast %128 : vector<8x1xf32> to vector<8x8xf32>
    %143 = arith.mulf %141, %142 : vector<8x8xf32>
    %144 = tpu.concatenate %131, %133 in 1 : vector<8x1xf32>, vector<8x1xf32> -> vector<8x2xf32>
    %145 = arith.mulf %58, %122 : vector<8x8xf32>
    %146 = arith.mulf %60, %122 : vector<8x8xf32>
    %147 = vector.extract_strided_slice %120 {offsets = [0, 0], sizes = [1, 42], strides = [1, 1]} : vector<3x42xf32> to vector<1x42xf32>
    %148 = vector.shape_cast %147 : vector<1x42xf32> to vector<1x42xf32>
    %149 = vector.broadcast %148 : vector<1x42xf32> to vector<8x42xf32>
    %150 = tpu.concatenate %143, %144, %53, %145, %146, %149, %54 in 1 : vector<8x8xf32>, vector<8x2xf32>, vector<8x6xf32>, vector<8x8xf32>, vector<8x8xf32>, vector<8x42xf32>, vector<8x54xf32> -> vector<8x128xf32>
    %151 = arith.mulf %66, %122 : vector<8x8xf32>
    %152 = arith.mulf %68, %122 : vector<8x8xf32>
    %153 = tpu.concatenate %146, %145, %151, %152, %124 in 1 : vector<8x8xf32>, vector<8x8xf32>, vector<8x8xf32>, vector<8x8xf32>, vector<8x8xf32> -> vector<8x40xf32>
    %c0_57 = arith.constant 0 : index
    %c7 = arith.constant 7 : index
    %c0_58 = arith.constant 0 : index
    %c0_59 = arith.constant 0 : index
    %154 = vector.load %arg2[%c0_57, %c7, %c0_58, %c0_59] : memref<2x12x8x8xf32, #tpu.memory_space<vmem>>, vector<1x1x8x8xf32>
    %155 = vector.shape_cast %154 : vector<1x1x8x8xf32> to vector<8x8xf32>
    %c0_60 = arith.constant 0 : index
    %c10 = arith.constant 10 : index
    %c0_61 = arith.constant 0 : index
    %c0_62 = arith.constant 0 : index
    %156 = vector.load %arg2[%c0_60, %c10, %c0_61, %c0_62] : memref<2x12x8x8xf32, #tpu.memory_space<vmem>>, vector<1x1x8x8xf32>
    %157 = vector.shape_cast %156 : vector<1x1x8x8xf32> to vector<8x8xf32>
    %c0_63 = arith.constant 0 : index
    %c2_64 = arith.constant 2 : index
    %c0_65 = arith.constant 0 : index
    %c0_66 = arith.constant 0 : index
    %158 = vector.load %arg3[%c0_63, %c2_64, %c0_65, %c0_66] : memref<2x4x8x8xf32, #tpu.memory_space<vmem>>, vector<1x1x8x8xf32>
    %159 = vector.shape_cast %158 : vector<1x1x8x8xf32> to vector<8x8xf32>
    %160 = vector.extract_strided_slice %159 {offsets = [0, 0], sizes = [8, 1], strides = [1, 1]} : vector<8x8xf32> to vector<8x1xf32>
    %161 = vector.extract_strided_slice %159 {offsets = [0, 1], sizes = [8, 1], strides = [1, 1]} : vector<8x8xf32> to vector<8x1xf32>
    %162 = vector.extract_strided_slice %109 {offsets = [1, 4], sizes = [1, 1], strides = [1, 1]} : vector<3x8xf32> to vector<1x1xf32>
    %163 = vector.extract_strided_slice %112 {offsets = [0, 1], sizes = [8, 1], strides = [1, 1]} : vector<8x3xf32> to vector<8x1xf32>
    %164 = arith.mulf %163, %161 : vector<8x1xf32>
    %165 = vector.extract_strided_slice %113 {offsets = [0, 1], sizes = [8, 1], strides = [1, 1]} : vector<8x3xf32> to vector<8x1xf32>
    %166 = arith.mulf %165, %161 : vector<8x1xf32>
    %167 = vector.extract_strided_slice %70 {offsets = [0, 0], sizes = [8, 3], strides = [1, 1]} : vector<8x8xf32> to vector<8x3xf32>
    %168 = vector.extract_strided_slice %70 {offsets = [0, 3], sizes = [8, 1], strides = [1, 1]} : vector<8x8xf32> to vector<8x1xf32>
    %169 = vector.broadcast %162 : vector<1x1xf32> to vector<8x1xf32>
    %170 = arith.subf %168, %169 : vector<8x1xf32>
    %171 = vector.extract_strided_slice %70 {offsets = [0, 5], sizes = [8, 1], strides = [1, 1]} : vector<8x8xf32> to vector<8x1xf32>
    %172 = vector.broadcast %162 : vector<1x1xf32> to vector<8x1xf32>
    %173 = arith.subf %172, %171 : vector<8x1xf32>
    %174 = tpu.concatenate %167, %170, %173, %164, %166, %160 in 1 : vector<8x3xf32>, vector<8x1xf32>, vector<8x1xf32>, vector<8x1xf32>, vector<8x1xf32>, vector<8x1xf32> -> vector<8x8xf32>
    %175 = vector.broadcast %161 : vector<8x1xf32> to vector<8x8xf32>
    %176 = arith.mulf %174, %175 : vector<8x8xf32>
    %177 = tpu.concatenate %164, %166 in 1 : vector<8x1xf32>, vector<8x1xf32> -> vector<8x2xf32>
    %178 = arith.mulf %58, %155 : vector<8x8xf32>
    %179 = arith.mulf %60, %155 : vector<8x8xf32>
    %180 = vector.extract_strided_slice %120 {offsets = [1, 0], sizes = [1, 42], strides = [1, 1]} : vector<3x42xf32> to vector<1x42xf32>
    %181 = vector.shape_cast %180 : vector<1x42xf32> to vector<1x42xf32>
    %182 = vector.broadcast %181 : vector<1x42xf32> to vector<8x42xf32>
    %183 = tpu.concatenate %176, %177, %53, %178, %179, %182, %54 in 1 : vector<8x8xf32>, vector<8x2xf32>, vector<8x6xf32>, vector<8x8xf32>, vector<8x8xf32>, vector<8x42xf32>, vector<8x54xf32> -> vector<8x128xf32>
    %184 = arith.mulf %66, %155 : vector<8x8xf32>
    %185 = arith.mulf %68, %155 : vector<8x8xf32>
    %186 = tpu.concatenate %179, %178, %184, %185, %157 in 1 : vector<8x8xf32>, vector<8x8xf32>, vector<8x8xf32>, vector<8x8xf32>, vector<8x8xf32> -> vector<8x40xf32>
    %c0_67 = arith.constant 0 : index
    %c8 = arith.constant 8 : index
    %c0_68 = arith.constant 0 : index
    %c0_69 = arith.constant 0 : index
    %187 = vector.load %arg2[%c0_67, %c8, %c0_68, %c0_69] : memref<2x12x8x8xf32, #tpu.memory_space<vmem>>, vector<1x1x8x8xf32>
    %188 = vector.shape_cast %187 : vector<1x1x8x8xf32> to vector<8x8xf32>
    %c0_70 = arith.constant 0 : index
    %c11 = arith.constant 11 : index
    %c0_71 = arith.constant 0 : index
    %c0_72 = arith.constant 0 : index
    %189 = vector.load %arg2[%c0_70, %c11, %c0_71, %c0_72] : memref<2x12x8x8xf32, #tpu.memory_space<vmem>>, vector<1x1x8x8xf32>
    %190 = vector.shape_cast %189 : vector<1x1x8x8xf32> to vector<8x8xf32>
    %c0_73 = arith.constant 0 : index
    %c3_74 = arith.constant 3 : index
    %c0_75 = arith.constant 0 : index
    %c0_76 = arith.constant 0 : index
    %191 = vector.load %arg3[%c0_73, %c3_74, %c0_75, %c0_76] : memref<2x4x8x8xf32, #tpu.memory_space<vmem>>, vector<1x1x8x8xf32>
    %192 = vector.shape_cast %191 : vector<1x1x8x8xf32> to vector<8x8xf32>
    %193 = vector.extract_strided_slice %192 {offsets = [0, 0], sizes = [8, 1], strides = [1, 1]} : vector<8x8xf32> to vector<8x1xf32>
    %194 = vector.extract_strided_slice %192 {offsets = [0, 1], sizes = [8, 1], strides = [1, 1]} : vector<8x8xf32> to vector<8x1xf32>
    %195 = vector.extract_strided_slice %109 {offsets = [2, 4], sizes = [1, 1], strides = [1, 1]} : vector<3x8xf32> to vector<1x1xf32>
    %196 = vector.extract_strided_slice %112 {offsets = [0, 2], sizes = [8, 1], strides = [1, 1]} : vector<8x3xf32> to vector<8x1xf32>
    %197 = arith.mulf %196, %194 : vector<8x1xf32>
    %198 = vector.extract_strided_slice %113 {offsets = [0, 2], sizes = [8, 1], strides = [1, 1]} : vector<8x3xf32> to vector<8x1xf32>
    %199 = arith.mulf %198, %194 : vector<8x1xf32>
    %200 = vector.extract_strided_slice %70 {offsets = [0, 0], sizes = [8, 3], strides = [1, 1]} : vector<8x8xf32> to vector<8x3xf32>
    %201 = vector.extract_strided_slice %70 {offsets = [0, 3], sizes = [8, 1], strides = [1, 1]} : vector<8x8xf32> to vector<8x1xf32>
    %202 = vector.broadcast %195 : vector<1x1xf32> to vector<8x1xf32>
    %203 = arith.subf %201, %202 : vector<8x1xf32>
    %204 = vector.extract_strided_slice %70 {offsets = [0, 5], sizes = [8, 1], strides = [1, 1]} : vector<8x8xf32> to vector<8x1xf32>
    %205 = vector.broadcast %195 : vector<1x1xf32> to vector<8x1xf32>
    %206 = arith.subf %205, %204 : vector<8x1xf32>
    %207 = tpu.concatenate %200, %203, %206, %197, %199, %193 in 1 : vector<8x3xf32>, vector<8x1xf32>, vector<8x1xf32>, vector<8x1xf32>, vector<8x1xf32>, vector<8x1xf32> -> vector<8x8xf32>
    %208 = vector.broadcast %194 : vector<8x1xf32> to vector<8x8xf32>
    %209 = arith.mulf %207, %208 : vector<8x8xf32>
    %210 = tpu.concatenate %197, %199 in 1 : vector<8x1xf32>, vector<8x1xf32> -> vector<8x2xf32>
    %211 = arith.mulf %58, %188 : vector<8x8xf32>
    %212 = arith.mulf %60, %188 : vector<8x8xf32>
    %213 = vector.extract_strided_slice %120 {offsets = [2, 0], sizes = [1, 42], strides = [1, 1]} : vector<3x42xf32> to vector<1x42xf32>
    %214 = vector.shape_cast %213 : vector<1x42xf32> to vector<1x42xf32>
    %215 = vector.broadcast %214 : vector<1x42xf32> to vector<8x42xf32>
    %216 = tpu.concatenate %209, %210, %53, %211, %212, %215, %54 in 1 : vector<8x8xf32>, vector<8x2xf32>, vector<8x6xf32>, vector<8x8xf32>, vector<8x8xf32>, vector<8x42xf32>, vector<8x54xf32> -> vector<8x128xf32>
    %217 = arith.mulf %66, %188 : vector<8x8xf32>
    %218 = arith.mulf %68, %188 : vector<8x8xf32>
    %219 = tpu.concatenate %212, %211, %217, %218, %190 in 1 : vector<8x8xf32>, vector<8x8xf32>, vector<8x8xf32>, vector<8x8xf32>, vector<8x8xf32> -> vector<8x40xf32>
    %220 = tpu.concatenate %150, %183, %216 in 0 : vector<8x128xf32>, vector<8x128xf32>, vector<8x128xf32> -> vector<24x128xf32>
    %c0_77 = arith.constant 0 : index
    %c0_78 = arith.constant 0 : index
    %c0_79 = arith.constant 0 : index
    %221 = vector.load %arg8[%c0_77, %c0_78, %c0_79] : memref<2x24x128xf32, #tpu.memory_space<vmem>>, vector<1x24x128xf32>
    %222 = vector.shape_cast %221 : vector<1x24x128xf32> to vector<24x128xf32>
    %223 = vector.shape_cast %220 : vector<24x128xf32> to vector<1x24x128xf32>
    tpu.vector_store %arg8[%c0_77, %c0_78, %c0_79], %223 {strides = array<i32>} : memref<2x24x128xf32, #tpu.memory_space<vmem>>, vector<1x24x128xf32>,
    %224 = tpu.concatenate %153, %186, %219 in 0 : vector<8x40xf32>, vector<8x40xf32>, vector<8x40xf32> -> vector<24x40xf32>
    %cst_80 = arith.constant dense<0.000000e+00> : vector<24x256xf32>
    %225 = tpu.matmul %224, %4, %cst_80 {dimension_numbers = #tpu.dot_dimension_numbers<[1], [0], [0], [1], [0, 0, 1, 1], [], []>} : vector<24x40xf32>, vector<40x256xf32>, vector<24x256xf32> -> vector<24x256xf32>
    %c0_81 = arith.constant 0 : index
    %c0_82 = arith.constant 0 : index
    %c0_83 = arith.constant 0 : index
    %226 = vector.load %arg9[%c0_81, %c0_82, %c0_83] : memref<2x24x256xf32, #tpu.memory_space<vmem>>, vector<1x24x256xf32>
    %227 = vector.shape_cast %226 : vector<1x24x256xf32> to vector<24x256xf32>
    %228 = vector.shape_cast %225 : vector<24x256xf32> to vector<1x24x256xf32>
    tpu.vector_store %arg9[%c0_81, %c0_82, %c0_83], %228 {strides = array<i32>} : memref<2x24x256xf32, #tpu.memory_space<vmem>>, vector<1x24x256xf32>,
    %229 = tpu.concatenate %143, %176, %209 in 0 : vector<8x8xf32>, vector<8x8xf32>, vector<8x8xf32> -> vector<24x8xf32>
    %230 = vector.broadcast %14 : vector<24x1xf32> to vector<24x8xf32>
    %231 = arith.mulf %229, %230 : vector<24x8xf32>
    %232 = vector.broadcast %18 : vector<24x1xf32> to vector<24x8xf32>
    %233 = arith.mulf %229, %232 : vector<24x8xf32>
    %234 = vector.broadcast %22 : vector<24x1xf32> to vector<24x8xf32>
    %235 = arith.mulf %229, %234 : vector<24x8xf32>
    %236 = vector.broadcast %26 : vector<24x1xf32> to vector<24x8xf32>
    %237 = arith.mulf %229, %236 : vector<24x8xf32>
    %238 = vector.broadcast %30 : vector<24x1xf32> to vector<24x8xf32>
    %239 = arith.mulf %229, %238 : vector<24x8xf32>
    %240 = vector.broadcast %34 : vector<24x1xf32> to vector<24x8xf32>
    %241 = arith.mulf %229, %240 : vector<24x8xf32>
    %242 = vector.broadcast %38 : vector<24x1xf32> to vector<24x8xf32>
    %243 = arith.mulf %229, %242 : vector<24x8xf32>
    %244 = vector.broadcast %42 : vector<24x1xf32> to vector<24x8xf32>
    %245 = arith.mulf %229, %244 : vector<24x8xf32>
    %246 = tpu.concatenate %231, %233, %235, %237, %239, %241, %243, %245 in 1 : vector<24x8xf32>, vector<24x8xf32>, vector<24x8xf32>, vector<24x8xf32>, vector<24x8xf32>, vector<24x8xf32>, vector<24x8xf32>, vector<24x8xf32> -> vector<24x64xf32>
    %cst_84 = arith.constant dense<0.000000e+00> : vector<24x96xf32>
    %247 = tpu.matmul %246, %0, %cst_84 {dimension_numbers = #tpu.dot_dimension_numbers<[1], [0], [0], [1], [0, 0, 1, 1], [], []>} : vector<24x64xf32>, vector<64x96xf32>, vector<24x96xf32> -> vector<24x96xf32>
    %cst_85 = arith.constant dense<0.000000e+00> : vector<3x96xf32>
    %248 = tpu.matmul %52, %247, %cst_85 {dimension_numbers = #tpu.dot_dimension_numbers<[1], [0], [0], [1], [0, 0, 1, 1], [], []>} : vector<3x24xf32>, vector<24x96xf32>, vector<3x96xf32> -> vector<3x96xf32>
    %249 = vector.broadcast %2 : vector<1x96xf32> to vector<3x96xf32>
    %250 = arith.addf %248, %249 : vector<3x96xf32>
    %cst_86 = arith.constant 0.000000e+00 : f32
    %251 = vector.broadcast %cst_86 : f32 to vector<1x32xf32>
    %252 = vector.extract_strided_slice %250 {offsets = [0, 0], sizes = [1, 96], strides = [1, 1]} : vector<3x96xf32> to vector<1x96xf32>
    %cst_87 = arith.constant dense<0.000000e+00> : vector<1x96xf32>
    %253 = tpu.matmul %251, %1, %cst_87 {dimension_numbers = #tpu.dot_dimension_numbers<[1], [0], [0], [1], [0, 0, 1, 1], [], []>} : vector<1x32xf32>, vector<32x96xf32>, vector<1x96xf32> -> vector<1x96xf32>
    %254 = arith.addf %253, %3 : vector<1x96xf32>
    %255 = vector.extract_strided_slice %252 {offsets = [0, 0], sizes = [1, 32], strides = [1, 1]} : vector<1x96xf32> to vector<1x32xf32>
    %256 = vector.extract_strided_slice %254 {offsets = [0, 0], sizes = [1, 32], strides = [1, 1]} : vector<1x96xf32> to vector<1x32xf32>
    %257 = arith.addf %255, %256 : vector<1x32xf32>
    %258 = arith.negf %257 : vector<1x32xf32>
    %259 = math.exp %258 : vector<1x32xf32>
    %cst_88 = arith.constant 1.000000e+00 : f32
    %260 = vector.broadcast %cst_88 : f32 to vector<1x32xf32>
    %261 = arith.addf %260, %259 : vector<1x32xf32>
    %262 = arith.divf %260, %261 : vector<1x32xf32>
    %263 = vector.extract_strided_slice %252 {offsets = [0, 32], sizes = [1, 32], strides = [1, 1]} : vector<1x96xf32> to vector<1x32xf32>
    %264 = vector.extract_strided_slice %254 {offsets = [0, 32], sizes = [1, 32], strides = [1, 1]} : vector<1x96xf32> to vector<1x32xf32>
    %265 = arith.addf %263, %264 : vector<1x32xf32>
    %266 = arith.negf %265 : vector<1x32xf32>
    %267 = math.exp %266 : vector<1x32xf32>
    %cst_89 = arith.constant 1.000000e+00 : f32
    %268 = vector.broadcast %cst_89 : f32 to vector<1x32xf32>
    %269 = arith.addf %268, %267 : vector<1x32xf32>
    %270 = arith.divf %268, %269 : vector<1x32xf32>
    %271 = vector.extract_strided_slice %252 {offsets = [0, 64], sizes = [1, 32], strides = [1, 1]} : vector<1x96xf32> to vector<1x32xf32>
    %272 = vector.extract_strided_slice %254 {offsets = [0, 64], sizes = [1, 32], strides = [1, 1]} : vector<1x96xf32> to vector<1x32xf32>
    %273 = arith.mulf %262, %272 : vector<1x32xf32>
    %274 = arith.addf %271, %273 : vector<1x32xf32>
    %275 = math.tanh %274 : vector<1x32xf32>
    %cst_90 = arith.constant 1.000000e+00 : f32
    %276 = vector.broadcast %cst_90 : f32 to vector<1x32xf32>
    %277 = arith.subf %276, %270 : vector<1x32xf32>
    %278 = arith.mulf %277, %275 : vector<1x32xf32>
    %279 = arith.mulf %270, %251 : vector<1x32xf32>
    %280 = arith.addf %278, %279 : vector<1x32xf32>
    %281 = vector.extract_strided_slice %250 {offsets = [1, 0], sizes = [1, 96], strides = [1, 1]} : vector<3x96xf32> to vector<1x96xf32>
    %cst_91 = arith.constant dense<0.000000e+00> : vector<1x96xf32>
    %282 = tpu.matmul %280, %1, %cst_91 {dimension_numbers = #tpu.dot_dimension_numbers<[1], [0], [0], [1], [0, 0, 1, 1], [], []>} : vector<1x32xf32>, vector<32x96xf32>, vector<1x96xf32> -> vector<1x96xf32>
    %283 = arith.addf %282, %3 : vector<1x96xf32>
    %284 = vector.extract_strided_slice %281 {offsets = [0, 0], sizes = [1, 32], strides = [1, 1]} : vector<1x96xf32> to vector<1x32xf32>
    %285 = vector.extract_strided_slice %283 {offsets = [0, 0], sizes = [1, 32], strides = [1, 1]} : vector<1x96xf32> to vector<1x32xf32>
    %286 = arith.addf %284, %285 : vector<1x32xf32>
    %287 = arith.negf %286 : vector<1x32xf32>
    %288 = math.exp %287 : vector<1x32xf32>
    %cst_92 = arith.constant 1.000000e+00 : f32
    %289 = vector.broadcast %cst_92 : f32 to vector<1x32xf32>
    %290 = arith.addf %289, %288 : vector<1x32xf32>
    %291 = arith.divf %289, %290 : vector<1x32xf32>
    %292 = vector.extract_strided_slice %281 {offsets = [0, 32], sizes = [1, 32], strides = [1, 1]} : vector<1x96xf32> to vector<1x32xf32>
    %293 = vector.extract_strided_slice %283 {offsets = [0, 32], sizes = [1, 32], strides = [1, 1]} : vector<1x96xf32> to vector<1x32xf32>
    %294 = arith.addf %292, %293 : vector<1x32xf32>
    %295 = arith.negf %294 : vector<1x32xf32>
    %296 = math.exp %295 : vector<1x32xf32>
    %cst_93 = arith.constant 1.000000e+00 : f32
    %297 = vector.broadcast %cst_93 : f32 to vector<1x32xf32>
    %298 = arith.addf %297, %296 : vector<1x32xf32>
    %299 = arith.divf %297, %298 : vector<1x32xf32>
    %300 = vector.extract_strided_slice %281 {offsets = [0, 64], sizes = [1, 32], strides = [1, 1]} : vector<1x96xf32> to vector<1x32xf32>
    %301 = vector.extract_strided_slice %283 {offsets = [0, 64], sizes = [1, 32], strides = [1, 1]} : vector<1x96xf32> to vector<1x32xf32>
    %302 = arith.mulf %291, %301 : vector<1x32xf32>
    %303 = arith.addf %300, %302 : vector<1x32xf32>
    %304 = math.tanh %303 : vector<1x32xf32>
    %cst_94 = arith.constant 1.000000e+00 : f32
    %305 = vector.broadcast %cst_94 : f32 to vector<1x32xf32>
    %306 = arith.subf %305, %299 : vector<1x32xf32>
    %307 = arith.mulf %306, %304 : vector<1x32xf32>
    %308 = arith.mulf %299, %280 : vector<1x32xf32>
    %309 = arith.addf %307, %308 : vector<1x32xf32>
    %310 = vector.extract_strided_slice %250 {offsets = [2, 0], sizes = [1, 96], strides = [1, 1]} : vector<3x96xf32> to vector<1x96xf32>
    %cst_95 = arith.constant dense<0.000000e+00> : vector<1x96xf32>
    %311 = tpu.matmul %309, %1, %cst_95 {dimension_numbers = #tpu.dot_dimension_numbers<[1], [0], [0], [1], [0, 0, 1, 1], [], []>} : vector<1x32xf32>, vector<32x96xf32>, vector<1x96xf32> -> vector<1x96xf32>
    %312 = arith.addf %311, %3 : vector<1x96xf32>
    %313 = vector.extract_strided_slice %310 {offsets = [0, 0], sizes = [1, 32], strides = [1, 1]} : vector<1x96xf32> to vector<1x32xf32>
    %314 = vector.extract_strided_slice %312 {offsets = [0, 0], sizes = [1, 32], strides = [1, 1]} : vector<1x96xf32> to vector<1x32xf32>
    %315 = arith.addf %313, %314 : vector<1x32xf32>
    %316 = arith.negf %315 : vector<1x32xf32>
    %317 = math.exp %316 : vector<1x32xf32>
    %cst_96 = arith.constant 1.000000e+00 : f32
    %318 = vector.broadcast %cst_96 : f32 to vector<1x32xf32>
    %319 = arith.addf %318, %317 : vector<1x32xf32>
    %320 = arith.divf %318, %319 : vector<1x32xf32>
    %321 = vector.extract_strided_slice %310 {offsets = [0, 32], sizes = [1, 32], strides = [1, 1]} : vector<1x96xf32> to vector<1x32xf32>
    %322 = vector.extract_strided_slice %312 {offsets = [0, 32], sizes = [1, 32], strides = [1, 1]} : vector<1x96xf32> to vector<1x32xf32>
    %323 = arith.addf %321, %322 : vector<1x32xf32>
    %324 = arith.negf %323 : vector<1x32xf32>
    %325 = math.exp %324 : vector<1x32xf32>
    %cst_97 = arith.constant 1.000000e+00 : f32
    %326 = vector.broadcast %cst_97 : f32 to vector<1x32xf32>
    %327 = arith.addf %326, %325 : vector<1x32xf32>
    %328 = arith.divf %326, %327 : vector<1x32xf32>
    %329 = vector.extract_strided_slice %310 {offsets = [0, 64], sizes = [1, 32], strides = [1, 1]} : vector<1x96xf32> to vector<1x32xf32>
    %330 = vector.extract_strided_slice %312 {offsets = [0, 64], sizes = [1, 32], strides = [1, 1]} : vector<1x96xf32> to vector<1x32xf32>
    %331 = arith.mulf %320, %330 : vector<1x32xf32>
    %332 = arith.addf %329, %331 : vector<1x32xf32>
    %333 = math.tanh %332 : vector<1x32xf32>
    %cst_98 = arith.constant 1.000000e+00 : f32
    %334 = vector.broadcast %cst_98 : f32 to vector<1x32xf32>
    %335 = arith.subf %334, %328 : vector<1x32xf32>
    %336 = arith.mulf %335, %333 : vector<1x32xf32>
    %337 = arith.mulf %328, %309 : vector<1x32xf32>
    %338 = arith.addf %336, %337 : vector<1x32xf32>
    %339 = tpu.concatenate %280, %309, %338 in 0 : vector<1x32xf32>, vector<1x32xf32>, vector<1x32xf32> -> vector<3x32xf32>
    %cst_99 = arith.constant dense<0.000000e+00> : vector<3x256xf32>
    %340 = tpu.matmul %339, %5, %cst_99 {dimension_numbers = #tpu.dot_dimension_numbers<[1], [0], [0], [1], [0, 0, 1, 1], [], []>} : vector<3x32xf32>, vector<32x256xf32>, vector<3x256xf32> -> vector<3x256xf32>
    %341 = vector.broadcast %6 : vector<1x256xf32> to vector<3x256xf32>
    %342 = arith.addf %340, %341 : vector<3x256xf32>
    %c0_100 = arith.constant 0 : index
    %c0_101 = arith.constant 0 : index
    %c0_102 = arith.constant 0 : index
    %343 = vector.load %arg7[%c0_100, %c0_101, %c0_102] : memref<2x3x256xf32, #tpu.memory_space<vmem>>, vector<1x3x256xf32>
    %344 = vector.shape_cast %343 : vector<1x3x256xf32> to vector<3x256xf32>
    %345 = vector.shape_cast %342 : vector<3x256xf32> to vector<1x3x256xf32>
    tpu.vector_store %arg7[%c0_100, %c0_101, %c0_102], %345 {strides = array<i32>} : memref<2x3x256xf32, #tpu.memory_space<vmem>>, vector<1x3x256xf32>,
    %c2_i32_103 = arith.constant 2 : i32
    %346 = arith.muli %arg0, %c2_i32_103 : i32
    %c1_i32_104 = arith.constant 1 : i32
    %347 = arith.addi %346, %c1_i32_104 : i32
    %c1_105 = arith.constant 1 : index
    %c0_106 = arith.constant 0 : index
    %c0_107 = arith.constant 0 : index
    %c0_108 = arith.constant 0 : index
    %348 = vector.load %arg2[%c1_105, %c0_106, %c0_107, %c0_108] : memref<2x12x8x8xf32, #tpu.memory_space<vmem>>, vector<1x1x8x8xf32>
    %349 = vector.shape_cast %348 : vector<1x1x8x8xf32> to vector<8x8xf32>
    %c1_109 = arith.constant 1 : index
    %c1_110 = arith.constant 1 : index
    %c0_111 = arith.constant 0 : index
    %c0_112 = arith.constant 0 : index
    %350 = vector.load %arg2[%c1_109, %c1_110, %c0_111, %c0_112] : memref<2x12x8x8xf32, #tpu.memory_space<vmem>>, vector<1x1x8x8xf32>
    %351 = vector.shape_cast %350 : vector<1x1x8x8xf32> to vector<8x8xf32>
    %c1_113 = arith.constant 1 : index
    %c2_114 = arith.constant 2 : index
    %c0_115 = arith.constant 0 : index
    %c0_116 = arith.constant 0 : index
    %352 = vector.load %arg2[%c1_113, %c2_114, %c0_115, %c0_116] : memref<2x12x8x8xf32, #tpu.memory_space<vmem>>, vector<1x1x8x8xf32>
    %353 = vector.shape_cast %352 : vector<1x1x8x8xf32> to vector<8x8xf32>
    %c1_117 = arith.constant 1 : index
    %c3_118 = arith.constant 3 : index
    %c0_119 = arith.constant 0 : index
    %c0_120 = arith.constant 0 : index
    %354 = vector.load %arg2[%c1_117, %c3_118, %c0_119, %c0_120] : memref<2x12x8x8xf32, #tpu.memory_space<vmem>>, vector<1x1x8x8xf32>
    %355 = vector.shape_cast %354 : vector<1x1x8x8xf32> to vector<8x8xf32>
    %c1_121 = arith.constant 1 : index
    %c4_122 = arith.constant 4 : index
    %c0_123 = arith.constant 0 : index
    %c0_124 = arith.constant 0 : index
    %356 = vector.load %arg2[%c1_121, %c4_122, %c0_123, %c0_124] : memref<2x12x8x8xf32, #tpu.memory_space<vmem>>, vector<1x1x8x8xf32>
    %357 = vector.shape_cast %356 : vector<1x1x8x8xf32> to vector<8x8xf32>
    %c1_125 = arith.constant 1 : index
    %c5_126 = arith.constant 5 : index
    %c0_127 = arith.constant 0 : index
    %c0_128 = arith.constant 0 : index
    %358 = vector.load %arg2[%c1_125, %c5_126, %c0_127, %c0_128] : memref<2x12x8x8xf32, #tpu.memory_space<vmem>>, vector<1x1x8x8xf32>
    %359 = vector.shape_cast %358 : vector<1x1x8x8xf32> to vector<8x8xf32>
    %c1_129 = arith.constant 1 : index
    %c0_130 = arith.constant 0 : index
    %c0_131 = arith.constant 0 : index
    %c0_132 = arith.constant 0 : index
    %360 = vector.load %arg3[%c1_129, %c0_130, %c0_131, %c0_132] : memref<2x4x8x8xf32, #tpu.memory_space<vmem>>, vector<1x1x8x8xf32>
    %361 = vector.shape_cast %360 : vector<1x1x8x8xf32> to vector<8x8xf32>
    %362 = arith.index_cast %347 : i32 to index
    %c0_133 = arith.constant 0 : index
    %363 = memref.load %arg1[%362, %c0_133] : memref<2x3xi32, #tpu.memory_space<smem>>
    %364 = tpu.iota {dimensions = array<i32: 1>} : vector<1x8xi32>
    %365 = vector.broadcast %363 : i32 to vector<1x8xi32>
    %366 = arith.cmpi eq, %364, %365 : vector<1x8xi32>
    %367 = arith.extui %366 : vector<1x8xi1> to vector<1x8xi32>
    %368 = arith.sitofp %367 : vector<1x8xi32> to vector<1x8xf32>
    %369 = tpu.iota {dimensions = array<i32: 0>} : vector<8x1xi32>
    %370 = vector.broadcast %363 : i32 to vector<8x1xi32>
    %371 = arith.cmpi eq, %369, %370 : vector<8x1xi32>
    %372 = arith.extui %371 : vector<8x1xi1> to vector<8x1xi32>
    %373 = arith.sitofp %372 : vector<8x1xi32> to vector<8x1xf32>
    %374 = arith.index_cast %347 : i32 to index
    %c1_134 = arith.constant 1 : index
    %375 = memref.load %arg1[%374, %c1_134] : memref<2x3xi32, #tpu.memory_space<smem>>
    %376 = tpu.iota {dimensions = array<i32: 1>} : vector<1x8xi32>
    %377 = vector.broadcast %375 : i32 to vector<1x8xi32>
    %378 = arith.cmpi eq, %376, %377 : vector<1x8xi32>
    %379 = arith.extui %378 : vector<1x8xi1> to vector<1x8xi32>
    %380 = arith.sitofp %379 : vector<1x8xi32> to vector<1x8xf32>
    %381 = tpu.iota {dimensions = array<i32: 0>} : vector<8x1xi32>
    %382 = vector.broadcast %375 : i32 to vector<8x1xi32>
    %383 = arith.cmpi eq, %381, %382 : vector<8x1xi32>
    %384 = arith.extui %383 : vector<8x1xi1> to vector<8x1xi32>
    %385 = arith.sitofp %384 : vector<8x1xi32> to vector<8x1xf32>
    %386 = arith.index_cast %347 : i32 to index
    %c2_135 = arith.constant 2 : index
    %387 = memref.load %arg1[%386, %c2_135] : memref<2x3xi32, #tpu.memory_space<smem>>
    %388 = tpu.iota {dimensions = array<i32: 1>} : vector<1x8xi32>
    %389 = vector.broadcast %387 : i32 to vector<1x8xi32>
    %390 = arith.cmpi eq, %388, %389 : vector<1x8xi32>
    %391 = arith.extui %390 : vector<1x8xi1> to vector<1x8xi32>
    %392 = arith.sitofp %391 : vector<1x8xi32> to vector<1x8xf32>
    %393 = tpu.iota {dimensions = array<i32: 0>} : vector<8x1xi32>
    %394 = vector.broadcast %387 : i32 to vector<8x1xi32>
    %395 = arith.cmpi eq, %393, %394 : vector<8x1xi32>
    %396 = arith.extui %395 : vector<8x1xi1> to vector<8x1xi32>
    %397 = arith.sitofp %396 : vector<8x1xi32> to vector<8x1xf32>
    %398 = tpu.concatenate %368, %380, %392 in 0 : vector<1x8xf32>, vector<1x8xf32>, vector<1x8xf32> -> vector<3x8xf32>
    %399 = tpu.concatenate %373, %385, %397 in 1 : vector<8x1xf32>, vector<8x1xf32>, vector<8x1xf32> -> vector<8x3xf32>
    %cst_136 = arith.constant dense<0.000000e+00> : vector<3x8xf32>
    %400 = tpu.matmul %398, %361, %cst_136 {dimension_numbers = #tpu.dot_dimension_numbers<[1], [0], [0], [1], [0, 0, 1, 1], [], []>} : vector<3x8xf32>, vector<8x8xf32>, vector<3x8xf32> -> vector<3x8xf32>
    %401 = tpu.concatenate %353, %355 in 0 : vector<8x8xf32>, vector<8x8xf32> -> vector<16x8xf32>
    %cst_137 = arith.constant dense<0.000000e+00> : vector<16x3xf32>
    %402 = tpu.matmul %401, %399, %cst_137 {dimension_numbers = #tpu.dot_dimension_numbers<[1], [0], [0], [1], [0, 0, 1, 1], [], []>} : vector<16x8xf32>, vector<8x3xf32>, vector<16x3xf32> -> vector<16x3xf32>
    %403 = vector.extract_strided_slice %402 {offsets = [0, 0], sizes = [8, 3], strides = [1, 1]} : vector<16x3xf32> to vector<8x3xf32>
    %404 = vector.extract_strided_slice %402 {offsets = [8, 0], sizes = [8, 3], strides = [1, 1]} : vector<16x3xf32> to vector<8x3xf32>
    %405 = vector.extract_strided_slice %400 {offsets = [0, 0], sizes = [3, 3], strides = [1, 1]} : vector<3x8xf32> to vector<3x3xf32>
    %406 = vector.extract_strided_slice %400 {offsets = [0, 4], sizes = [3, 1], strides = [1, 1]} : vector<3x8xf32> to vector<3x1xf32>
    %407 = vector.extract_strided_slice %400 {offsets = [0, 5], sizes = [3, 1], strides = [1, 1]} : vector<3x8xf32> to vector<3x1xf32>
    %408 = tpu.concatenate %405, %406, %407 in 1 : vector<3x3xf32>, vector<3x1xf32>, vector<3x1xf32> -> vector<3x5xf32>
    %cst_138 = arith.constant dense<0.000000e+00> : vector<3x42xf32>
    %409 = tpu.matmul %408, %7, %cst_138 {dimension_numbers = #tpu.dot_dimension_numbers<[1], [0], [0], [1], [0, 0, 1, 1], [], []>} : vector<3x5xf32>, vector<5x42xf32>, vector<3x42xf32> -> vector<3x42xf32>
    %410 = vector.broadcast %8 : vector<1x42xf32> to vector<3x42xf32>
    %411 = arith.addf %409, %410 : vector<3x42xf32>
    %c1_139 = arith.constant 1 : index
    %c6_140 = arith.constant 6 : index
    %c0_141 = arith.constant 0 : index
    %c0_142 = arith.constant 0 : index
    %412 = vector.load %arg2[%c1_139, %c6_140, %c0_141, %c0_142] : memref<2x12x8x8xf32, #tpu.memory_space<vmem>>, vector<1x1x8x8xf32>
    %413 = vector.shape_cast %412 : vector<1x1x8x8xf32> to vector<8x8xf32>
    %c1_143 = arith.constant 1 : index
    %c9_144 = arith.constant 9 : index
    %c0_145 = arith.constant 0 : index
    %c0_146 = arith.constant 0 : index
    %414 = vector.load %arg2[%c1_143, %c9_144, %c0_145, %c0_146] : memref<2x12x8x8xf32, #tpu.memory_space<vmem>>, vector<1x1x8x8xf32>
    %415 = vector.shape_cast %414 : vector<1x1x8x8xf32> to vector<8x8xf32>
    %c1_147 = arith.constant 1 : index
    %c1_148 = arith.constant 1 : index
    %c0_149 = arith.constant 0 : index
    %c0_150 = arith.constant 0 : index
    %416 = vector.load %arg3[%c1_147, %c1_148, %c0_149, %c0_150] : memref<2x4x8x8xf32, #tpu.memory_space<vmem>>, vector<1x1x8x8xf32>
    %417 = vector.shape_cast %416 : vector<1x1x8x8xf32> to vector<8x8xf32>
    %418 = vector.extract_strided_slice %417 {offsets = [0, 0], sizes = [8, 1], strides = [1, 1]} : vector<8x8xf32> to vector<8x1xf32>
    %419 = vector.extract_strided_slice %417 {offsets = [0, 1], sizes = [8, 1], strides = [1, 1]} : vector<8x8xf32> to vector<8x1xf32>
    %420 = vector.extract_strided_slice %400 {offsets = [0, 4], sizes = [1, 1], strides = [1, 1]} : vector<3x8xf32> to vector<1x1xf32>
    %421 = vector.extract_strided_slice %403 {offsets = [0, 0], sizes = [8, 1], strides = [1, 1]} : vector<8x3xf32> to vector<8x1xf32>
    %422 = arith.mulf %421, %419 : vector<8x1xf32>
    %423 = vector.extract_strided_slice %404 {offsets = [0, 0], sizes = [8, 1], strides = [1, 1]} : vector<8x3xf32> to vector<8x1xf32>
    %424 = arith.mulf %423, %419 : vector<8x1xf32>
    %425 = vector.extract_strided_slice %361 {offsets = [0, 0], sizes = [8, 3], strides = [1, 1]} : vector<8x8xf32> to vector<8x3xf32>
    %426 = vector.extract_strided_slice %361 {offsets = [0, 3], sizes = [8, 1], strides = [1, 1]} : vector<8x8xf32> to vector<8x1xf32>
    %427 = vector.broadcast %420 : vector<1x1xf32> to vector<8x1xf32>
    %428 = arith.subf %426, %427 : vector<8x1xf32>
    %429 = vector.extract_strided_slice %361 {offsets = [0, 5], sizes = [8, 1], strides = [1, 1]} : vector<8x8xf32> to vector<8x1xf32>
    %430 = vector.broadcast %420 : vector<1x1xf32> to vector<8x1xf32>
    %431 = arith.subf %430, %429 : vector<8x1xf32>
    %432 = tpu.concatenate %425, %428, %431, %422, %424, %418 in 1 : vector<8x3xf32>, vector<8x1xf32>, vector<8x1xf32>, vector<8x1xf32>, vector<8x1xf32>, vector<8x1xf32> -> vector<8x8xf32>
    %433 = vector.broadcast %419 : vector<8x1xf32> to vector<8x8xf32>
    %434 = arith.mulf %432, %433 : vector<8x8xf32>
    %435 = tpu.concatenate %422, %424 in 1 : vector<8x1xf32>, vector<8x1xf32> -> vector<8x2xf32>
    %436 = arith.mulf %349, %413 : vector<8x8xf32>
    %437 = arith.mulf %351, %413 : vector<8x8xf32>
    %438 = vector.extract_strided_slice %411 {offsets = [0, 0], sizes = [1, 42], strides = [1, 1]} : vector<3x42xf32> to vector<1x42xf32>
    %439 = vector.shape_cast %438 : vector<1x42xf32> to vector<1x42xf32>
    %440 = vector.broadcast %439 : vector<1x42xf32> to vector<8x42xf32>
    %441 = tpu.concatenate %434, %435, %53, %436, %437, %440, %54 in 1 : vector<8x8xf32>, vector<8x2xf32>, vector<8x6xf32>, vector<8x8xf32>, vector<8x8xf32>, vector<8x42xf32>, vector<8x54xf32> -> vector<8x128xf32>
    %442 = arith.mulf %357, %413 : vector<8x8xf32>
    %443 = arith.mulf %359, %413 : vector<8x8xf32>
    %444 = tpu.concatenate %437, %436, %442, %443, %415 in 1 : vector<8x8xf32>, vector<8x8xf32>, vector<8x8xf32>, vector<8x8xf32>, vector<8x8xf32> -> vector<8x40xf32>
    %c1_151 = arith.constant 1 : index
    %c7_152 = arith.constant 7 : index
    %c0_153 = arith.constant 0 : index
    %c0_154 = arith.constant 0 : index
    %445 = vector.load %arg2[%c1_151, %c7_152, %c0_153, %c0_154] : memref<2x12x8x8xf32, #tpu.memory_space<vmem>>, vector<1x1x8x8xf32>
    %446 = vector.shape_cast %445 : vector<1x1x8x8xf32> to vector<8x8xf32>
    %c1_155 = arith.constant 1 : index
    %c10_156 = arith.constant 10 : index
    %c0_157 = arith.constant 0 : index
    %c0_158 = arith.constant 0 : index
    %447 = vector.load %arg2[%c1_155, %c10_156, %c0_157, %c0_158] : memref<2x12x8x8xf32, #tpu.memory_space<vmem>>, vector<1x1x8x8xf32>
    %448 = vector.shape_cast %447 : vector<1x1x8x8xf32> to vector<8x8xf32>
    %c1_159 = arith.constant 1 : index
    %c2_160 = arith.constant 2 : index
    %c0_161 = arith.constant 0 : index
    %c0_162 = arith.constant 0 : index
    %449 = vector.load %arg3[%c1_159, %c2_160, %c0_161, %c0_162] : memref<2x4x8x8xf32, #tpu.memory_space<vmem>>, vector<1x1x8x8xf32>
    %450 = vector.shape_cast %449 : vector<1x1x8x8xf32> to vector<8x8xf32>
    %451 = vector.extract_strided_slice %450 {offsets = [0, 0], sizes = [8, 1], strides = [1, 1]} : vector<8x8xf32> to vector<8x1xf32>
    %452 = vector.extract_strided_slice %450 {offsets = [0, 1], sizes = [8, 1], strides = [1, 1]} : vector<8x8xf32> to vector<8x1xf32>
    %453 = vector.extract_strided_slice %400 {offsets = [1, 4], sizes = [1, 1], strides = [1, 1]} : vector<3x8xf32> to vector<1x1xf32>
    %454 = vector.extract_strided_slice %403 {offsets = [0, 1], sizes = [8, 1], strides = [1, 1]} : vector<8x3xf32> to vector<8x1xf32>
    %455 = arith.mulf %454, %452 : vector<8x1xf32>
    %456 = vector.extract_strided_slice %404 {offsets = [0, 1], sizes = [8, 1], strides = [1, 1]} : vector<8x3xf32> to vector<8x1xf32>
    %457 = arith.mulf %456, %452 : vector<8x1xf32>
    %458 = vector.extract_strided_slice %361 {offsets = [0, 0], sizes = [8, 3], strides = [1, 1]} : vector<8x8xf32> to vector<8x3xf32>
    %459 = vector.extract_strided_slice %361 {offsets = [0, 3], sizes = [8, 1], strides = [1, 1]} : vector<8x8xf32> to vector<8x1xf32>
    %460 = vector.broadcast %453 : vector<1x1xf32> to vector<8x1xf32>
    %461 = arith.subf %459, %460 : vector<8x1xf32>
    %462 = vector.extract_strided_slice %361 {offsets = [0, 5], sizes = [8, 1], strides = [1, 1]} : vector<8x8xf32> to vector<8x1xf32>
    %463 = vector.broadcast %453 : vector<1x1xf32> to vector<8x1xf32>
    %464 = arith.subf %463, %462 : vector<8x1xf32>
    %465 = tpu.concatenate %458, %461, %464, %455, %457, %451 in 1 : vector<8x3xf32>, vector<8x1xf32>, vector<8x1xf32>, vector<8x1xf32>, vector<8x1xf32>, vector<8x1xf32> -> vector<8x8xf32>
    %466 = vector.broadcast %452 : vector<8x1xf32> to vector<8x8xf32>
    %467 = arith.mulf %465, %466 : vector<8x8xf32>
    %468 = tpu.concatenate %455, %457 in 1 : vector<8x1xf32>, vector<8x1xf32> -> vector<8x2xf32>
    %469 = arith.mulf %349, %446 : vector<8x8xf32>
    %470 = arith.mulf %351, %446 : vector<8x8xf32>
    %471 = vector.extract_strided_slice %411 {offsets = [1, 0], sizes = [1, 42], strides = [1, 1]} : vector<3x42xf32> to vector<1x42xf32>
    %472 = vector.shape_cast %471 : vector<1x42xf32> to vector<1x42xf32>
    %473 = vector.broadcast %472 : vector<1x42xf32> to vector<8x42xf32>
    %474 = tpu.concatenate %467, %468, %53, %469, %470, %473, %54 in 1 : vector<8x8xf32>, vector<8x2xf32>, vector<8x6xf32>, vector<8x8xf32>, vector<8x8xf32>, vector<8x42xf32>, vector<8x54xf32> -> vector<8x128xf32>
    %475 = arith.mulf %357, %446 : vector<8x8xf32>
    %476 = arith.mulf %359, %446 : vector<8x8xf32>
    %477 = tpu.concatenate %470, %469, %475, %476, %448 in 1 : vector<8x8xf32>, vector<8x8xf32>, vector<8x8xf32>, vector<8x8xf32>, vector<8x8xf32> -> vector<8x40xf32>
    %c1_163 = arith.constant 1 : index
    %c8_164 = arith.constant 8 : index
    %c0_165 = arith.constant 0 : index
    %c0_166 = arith.constant 0 : index
    %478 = vector.load %arg2[%c1_163, %c8_164, %c0_165, %c0_166] : memref<2x12x8x8xf32, #tpu.memory_space<vmem>>, vector<1x1x8x8xf32>
    %479 = vector.shape_cast %478 : vector<1x1x8x8xf32> to vector<8x8xf32>
    %c1_167 = arith.constant 1 : index
    %c11_168 = arith.constant 11 : index
    %c0_169 = arith.constant 0 : index
    %c0_170 = arith.constant 0 : index
    %480 = vector.load %arg2[%c1_167, %c11_168, %c0_169, %c0_170] : memref<2x12x8x8xf32, #tpu.memory_space<vmem>>, vector<1x1x8x8xf32>
    %481 = vector.shape_cast %480 : vector<1x1x8x8xf32> to vector<8x8xf32>
    %c1_171 = arith.constant 1 : index
    %c3_172 = arith.constant 3 : index
    %c0_173 = arith.constant 0 : index
    %c0_174 = arith.constant 0 : index
    %482 = vector.load %arg3[%c1_171, %c3_172, %c0_173, %c0_174] : memref<2x4x8x8xf32, #tpu.memory_space<vmem>>, vector<1x1x8x8xf32>
    %483 = vector.shape_cast %482 : vector<1x1x8x8xf32> to vector<8x8xf32>
    %484 = vector.extract_strided_slice %483 {offsets = [0, 0], sizes = [8, 1], strides = [1, 1]} : vector<8x8xf32> to vector<8x1xf32>
    %485 = vector.extract_strided_slice %483 {offsets = [0, 1], sizes = [8, 1], strides = [1, 1]} : vector<8x8xf32> to vector<8x1xf32>
    %486 = vector.extract_strided_slice %400 {offsets = [2, 4], sizes = [1, 1], strides = [1, 1]} : vector<3x8xf32> to vector<1x1xf32>
    %487 = vector.extract_strided_slice %403 {offsets = [0, 2], sizes = [8, 1], strides = [1, 1]} : vector<8x3xf32> to vector<8x1xf32>
    %488 = arith.mulf %487, %485 : vector<8x1xf32>
    %489 = vector.extract_strided_slice %404 {offsets = [0, 2], sizes = [8, 1], strides = [1, 1]} : vector<8x3xf32> to vector<8x1xf32>
    %490 = arith.mulf %489, %485 : vector<8x1xf32>
    %491 = vector.extract_strided_slice %361 {offsets = [0, 0], sizes = [8, 3], strides = [1, 1]} : vector<8x8xf32> to vector<8x3xf32>
    %492 = vector.extract_strided_slice %361 {offsets = [0, 3], sizes = [8, 1], strides = [1, 1]} : vector<8x8xf32> to vector<8x1xf32>
    %493 = vector.broadcast %486 : vector<1x1xf32> to vector<8x1xf32>
    %494 = arith.subf %492, %493 : vector<8x1xf32>
    %495 = vector.extract_strided_slice %361 {offsets = [0, 5], sizes = [8, 1], strides = [1, 1]} : vector<8x8xf32> to vector<8x1xf32>
    %496 = vector.broadcast %486 : vector<1x1xf32> to vector<8x1xf32>
    %497 = arith.subf %496, %495 : vector<8x1xf32>
    %498 = tpu.concatenate %491, %494, %497, %488, %490, %484 in 1 : vector<8x3xf32>, vector<8x1xf32>, vector<8x1xf32>, vector<8x1xf32>, vector<8x1xf32>, vector<8x1xf32> -> vector<8x8xf32>
    %499 = vector.broadcast %485 : vector<8x1xf32> to vector<8x8xf32>
    %500 = arith.mulf %498, %499 : vector<8x8xf32>
    %501 = tpu.concatenate %488, %490 in 1 : vector<8x1xf32>, vector<8x1xf32> -> vector<8x2xf32>
    %502 = arith.mulf %349, %479 : vector<8x8xf32>
    %503 = arith.mulf %351, %479 : vector<8x8xf32>
    %504 = vector.extract_strided_slice %411 {offsets = [2, 0], sizes = [1, 42], strides = [1, 1]} : vector<3x42xf32> to vector<1x42xf32>
    %505 = vector.shape_cast %504 : vector<1x42xf32> to vector<1x42xf32>
    %506 = vector.broadcast %505 : vector<1x42xf32> to vector<8x42xf32>
    %507 = tpu.concatenate %500, %501, %53, %502, %503, %506, %54 in 1 : vector<8x8xf32>, vector<8x2xf32>, vector<8x6xf32>, vector<8x8xf32>, vector<8x8xf32>, vector<8x42xf32>, vector<8x54xf32> -> vector<8x128xf32>
    %508 = arith.mulf %357, %479 : vector<8x8xf32>
    %509 = arith.mulf %359, %479 : vector<8x8xf32>
    %510 = tpu.concatenate %503, %502, %508, %509, %481 in 1 : vector<8x8xf32>, vector<8x8xf32>, vector<8x8xf32>, vector<8x8xf32>, vector<8x8xf32> -> vector<8x40xf32>
    %511 = tpu.concatenate %441, %474, %507 in 0 : vector<8x128xf32>, vector<8x128xf32>, vector<8x128xf32> -> vector<24x128xf32>
    %c1_175 = arith.constant 1 : index
    %c0_176 = arith.constant 0 : index
    %c0_177 = arith.constant 0 : index
    %512 = vector.load %arg8[%c1_175, %c0_176, %c0_177] : memref<2x24x128xf32, #tpu.memory_space<vmem>>, vector<1x24x128xf32>
    %513 = vector.shape_cast %512 : vector<1x24x128xf32> to vector<24x128xf32>
    %514 = vector.shape_cast %511 : vector<24x128xf32> to vector<1x24x128xf32>
    tpu.vector_store %arg8[%c1_175, %c0_176, %c0_177], %514 {strides = array<i32>} : memref<2x24x128xf32, #tpu.memory_space<vmem>>, vector<1x24x128xf32>,
    %515 = tpu.concatenate %444, %477, %510 in 0 : vector<8x40xf32>, vector<8x40xf32>, vector<8x40xf32> -> vector<24x40xf32>
    %cst_178 = arith.constant dense<0.000000e+00> : vector<24x256xf32>
    %516 = tpu.matmul %515, %4, %cst_178 {dimension_numbers = #tpu.dot_dimension_numbers<[1], [0], [0], [1], [0, 0, 1, 1], [], []>} : vector<24x40xf32>, vector<40x256xf32>, vector<24x256xf32> -> vector<24x256xf32>
    %c1_179 = arith.constant 1 : index
    %c0_180 = arith.constant 0 : index
    %c0_181 = arith.constant 0 : index
    %517 = vector.load %arg9[%c1_179, %c0_180, %c0_181] : memref<2x24x256xf32, #tpu.memory_space<vmem>>, vector<1x24x256xf32>
    %518 = vector.shape_cast %517 : vector<1x24x256xf32> to vector<24x256xf32>
    %519 = vector.shape_cast %516 : vector<24x256xf32> to vector<1x24x256xf32>
    tpu.vector_store %arg9[%c1_179, %c0_180, %c0_181], %519 {strides = array<i32>} : memref<2x24x256xf32, #tpu.memory_space<vmem>>, vector<1x24x256xf32>,
    %520 = tpu.concatenate %434, %467, %500 in 0 : vector<8x8xf32>, vector<8x8xf32>, vector<8x8xf32> -> vector<24x8xf32>
    %521 = vector.broadcast %14 : vector<24x1xf32> to vector<24x8xf32>
    %522 = arith.mulf %520, %521 : vector<24x8xf32>
    %523 = vector.broadcast %18 : vector<24x1xf32> to vector<24x8xf32>
    %524 = arith.mulf %520, %523 : vector<24x8xf32>
    %525 = vector.broadcast %22 : vector<24x1xf32> to vector<24x8xf32>
    %526 = arith.mulf %520, %525 : vector<24x8xf32>
    %527 = vector.broadcast %26 : vector<24x1xf32> to vector<24x8xf32>
    %528 = arith.mulf %520, %527 : vector<24x8xf32>
    %529 = vector.broadcast %30 : vector<24x1xf32> to vector<24x8xf32>
    %530 = arith.mulf %520, %529 : vector<24x8xf32>
    %531 = vector.broadcast %34 : vector<24x1xf32> to vector<24x8xf32>
    %532 = arith.mulf %520, %531 : vector<24x8xf32>
    %533 = vector.broadcast %38 : vector<24x1xf32> to vector<24x8xf32>
    %534 = arith.mulf %520, %533 : vector<24x8xf32>
    %535 = vector.broadcast %42 : vector<24x1xf32> to vector<24x8xf32>
    %536 = arith.mulf %520, %535 : vector<24x8xf32>
    %537 = tpu.concatenate %522, %524, %526, %528, %530, %532, %534, %536 in 1 : vector<24x8xf32>, vector<24x8xf32>, vector<24x8xf32>, vector<24x8xf32>, vector<24x8xf32>, vector<24x8xf32>, vector<24x8xf32>, vector<24x8xf32> -> vector<24x64xf32>
    %cst_182 = arith.constant dense<0.000000e+00> : vector<24x96xf32>
    %538 = tpu.matmul %537, %0, %cst_182 {dimension_numbers = #tpu.dot_dimension_numbers<[1], [0], [0], [1], [0, 0, 1, 1], [], []>} : vector<24x64xf32>, vector<64x96xf32>, vector<24x96xf32> -> vector<24x96xf32>
    %cst_183 = arith.constant dense<0.000000e+00> : vector<3x96xf32>
    %539 = tpu.matmul %52, %538, %cst_183 {dimension_numbers = #tpu.dot_dimension_numbers<[1], [0], [0], [1], [0, 0, 1, 1], [], []>} : vector<3x24xf32>, vector<24x96xf32>, vector<3x96xf32> -> vector<3x96xf32>
    %540 = vector.broadcast %2 : vector<1x96xf32> to vector<3x96xf32>
    %541 = arith.addf %539, %540 : vector<3x96xf32>
    %cst_184 = arith.constant 0.000000e+00 : f32
    %542 = vector.broadcast %cst_184 : f32 to vector<1x32xf32>
    %543 = vector.extract_strided_slice %541 {offsets = [0, 0], sizes = [1, 96], strides = [1, 1]} : vector<3x96xf32> to vector<1x96xf32>
    %cst_185 = arith.constant dense<0.000000e+00> : vector<1x96xf32>
    %544 = tpu.matmul %542, %1, %cst_185 {dimension_numbers = #tpu.dot_dimension_numbers<[1], [0], [0], [1], [0, 0, 1, 1], [], []>} : vector<1x32xf32>, vector<32x96xf32>, vector<1x96xf32> -> vector<1x96xf32>
    %545 = arith.addf %544, %3 : vector<1x96xf32>
    %546 = vector.extract_strided_slice %543 {offsets = [0, 0], sizes = [1, 32], strides = [1, 1]} : vector<1x96xf32> to vector<1x32xf32>
    %547 = vector.extract_strided_slice %545 {offsets = [0, 0], sizes = [1, 32], strides = [1, 1]} : vector<1x96xf32> to vector<1x32xf32>
    %548 = arith.addf %546, %547 : vector<1x32xf32>
    %549 = arith.negf %548 : vector<1x32xf32>
    %550 = math.exp %549 : vector<1x32xf32>
    %cst_186 = arith.constant 1.000000e+00 : f32
    %551 = vector.broadcast %cst_186 : f32 to vector<1x32xf32>
    %552 = arith.addf %551, %550 : vector<1x32xf32>
    %553 = arith.divf %551, %552 : vector<1x32xf32>
    %554 = vector.extract_strided_slice %543 {offsets = [0, 32], sizes = [1, 32], strides = [1, 1]} : vector<1x96xf32> to vector<1x32xf32>
    %555 = vector.extract_strided_slice %545 {offsets = [0, 32], sizes = [1, 32], strides = [1, 1]} : vector<1x96xf32> to vector<1x32xf32>
    %556 = arith.addf %554, %555 : vector<1x32xf32>
    %557 = arith.negf %556 : vector<1x32xf32>
    %558 = math.exp %557 : vector<1x32xf32>
    %cst_187 = arith.constant 1.000000e+00 : f32
    %559 = vector.broadcast %cst_187 : f32 to vector<1x32xf32>
    %560 = arith.addf %559, %558 : vector<1x32xf32>
    %561 = arith.divf %559, %560 : vector<1x32xf32>
    %562 = vector.extract_strided_slice %543 {offsets = [0, 64], sizes = [1, 32], strides = [1, 1]} : vector<1x96xf32> to vector<1x32xf32>
    %563 = vector.extract_strided_slice %545 {offsets = [0, 64], sizes = [1, 32], strides = [1, 1]} : vector<1x96xf32> to vector<1x32xf32>
    %564 = arith.mulf %553, %563 : vector<1x32xf32>
    %565 = arith.addf %562, %564 : vector<1x32xf32>
    %566 = math.tanh %565 : vector<1x32xf32>
    %cst_188 = arith.constant 1.000000e+00 : f32
    %567 = vector.broadcast %cst_188 : f32 to vector<1x32xf32>
    %568 = arith.subf %567, %561 : vector<1x32xf32>
    %569 = arith.mulf %568, %566 : vector<1x32xf32>
    %570 = arith.mulf %561, %542 : vector<1x32xf32>
    %571 = arith.addf %569, %570 : vector<1x32xf32>
    %572 = vector.extract_strided_slice %541 {offsets = [1, 0], sizes = [1, 96], strides = [1, 1]} : vector<3x96xf32> to vector<1x96xf32>
    %cst_189 = arith.constant dense<0.000000e+00> : vector<1x96xf32>
    %573 = tpu.matmul %571, %1, %cst_189 {dimension_numbers = #tpu.dot_dimension_numbers<[1], [0], [0], [1], [0, 0, 1, 1], [], []>} : vector<1x32xf32>, vector<32x96xf32>, vector<1x96xf32> -> vector<1x96xf32>
    %574 = arith.addf %573, %3 : vector<1x96xf32>
    %575 = vector.extract_strided_slice %572 {offsets = [0, 0], sizes = [1, 32], strides = [1, 1]} : vector<1x96xf32> to vector<1x32xf32>
    %576 = vector.extract_strided_slice %574 {offsets = [0, 0], sizes = [1, 32], strides = [1, 1]} : vector<1x96xf32> to vector<1x32xf32>
    %577 = arith.addf %575, %576 : vector<1x32xf32>
    %578 = arith.negf %577 : vector<1x32xf32>
    %579 = math.exp %578 : vector<1x32xf32>
    %cst_190 = arith.constant 1.000000e+00 : f32
    %580 = vector.broadcast %cst_190 : f32 to vector<1x32xf32>
    %581 = arith.addf %580, %579 : vector<1x32xf32>
    %582 = arith.divf %580, %581 : vector<1x32xf32>
    %583 = vector.extract_strided_slice %572 {offsets = [0, 32], sizes = [1, 32], strides = [1, 1]} : vector<1x96xf32> to vector<1x32xf32>
    %584 = vector.extract_strided_slice %574 {offsets = [0, 32], sizes = [1, 32], strides = [1, 1]} : vector<1x96xf32> to vector<1x32xf32>
    %585 = arith.addf %583, %584 : vector<1x32xf32>
    %586 = arith.negf %585 : vector<1x32xf32>
    %587 = math.exp %586 : vector<1x32xf32>
    %cst_191 = arith.constant 1.000000e+00 : f32
    %588 = vector.broadcast %cst_191 : f32 to vector<1x32xf32>
    %589 = arith.addf %588, %587 : vector<1x32xf32>
    %590 = arith.divf %588, %589 : vector<1x32xf32>
    %591 = vector.extract_strided_slice %572 {offsets = [0, 64], sizes = [1, 32], strides = [1, 1]} : vector<1x96xf32> to vector<1x32xf32>
    %592 = vector.extract_strided_slice %574 {offsets = [0, 64], sizes = [1, 32], strides = [1, 1]} : vector<1x96xf32> to vector<1x32xf32>
    %593 = arith.mulf %582, %592 : vector<1x32xf32>
    %594 = arith.addf %591, %593 : vector<1x32xf32>
    %595 = math.tanh %594 : vector<1x32xf32>
    %cst_192 = arith.constant 1.000000e+00 : f32
    %596 = vector.broadcast %cst_192 : f32 to vector<1x32xf32>
    %597 = arith.subf %596, %590 : vector<1x32xf32>
    %598 = arith.mulf %597, %595 : vector<1x32xf32>
    %599 = arith.mulf %590, %571 : vector<1x32xf32>
    %600 = arith.addf %598, %599 : vector<1x32xf32>
    %601 = vector.extract_strided_slice %541 {offsets = [2, 0], sizes = [1, 96], strides = [1, 1]} : vector<3x96xf32> to vector<1x96xf32>
    %cst_193 = arith.constant dense<0.000000e+00> : vector<1x96xf32>
    %602 = tpu.matmul %600, %1, %cst_193 {dimension_numbers = #tpu.dot_dimension_numbers<[1], [0], [0], [1], [0, 0, 1, 1], [], []>} : vector<1x32xf32>, vector<32x96xf32>, vector<1x96xf32> -> vector<1x96xf32>
    %603 = arith.addf %602, %3 : vector<1x96xf32>
    %604 = vector.extract_strided_slice %601 {offsets = [0, 0], sizes = [1, 32], strides = [1, 1]} : vector<1x96xf32> to vector<1x32xf32>
    %605 = vector.extract_strided_slice %603 {offsets = [0, 0], sizes = [1, 32], strides = [1, 1]} : vector<1x96xf32> to vector<1x32xf32>
    %606 = arith.addf %604, %605 : vector<1x32xf32>
    %607 = arith.negf %606 : vector<1x32xf32>
    %608 = math.exp %607 : vector<1x32xf32>
    %cst_194 = arith.constant 1.000000e+00 : f32
    %609 = vector.broadcast %cst_194 : f32 to vector<1x32xf32>
    %610 = arith.addf %609, %608 : vector<1x32xf32>
    %611 = arith.divf %609, %610 : vector<1x32xf32>
    %612 = vector.extract_strided_slice %601 {offsets = [0, 32], sizes = [1, 32], strides = [1, 1]} : vector<1x96xf32> to vector<1x32xf32>
    %613 = vector.extract_strided_slice %603 {offsets = [0, 32], sizes = [1, 32], strides = [1, 1]} : vector<1x96xf32> to vector<1x32xf32>
    %614 = arith.addf %612, %613 : vector<1x32xf32>
    %615 = arith.negf %614 : vector<1x32xf32>
    %616 = math.exp %615 : vector<1x32xf32>
    %cst_195 = arith.constant 1.000000e+00 : f32
    %617 = vector.broadcast %cst_195 : f32 to vector<1x32xf32>
    %618 = arith.addf %617, %616 : vector<1x32xf32>
    %619 = arith.divf %617, %618 : vector<1x32xf32>
    %620 = vector.extract_strided_slice %601 {offsets = [0, 64], sizes = [1, 32], strides = [1, 1]} : vector<1x96xf32> to vector<1x32xf32>
    %621 = vector.extract_strided_slice %603 {offsets = [0, 64], sizes = [1, 32], strides = [1, 1]} : vector<1x96xf32> to vector<1x32xf32>
    %622 = arith.mulf %611, %621 : vector<1x32xf32>
    %623 = arith.addf %620, %622 : vector<1x32xf32>
    %624 = math.tanh %623 : vector<1x32xf32>
    %cst_196 = arith.constant 1.000000e+00 : f32
    %625 = vector.broadcast %cst_196 : f32 to vector<1x32xf32>
    %626 = arith.subf %625, %619 : vector<1x32xf32>
    %627 = arith.mulf %626, %624 : vector<1x32xf32>
    %628 = arith.mulf %619, %600 : vector<1x32xf32>
    %629 = arith.addf %627, %628 : vector<1x32xf32>
    %630 = tpu.concatenate %571, %600, %629 in 0 : vector<1x32xf32>, vector<1x32xf32>, vector<1x32xf32> -> vector<3x32xf32>
    %cst_197 = arith.constant dense<0.000000e+00> : vector<3x256xf32>
    %631 = tpu.matmul %630, %5, %cst_197 {dimension_numbers = #tpu.dot_dimension_numbers<[1], [0], [0], [1], [0, 0, 1, 1], [], []>} : vector<3x32xf32>, vector<32x256xf32>, vector<3x256xf32> -> vector<3x256xf32>
    %632 = vector.broadcast %6 : vector<1x256xf32> to vector<3x256xf32>
    %633 = arith.addf %631, %632 : vector<3x256xf32>
    %c1_198 = arith.constant 1 : index
    %c0_199 = arith.constant 0 : index
    %c0_200 = arith.constant 0 : index
    %634 = vector.load %arg7[%c1_198, %c0_199, %c0_200] : memref<2x3x256xf32, #tpu.memory_space<vmem>>, vector<1x3x256xf32>
    %635 = vector.shape_cast %634 : vector<1x3x256xf32> to vector<3x256xf32>
    %636 = vector.shape_cast %633 : vector<3x256xf32> to vector<1x3x256xf32>
    tpu.vector_store %arg7[%c1_198, %c0_199, %c0_200], %636 {strides = array<i32>} : memref<2x3x256xf32, #tpu.memory_space<vmem>>, vector<1x3x256xf32>,
    return
  }
  func.func @transform_0(%arg0: i32, %arg1: memref<2x3xi32, #tpu.memory_space<smem>>) -> (i32, i32, i32, i32) {
    %c0_i32 = arith.constant 0 : i32
    %c0_i32_0 = arith.constant 0 : i32
    %c0_i32_1 = arith.constant 0 : i32
    %c0_i32_2 = arith.constant 0 : i32
    return %arg0, %c0_i32, %c0_i32_0, %c0_i32_1 : i32, i32, i32, i32
  }
  func.func @transform_1(%arg0: i32, %arg1: memref<2x3xi32, #tpu.memory_space<smem>>) -> (i32, i32, i32, i32) {
    %c0_i32 = arith.constant 0 : i32
    %c0_i32_0 = arith.constant 0 : i32
    %c0_i32_1 = arith.constant 0 : i32
    %c0_i32_2 = arith.constant 0 : i32
    return %arg0, %c0_i32, %c0_i32_0, %c0_i32_1 : i32, i32, i32, i32
  }
  func.func @transform_2(%arg0: i32, %arg1: memref<2x3xi32, #tpu.memory_space<smem>>) -> (i32, i32) {
    %c0_i32 = arith.constant 0 : i32
    %c0_i32_0 = arith.constant 0 : i32
    %c0_i32_1 = arith.constant 0 : i32
    return %c0_i32, %c0_i32_0 : i32, i32
  }
  func.func @transform_3(%arg0: i32, %arg1: memref<2x3xi32, #tpu.memory_space<smem>>) -> (i32, i32) {
    %c0_i32 = arith.constant 0 : i32
    %c0_i32_0 = arith.constant 0 : i32
    %c0_i32_1 = arith.constant 0 : i32
    return %c0_i32, %c0_i32_0 : i32, i32
  }
  func.func @transform_4(%arg0: i32, %arg1: memref<2x3xi32, #tpu.memory_space<smem>>) -> (i32, i32) {
    %c0_i32 = arith.constant 0 : i32
    %c0_i32_0 = arith.constant 0 : i32
    %c0_i32_1 = arith.constant 0 : i32
    return %c0_i32, %c0_i32_0 : i32, i32
  }
  func.func @transform_5(%arg0: i32, %arg1: memref<2x3xi32, #tpu.memory_space<smem>>) -> (i32, i32, i32) {
    %c0_i32 = arith.constant 0 : i32
    %c0_i32_0 = arith.constant 0 : i32
    %c0_i32_1 = arith.constant 0 : i32
    return %arg0, %c0_i32, %c0_i32_0 : i32, i32, i32
  }
  func.func @transform_6(%arg0: i32, %arg1: memref<2x3xi32, #tpu.memory_space<smem>>) -> (i32, i32, i32) {
    %c0_i32 = arith.constant 0 : i32
    %c0_i32_0 = arith.constant 0 : i32
    %c0_i32_1 = arith.constant 0 : i32
    return %arg0, %c0_i32, %c0_i32_0 : i32, i32, i32
  }
  func.func @transform_7(%arg0: i32, %arg1: memref<2x3xi32, #tpu.memory_space<smem>>) -> (i32, i32, i32) {
    %c0_i32 = arith.constant 0 : i32
    %c0_i32_0 = arith.constant 0 : i32
    %c0_i32_1 = arith.constant 0 : i32
    return %arg0, %c0_i32, %c0_i32_0 : i32, i32, i32
  }
}

</mosaic_0001>

<bundles_post_ra>
// kernel: squeeze.2
= control target key start
LH: loop header
LB: loop body
LE: loop exit
PB: predicated region body
PF: predicated region fallthrough
CT: control target
= control target key end

     0   :  { %2 = vsyncpa [#allocation1], 0  ;;  %vm13_vm0 = vcmask 343040   ;;  %s74_s0 = inlined_call_operand.vmem [shape: f32[2,3,42], index: 0, kind: input, shape index: {}]   ;;  %s75_s1 = inlined_call_operand.hbm [shape: f32[6,42], index: 1, kind: output, shape index: {}]  }
   0x1   :  { %v30_v0 = vld [vmem:[%s74_s0 + $0x4] sm:$0xf]  ;;  %v10_v1 = vld [vmem:[%s74_s0] sm:$0xf]  ;;  %s54_s0 = smov [#allocation0]  }
   0x2   :  { %9 = vst [vmem:[#allocation2 + $0x8] sm:$0xf] %v30_v0  ;;  %11 = vst [vmem:[#allocation2] sm:$0xf] %v10_v1  ;;  %s24_s10 = sshll.u32 %s54_s0, 4  ;;  %s25_s10 = int_to_ptr.vmem [resolvable:$true] %s24_s10 }
   0x3   :  { %s32_s11 = scalar_lea.vmem %s25_s10, 128  ;;  %p37_p1 = scmp.lt.s32.totalorder %s25_s10, %s25_s10 }
   0x4   :  { %p33_p0 = scmp.ne.s32.totalorder %s25_s10, %s32_s11  ;;  %p38_p2 = scmp.lt.s32.totalorder %s32_s11, %s32_s11 }
   0x6   :  { %p39_p3 = por %p38_p2, %p37_p1 }
   0x8   :  { %p40_p4 = pnand %p39_p3, %p33_p0 }
   0x9   :  { %v12_v2 = vld [vmem:[#allocation2] sm:$0x7]   ;;  %v16_v3 = vld [vmem:[#allocation2 + $0x8] sm:$0x7]  }
   0xa   :  { %14 = vst.msk [vmem:[#allocation0] sm:$0x7] %vm13_vm0, %v12_v2   ;;  %19 = vst.msk [vmem:[#allocation0 + $0x3] sm:$0x7] %vm13_vm0, %v16_v3  }
   0xb   :  { %43 = shalt.err (!%p40_p4)
}
   0xc   :  { %27 = dma.vmem_to_hbm [thread:$0]  %s25_s10, 128, %s75_s1, [#allocation1]  }
   0xd   :  { %52 = dma.done.wait [#allocation1], 128  }
   0xe   :  { %53 = vsyncadd [#allocation1], 4294967168 }
   0xf   :  { %29 = vsyncpa [#allocation1], 1 }

// kernel: gcnru_forward.1
= control target key start
LH: loop header
LB: loop body
LE: loop exit
PB: predicated region body
PF: predicated region fallthrough
CT: control target
= control target key end

     0   :  { %s4646_s0 = inlined_call_operand.vmem [shape: s32[2,3], index: 0, kind: input, shape index: {}]   ;;  %s4647_s1 = inlined_call_operand.vmem [shape: f32[2,12,8,8], index: 1, kind: input, shape index: {}]   ;;  %s4648_s2 = inlined_call_operand.vmem [shape: f32[2,4,8,8], index: 2, kind: input, shape index: {}]   ;;  %s4649_s3 = inlined_call_operand.vmem [shape: f32[98,96], index: 3, kind: input, shape index: {}]   ;;  %s4650_s4 = inlined_call_operand.vmem [shape: f32[73,256], index: 4, kind: input, shape index: {}]   ;;  %s4651_s5 = inlined_call_operand.vmem [shape: f32[6,42], index: 5, kind: input, shape index: {}]   ;;  %s4652_s6 = inlined_call_operand.vmem [shape: f32[2,3,256], index: 6, kind: output, shape index: {0}]   ;;  %s4653_s7 = inlined_call_operand.vmem [shape: f32[2,24,128], index: 7, kind: output, shape index: {1}]   ;;  %s4654_s8 = inlined_call_operand.vmem [shape: f32[2,24,256], index: 8, kind: output, shape index: {2}]  }
   0x1   :  { %s14_s29 = sshll.u32 %s4646_s0, 4  ;;  %s15_s29 = int_to_ptr.vmem [resolvable:$true] %s14_s29 }
   0x2   :  { %s3244_s30 = scalar_lea.vmem %s15_s29, 32  ;;  %p3249_p1 = scmp.lt.s32.totalorder %s15_s29, %s15_s29 }
   0x3   :  { %p3245_p0 = scmp.ne.s32.totalorder %s15_s29, %s3244_s30  ;;  %p3250_p2 = scmp.lt.s32.totalorder %s3244_s30, %s3244_s30 }
   0x5   :  { %p3251_p3 = por %p3250_p2, %p3249_p1 }
   0x7   :  { %p3252_p4 = pnand %p3251_p3, %p3245_p0 }
   0x9   :  { %3255 = shalt.err (!%p3252_p4)  }
   0xa   :  { %s3258_s9 = smov [#allocation3]  }
   0xb   :  { %17 = dma.vmem_to_smem %s15_s29, 32, %s3258_s9, [#allocation2] }
   0xc   :  { %3256 = dma.done.wait [#allocation2], 32 }
   0xd   :  { %3257 = vsyncadd [#allocation2], 4294967264 }
   0xe   :  { %19 = sfence }
   0xf   :  { %v3331_v0 = vld [vmem:[%s4648_s2] sm:$0xff]  ;;  %v66_v1 = vlaneseq  ;;  %s3333_s0 = sld [smem:[#allocation3]]  ;;  %v4661_v2 = vmov 0.0   ;;  %vm3260_vm0 = vmmov 0   ;;  %vm92_vm1 = vcmask 64512   ;;  %v2861_v5 = vld [vmem:[%s4648_s2 + $0x8] sm:$0xff] }
  0x10   :  { %3004 = vmatprep.subr.mxu1 %v4661_v2  ;;  %3006 = vmatprep.mubr.msk.f32.mxu1 %vm3260_vm0, %v4661_v2  ;;  %s3338_s12 = sld [smem:[#allocation3 + $0x1]]  ;;  %vm145_vm2 = vcmask 1040384   ;;  %vm4682_vm3 = vcmask 1041408   ;;  %s3261_s16 = smov 127   ;;  %vm149_vm5 = vcmask 7168   ;;  %v3360_v6 = vld [vmem:[%s4648_s2 + $0x18] sm:$0xff] }
  0x11   :  { %3005 = vmatpush3.msra.mxu1 %v3331_v0  ;;  %v3341_v3 = vshrl.u32 %v66_v1, 7  ;;  %s3343_s13 = sld [smem:[#allocation3 + $0x2]]  ;;  %3014 = vmatprep.subr.mxu0 %v4661_v2  ;;  %v3346_v4 = vand.u32 127, %v66_v1  ;;  %v3262_v7 = vmov 1   ;;  %v3263_v8 = vmov 0   ;;  %s3264_s19 = smov 1  }
  0x12   :  { %3016 = vmatprep.mubr.msk.f32.mxu0 %vm3260_vm0, %v4661_v2  ;;  %419 = vrot.lane.b32.xlu1 %v3331_v0, %s3261_s16  ;;  %vm151_vm7 = vcmask 15360   ;;  %s3265_s20 = smov 7   ;;  %v2841_v22 = vld [vmem:[%s4647_s1 + $0x10] sm:$0xff]  ;;  %v2842_v28 = vld [vmem:[%s4647_s1 + $0x18] sm:$0xff]  ;;  %s3266_s27 = smov 5  }
  0x13   :  { %404 = vrot.lane.b32.xlu0 %v2861_v5, %s3261_s16  ;;  %vm77_vm4 = vcmp.eq.s32.totalorder %v3341_v3, 3  ;;  %3180 = vset.pattern.permute.xlu1 %v3263_v8  ;;  %vm80_vm6 = vcmp.eq.s32.totalorder %v3341_v3, 4  ;;  %vm83_vm8 = vcmp.eq.s32.totalorder %v3341_v3, 5  ;;  %vm86_vm15 = vcmp.eq.s32.totalorder %v3341_v3, 6  ;;  %v2864_v29 = vld [vmem:[%s4648_s2 + $0x10] sm:$0xff]  ;;  %s3267_s28 = smov 6  }
  0x14   :  { %3179 = vset.pattern.permute.xlu0 %v3262_v7  ;;  %v2834_v9 = vsel %vm77_vm4, 1.0, %v4661_v2  ;;  %v2835_v11 = vsel %vm80_vm6, 1.0, %v4661_v2  ;;  %v2836_v25 = vsel %vm83_vm8, 1.0, %v4661_v2  ;;  %v2837_v27 = vsel %vm86_vm15, 1.0, %v4661_v2  ;;  %s3268_s29 = smov 3   ;;  %s3269_s30 = smov 4  }
  0x15   :  { %v120_v10 = vstv %s3333_s0  ;;  %v3181_v13 = vpack.i.bf16 %v2835_v11, %v2834_v9  ;;  %v3186_v30 = vpack.i.bf16 %v2837_v27, %v2836_v25  ;;  %vm71_vm4 = vcmp.eq.s32.totalorder %v3341_v3, 1  ;;  %v3476_v54 = vld [vmem:[%s4651_s5] sm:$0x1f]  ;;  %s3270_s11 = smov 8   ;;  %s3271_s0 = smov 24  }
  0x16   :  { %vm121_vm9 = vcmp.eq.s32.totalorder %v3346_v4, %v120_v10  ;;  %v129_v12 = vstv %s3338_s12  ;;  %vm124_vm10 = vcmp.eq.s32.totalorder %v3341_v3, %v120_v10  ;;  %431 = vrot.lane.b32.xlu1 %v2861_v5, %s3265_s20  ;;  %vm74_vm6 = vcmp.eq.s32.totalorder %v3341_v3, 2  ;;  %s3272_s12 = smov 16   ;;  %s3274_s14 = smov 40  }
  0x17   :  { %v2845_v14 = vsel %vm121_vm9, 1.0, %v4661_v2  ;;  %vm130_vm11 = vcmp.eq.s32.totalorder %v3346_v4, %v129_v12  ;;  %v138_v15 = vstv %s3343_s13  ;;  %v2846_v16 = vsel %vm124_vm10, 1.0, %v4661_v2  ;;  %603 = vrot.lane.b32.xlu0 %v3360_v6, %s3264_s19  ;;  %s3273_s13 = smov 32   ;;  %s3275_s15 = smov 48  }
  0x18   :  { %v2848_v17 = vsel %vm130_vm11, 1.0, %v4661_v2  ;;  %vm139_vm12 = vcmp.eq.s32.totalorder %v3346_v4, %v138_v15  ;;  %vm133_vm13 = vcmp.eq.s32.totalorder %v3341_v3, %v129_v12  ;;  %vm142_vm14 = vcmp.eq.s32.totalorder %v3341_v3, %v138_v15  ;;  %s4659_s21 = smov 56   ;;  %s3277_s25 = smov 64  }
  0x19   :  { %v2851_v18 = vsel %vm139_vm12, 1.0, %v4661_v2  ;;  %v146_v19 = vsel %vm145_vm2, %v2845_v14, %v2848_v17  ;;  %v2849_v20 = vsel %vm133_vm13, 1.0, %v4661_v2  ;;  %v2852_v21 = vsel %vm142_vm14, 1.0, %v4661_v2  ;;  %s3278_s9 = smov 96   ;;  %s3972_s18 = sld [smem:[#allocation3 + $0x80]] }
  0x1a   :  { %v148_v23 = vsel %vm4682_vm3, %v146_v19, %v2851_v18  ;;  %v150_v24 = vsel %vm149_vm5, %v2846_v16, %v2849_v20  ;;  %3182 = vperm.xlu1 %3180, %v3181_v13   ;;  %v2832_v31 = vsel %vm71_vm4, 1.0, %v4661_v2  ;;  %v2833_v32 = vsel %vm74_vm6, 1.0, %v4661_v2  ;;  %s3975_s22 = sld [smem:[#allocation3 + $0x81]] }
  0x1b   :  { %3007 = vmatmul.mubr.msk.f32.vlgmr.msra.gmra.mxu1 %vm92_vm1, %v148_v23  ;;  %v152_v26 = vsel %vm151_vm7, %v150_v24, %v2852_v21  ;;  %442 = vperm.xlu0 %3179, %v2861_v5   ;;  %v3192_v33 = vpack.i.bf16 %v2833_v32, %v2832_v31  ;;  %v3414_v34 = vsub.s32 0, %v3341_v3  ;;  %v3417_v35 = vsub.s32 2, %v3341_v3  ;;  %s3977_s23 = sld [smem:[#allocation3 + $0x82]] }
  0x1c   :  { %3009 = vmatprep.subr.mxu1 %v152_v26  ;;  %3011 = vmatprep.mubr.msk.f32.mxu1 %vm92_vm1, %v2841_v22  ;;  %v3430_v40 = vsub.s32 1, %v3341_v3  ;;  %vm68_vm8 = vcmp.eq.s32.totalorder %v3341_v3, 0  ;;  %vm89_vm9 = vcmp.eq.s32.totalorder %v3341_v3, 7  ;;  %vm323_vm10 = vcmask 1044480  }
  0x1d   :  { %3010 = vmatpush3.msra.mxu1 %v152_v26  ;;  %4683 = vst [vmem:[#allocation5_spill] sm:$0xff] %v3414_v34  ;;  %4684 = vst [vmem:[#allocation6_spill] sm:$0xff] %v3417_v35  ;;  %v2831_v50 = vsel %vm68_vm8, 1.0, %v4661_v2  ;;  %v2838_v52 = vsel %vm89_vm9, 1.0, %v4661_v2  ;;  %3015 = vmatpush3.msk.msra.mxu0 %vm323_vm10, %v3476_v54  ;;  %vm311_vm11 = vcmask 23552   ;;  %vm313_vm12 = vcmask 31744  }
  0x1e   :  { %3187 = vperm.xlu1 %3180, %v3186_v30   ;;  %4685 = vst [vmem:[#allocation7_spill] sm:$0xff] %v3430_v40  ;;  %3019 = vmatprep.subr.mxu0 %v4661_v2  ;;  %vm4656_vm13 = vcmask 48128   ;;  %vm4657_vm14 = vcmask 39936   ;;  %vm4655_vm15 = vcmask 56320   ;;  %vm94_vm4 = vcmask 130048  }
  0x1f   :  { %3012 = vmatmul.mubr.msk.f32.vlgmr.msra.gmra.mxu1 %vm92_vm1, %v2842_v28  ;;  %539 = vperm.xlu0 %3179, %v2864_v29   ;;  %vm476_vm6 = vcmask 195584   ;;  %vm478_vm8 = vcmask 261120   ;;  %vm698_vm9 = vcmask 326656  }
  0x20   :  { %772 = vmatprep.mubr.f32.mxu1 %v4661_v2 }
  0x22   :  { %530 = vrot.lane.b32.xlu1 %v2864_v29, %s3265_s20 }
  0x23   :  { %635 = vperm.xlu0 %3179, %v3360_v6  }
  0x27   :  { %3191 = vset.pattern.permute.xlu0 %v3263_v8 }
  0x28   :  { %3193 = vperm.xlu0 %3191, %v3192_v33  }
  0x84   :  { %v3484_v55 = vpop.permute.xlu1 %419 }
  0x85   :  { %v405_v36 = vpop.permute.xlu0 %404 }
  0x88   :  { %v432_v56 = vpop.permute.xlu1 %431 }
  0x89   :  { %v604_v43 = vpop.permute.xlu0 %603 }
  0x95   :  { %v3183_v57 = vpop.permute.xlu1 %3182 }
  0x96   :  { %v443_v58 = vpop.permute.xlu0 %442  ;;  %v3504_v21 = vunpack.i.l.bf16 %v3183_v57 }
  0x99   :  { %v3188_v59 = vpop.permute.xlu1 %3187 }
  0x9a   :  { %v540_v60 = vpop.permute.xlu0 %539 }
  0x9d   :  { %v531_v61 = vpop.permute.xlu1 %530 }
  0x9e   :  { %v3486_v62 = vpop.permute.xlu0 %635 }
  0xa3   :  { %v3194_v5 = vpop.permute.xlu0 %3193 }
  0xa4   :  { %v3500_v18 = vunpack.i.l.bf16 %v3194_v5  ;;  %v3510_v27 = vunpack.i.h.bf16 %v3194_v5 }
  0xdb   :  { %v3419_v37 = vpop.f32.mrf.mxu1 }
  0xdc   :  { %v3423_v38 = vrot.slane %v3419_v37, %v3414_v34  ;;  %v3427_v39 = vrot.slane %v3419_v37, %v3417_v35  ;;  %v3440_v45 = vrot.slane %v3419_v37, %v3430_v40 }
  0xdd   :  { %v3008_v41 = vpop.f32.mrf.mxu1 }
  0xde   :  { %414 = vrot.lane.b32.xlu1 %v3423_v38, %s3261_s16  ;;  %613 = vrot.lane.b32.xlu0 %v3427_v39, %s3261_s16  ;;  %v422_v11 = vsub.f32 %v3423_v38, %v3484_v55  ;;  %v520_v17 = vsub.f32 %v3440_v45, %v3484_v55  ;;  %v3526_v38 = vunpack.i.h.bf16 %v3183_v57 }
  0xdf   :  { %v3013_v42 = vpop.f32.mrf.mxu1 }
  0xe0   :  { %v3436_v44 = vmul.f32 %v3013_v42, %v2864_v29  ;;  %v3442_v47 = vmul.f32 %v3013_v42, %v405_v36  ;;  %v3469_v53 = vmul.f32 %v3013_v42, %v604_v43 }
  0xe1   :  { %v298_v46 = vpop.f32.mrf.mxu1 }
  0xe2   :  { %516 = vrot.lane.b32.xlu1 %v3440_v45, %s3261_s16  ;;  %526 = vrot.lane.b32.xlu0 %v3436_v44, %s3266_s27  ;;  %v3448_v48 = vmul.f32 %v604_v43, %v298_v46  ;;  %v3454_v49 = vmul.f32 %v405_v36, %v298_v46  ;;  %v3462_v51 = vmul.f32 %v2864_v29, %v298_v46  ;;  %v3535_v45 = vunpack.i.l.bf16 %v3188_v59 }
  0xe6   :  { %428 = vrot.lane.b32.xlu1 %v3442_v47, %s3267_s28  ;;  %619 = vrot.lane.b32.xlu0 %v3448_v48, %s3268_s29 }
  0xea   :  { %424 = vrot.lane.b32.xlu1 %v3454_v49, %s3266_s27  ;;  %626 = vrot.lane.b32.xlu0 %v3360_v6, %s3265_s20 }
  0xee   :  { %522 = vrot.lane.b32.xlu1 %v3462_v51, %s3269_s30  ;;  %799 = vperm.xlu0 %3191, %v2831_v50  }
  0xf2   :  { %855 = vperm.xlu1 %3180, %v2838_v52   ;;  %3198 = vset.pattern.permute.xlu0 %v3262_v7  ;;  %v617_v52 = vsub.f32 %v3427_v39, %v3484_v55 }
  0xf6   :  { %623 = vrot.lane.b32.xlu1 %v3469_v53, %s3269_s30 }
  0xf7   :  { %3197 = vset.pattern.permute.xlu1 %v3262_v7 }
  0xfa   :  { %308 = vrot.lane.b32.xlu1 %v3419_v37, %s3261_s16 }
 0x150   :  { %v415_v63 = vpop.permute.xlu1 %414  ;;  %v614_v12 = vpop.permute.xlu0 %613 }
 0x151   :  { %v417_v6 = vsub.f32 %v3331_v0, %v415_v63  ;;  %v616_v41 = vsub.f32 %v3331_v0, %v614_v12 }
 0x153   :  { %v434_v10 = vsel %vm311_vm11, %v3331_v0, %v417_v6  ;;  %v629_v46 = vsel %vm311_vm11, %v3331_v0, %v616_v41 }
 0x154   :  { %v517_v1 = vpop.permute.xlu1 %516  ;;  %v435_v13 = vsel %vm313_vm12, %v434_v10, %v422_v11  ;;  %v527_v25 = vpop.permute.xlu0 %526 }
 0x155   :  { %v519_v9 = vsub.f32 %v3331_v0, %v517_v1 }
 0x157   :  { %v533_v16 = vsel %vm311_vm11, %v3331_v0, %v519_v9 }
 0x158   :  { %v429_v8 = vpop.permute.xlu1 %428  ;;  %v534_v23 = vsel %vm313_vm12, %v533_v16, %v520_v17 }
 0x15c   :  { %v425_v14 = vpop.permute.xlu1 %424 }
 0x15d   :  { %v436_v15 = vsel %vm4657_vm14, %v435_v13, %v425_v14  ;;  %v37_v13 = vld [vmem:[%s4649_s3 + $0x38] sm:$0xff]  ;;  %v36_v14 = vld [vmem:[%s4649_s3 + $0x30] sm:$0xff] }
 0x15e   :  { %v438_v19 = vsel %vm4656_vm13, %v436_v15, %v429_v8  ;;  %v35_v15 = vld [vmem:[%s4649_s3 + $0x28] sm:$0xff] }
 0x15f   :  { %v440_v20 = vsel %vm4655_vm15, %v438_v19, %v432_v56  ;;  %v620_v56 = vpop.permute.xlu0 %619  ;;  %v34_v19 = vld [vmem:[%s4649_s3 + $0x20] sm:$0xff] }
 0x160   :  { %v3506_v22 = vmul.f32 %v443_v58, %v440_v20  ;;  %v523_v24 = vpop.permute.xlu1 %522 }
 0x161   :  { %v535_v26 = vsel %vm4657_vm14, %v534_v23, %v523_v24  ;;  %v33_v24 = vld [vmem:[%s4649_s3 + $0x18] sm:$0xff] }
 0x162   :  { %4686 = vst [vmem:[#allocation8_spill] sm:$0xff] %v3506_v22  ;;  %v536_v28 = vsel %vm4656_vm13, %v535_v26, %v527_v25  ;;  %v810_v29 = vmul.f32 %v3500_v18, %v3506_v22  ;;  %v826_v30 = vmul.f32 %v3504_v21, %v3506_v22  ;;  %v818_v33 = vmul.f32 %v3510_v27, %v3506_v22  ;;  %v32_v25 = vld [vmem:[%s4649_s3 + $0x10] sm:$0xff] }
 0x163   :  { %v537_v31 = vsel %vm4655_vm15, %v536_v28, %v531_v61  ;;  %v834_v42 = vmul.f32 %v3526_v38, %v3506_v22  ;;  %v842_v57 = vmul.f32 %v3535_v45, %v3506_v22  ;;  %v630_v61 = vsel %vm313_vm12, %v629_v46, %v617_v52  ;;  %v627_v39 = vpop.permute.xlu0 %626  ;;  %v2844_v46 = vld [vmem:[%s4647_s1 + $0x28] sm:$0xff] }
 0x164   :  { %v3518_v32 = vmul.f32 %v540_v60, %v537_v31  ;;  %864 = vrot.lane.b32.xlu1 %v810_v29, %s3270_s11  ;;  %888 = vrot.lane.b32.xlu0 %v826_v30, %s3271_s0  ;;  %v3549_v60 = vunpack.i.h.bf16 %v3188_v59  ;;  %v631_v0 = vsel %vm4657_vm14, %v630_v61, %v620_v56  ;;  %v3626_v29 = vld [vmem:[%s4647_s1 + $0x30] sm:$0xff]  ;;  %v2843_v30 = vld [vmem:[%s4647_s1 + $0x20] sm:$0xff] }
 0x165   :  { %v31_v31 = vld [vmem:[%s4649_s3 + $0x8] sm:$0xff]  ;;  %v482_v41 = vmul.f32 %v3626_v29, %v2843_v30  ;;  %v483_v52 = vmul.f32 %v3626_v29, %v2844_v46 }
 0x166   :  { %4687 = vst [vmem:[#allocation9_spill] sm:$0xff] %v3518_v32  ;;  %v811_v36 = vmul.f32 %v3500_v18, %v3518_v32  ;;  %v819_v43 = vmul.f32 %v3510_v27, %v3518_v32  ;;  %v827_v58 = vmul.f32 %v3504_v21, %v3518_v32  ;;  %v850_v1 = vmul.f32 %v3549_v60, %v3506_v22  ;;  %v2860_v56 = vld [vmem:[%s4647_s1 + $0x48] sm:$0xff] }
 0x167   :  { %v835_v59 = vmul.f32 %v3526_v38, %v3518_v32  ;;  %v843_v11 = vmul.f32 %v3535_v45, %v3518_v32 }
 0x168   :  { %876 = vrot.lane.b32.xlu1 %v818_v33, %s3272_s12  ;;  %866 = vrot.lane.b32.xlu0 %v811_v36, %s3270_s11  ;;  %v30_v33 = vld [vmem:[%s4649_s3] sm:$0xff] }
 0x169   :  { %v104_v36 = vld [vmem:[%s4647_s1] sm:$0xff] }
 0x16c   :  { %900 = vrot.lane.b32.xlu1 %v834_v42, %s3273_s13  ;;  %878 = vrot.lane.b32.xlu0 %v819_v43, %s3272_s12  ;;  %v3649_v43 = vmul.f32 %v3626_v29, %v104_v36 }
 0x16d   :  { %v3541_v50 = vpop.permute.xlu1 %855 }
 0x16e   :  { %v858_v10 = vmul.f32 %v3541_v50, %v3506_v22  ;;  %v859_v17 = vmul.f32 %v3541_v50, %v3518_v32  ;;  %4689 = vst [vmem:[#allocation11_spill] sm:$0xff] %v3649_v43 }
 0x170   :  { %912 = vrot.lane.b32.xlu1 %v842_v57, %s3274_s14  ;;  %890 = vrot.lane.b32.xlu0 %v827_v58, %s3271_s0  ;;  %v3665_v57 = vld [vmem:[%s4647_s1 + $0x38] sm:$0xff] }
 0x171   :  { %v624_v63 = vpop.permute.xlu1 %623  ;;  %v3670_v58 = vmul.f32 %v3665_v57, %v104_v36  ;;  %v575_v61 = vmul.f32 %v3665_v57, %v2843_v30 }
 0x172   :  { %v632_v55 = vsel %vm4656_vm13, %v631_v0, %v624_v63  ;;  %v3676_v0 = vld [vmem:[%s4650_s4 + $0x48] sm:$0xff]  ;;  %v3681_v63 = vld [vmem:[%s4650_s4 + $0x40] sm:$0xff]  ;;  %vm4664_vm13 = vcmask 457728  }
 0x173   :  { %v633_v5 = vsel %vm4655_vm15, %v632_v55, %v627_v39  ;;  %4690 = vst [vmem:[#allocation12_spill] sm:$0xff] %v3670_v58  ;;  %730 = vmatprep.subr.mxu1 %v3676_v0  ;;  %v3687_v39 = vld [vmem:[%s4650_s4 + $0x38] sm:$0xff]  ;;  %v3693_v55 = vld [vmem:[%s4650_s4 + $0x30] sm:$0xff]  ;;  %vm4665_vm15 = vcmask 392192  }
 0x174   :  { %924 = vrot.lane.b32.xlu1 %v850_v1, %s3275_s15  ;;  %902 = vrot.lane.b32.xlu0 %v835_v59, %s3273_s13  ;;  %v3564_v8 = vmul.f32 %v3486_v62, %v633_v5  ;;  %v851_v62 = vmul.f32 %v3549_v60, %v3518_v32  ;;  %v576_v1 = vmul.f32 %v3665_v57, %v2844_v46  ;;  %v3702_v59 = vld [vmem:[%s4650_s4 + $0x28] sm:$0xff]  ;;  %v2863_v5 = vld [vmem:[%s4647_s1 + $0x50] sm:$0xff] }
 0x175   :  { %v309_v6 = vpop.permute.xlu1 %308  ;;  %731 = vmatpush1.msra.mxu1 %v3681_v63 }
 0x176   :  { %4688 = vst [vmem:[#allocation10_spill] sm:$0xff] %v3564_v8  ;;  %v312_v9 = vsel %vm311_vm11, %v3419_v37, %v309_v6  ;;  %v812_v37 = vmul.f32 %v3500_v18, %v3564_v8  ;;  %v820_v16 = vmul.f32 %v3510_v27, %v3564_v8  ;;  %v828_v20 = vmul.f32 %v3504_v21, %v3564_v8 }
 0x177   :  { %v314_v12 = vsel %vm313_vm12, %v312_v9, %v309_v6  ;;  %v844_v23 = vmul.f32 %v3535_v45, %v3564_v8  ;;  %v836_v26 = vmul.f32 %v3526_v38, %v3564_v8  ;;  %v860_v28 = vmul.f32 %v3541_v50, %v3564_v8  ;;  %v3710_v6 = vld [vmem:[%s4647_s1 + $0x40] sm:$0xff]  ;;  %732 = vmatprep.subr.mxu1 %v3687_v39 }
 0x178   :  { %936 = vrot.lane.b32.xlu1 %v858_v10, %s4659_s21  ;;  %914 = vrot.lane.b32.xlu0 %v843_v11, %s3274_s14  ;;  %v852_v42 = vmul.f32 %v3549_v60, %v3564_v8  ;;  %v3717_v9 = vld [vmem:[%s4650_s4 + $0x20] sm:$0xff]  ;;  %v3723_v10 = vld [vmem:[%s4650_s4 + $0x18] sm:$0xff]  ;;  %v3728_v11 = vmul.f32 %v3710_v6, %v104_v36 }
 0x179   :  { %3017 = vmatmul.mubr.msk.f32.vlgmr.msra.gmra.mxu0 %vm4657_vm14, %v314_v12  ;;  %733 = vmatpush1.msra.mxu1 %v3693_v55  ;;  %v674_v12 = vmul.f32 %v3710_v6, %v2843_v30  ;;  %vm4658_vm14 = vcmask 523264  }
 0x17a   :  { %3020 = vmatpush3.msra.mxu0 %v37_v13  ;;  %3035 = vmatprep.mubr.msk.f32.mxu0 %vm3260_vm0, %v4661_v2  ;;  %4691 = vst [vmem:[#allocation13_spill] sm:$0xff] %v3728_v11  ;;  %v675_v13 = vmul.f32 %v3710_v6, %v2844_v46 }
 0x17b   :  { %3021 = vmatprep.subr.mxu0 %v4661_v2  ;;  %734 = vmatprep.subr.mxu1 %v3702_v59 }
 0x17c   :  { %868 = vrot.lane.b32.xlu1 %v812_v37, %s3270_s11  ;;  %926 = vrot.lane.b32.xlu0 %v851_v62, %s3275_s15  ;;  %v2866_v37 = vld [vmem:[%s4647_s1 + $0x58] sm:$0xff]  ;;  %v3742_v62 = vpop.permute.xlu0 %799 }
 0x17d   :  { %3022 = vmatpush3.msra.mxu0 %v36_v14  ;;  %735 = vmatpush1.msra.mxu1 %v3717_v9 }
 0x17e   :  { %3023 = vmatprep.subr.mxu0 %v4661_v2  ;;  %736 = vmatprep.subr.mxu1 %v3723_v10 }
 0x17f   :  { %3024 = vmatpush3.msra.mxu0 %v35_v15 }
 0x180   :  { %880 = vrot.lane.b32.xlu1 %v820_v16, %s3272_s12  ;;  %938 = vrot.lane.b32.xlu0 %v859_v17, %s4659_s21 }
 0x181   :  { %3025 = vmatprep.subr.mxu0 %v4661_v2 }
 0x182   :  { %3026 = vmatpush3.msra.mxu0 %v34_v19 }
 0x183   :  { %3027 = vmatprep.subr.mxu0 %v4661_v2 }
 0x184   :  { %892 = vrot.lane.b32.xlu1 %v828_v20, %s3271_s0  ;;  %916 = vrot.lane.b32.xlu0 %v844_v23, %s3274_s14  ;;  %v802_v23 = vmul.f32 %v3742_v62, %v3506_v22 }
 0x185   :  { %3028 = vmatpush3.msra.mxu0 %v33_v24 }
 0x186   :  { %3029 = vmatprep.subr.mxu0 %v4661_v2 }
 0x187   :  { %3030 = vmatpush3.msra.mxu0 %v32_v25 }
 0x188   :  { %904 = vrot.lane.b32.xlu1 %v836_v26, %s3273_s13  ;;  %940 = vrot.lane.b32.xlu0 %v860_v28, %s4659_s21 }
 0x189   :  { %3031 = vmatprep.subr.mxu0 %v4661_v2 }
 0x18a   :  { %3032 = vmatpush3.msra.mxu0 %v31_v31 }
 0x18b   :  { %3033 = vmatprep.subr.mxu0 %v4661_v2 }
 0x18c   :  { %928 = vrot.lane.b32.xlu1 %v852_v42, %s3275_s15  ;;  %3034 = vmatpush3.msra.mxu0 %v30_v33 }
 0x18d   :  { %488 = vrot.lane.b32.xlu0 %v482_v41, %s3272_s12  ;;  %3064 = vmatprep.subr.mxu0 %v4661_v2 }
 0x190   :  { %484 = vrot.lane.b32.xlu1 %v3649_v43, %s3270_s11 }
 0x191   :  { %496 = vrot.lane.b32.xlu0 %v2860_v56, %s3273_s13  ;;  %v803_v56 = vmul.f32 %v3742_v62, %v3518_v32 }
 0x194   :  { %492 = vrot.lane.b32.xlu1 %v483_v52, %s3271_s0 }
 0x195   :  { %581 = vrot.lane.b32.xlu0 %v575_v61, %s3272_s12 }
 0x198   :  { %577 = vrot.lane.b32.xlu1 %v3670_v58, %s3270_s11 }
 0x199   :  { %589 = vrot.lane.b32.xlu0 %v2863_v5, %s3273_s13 }
 0x19c   :  { %585 = vrot.lane.b32.xlu1 %v576_v1, %s3271_s0 }
 0x19d   :  { %680 = vrot.lane.b32.xlu0 %v674_v12, %s3272_s12 }
 0x1a0   :  { %676 = vrot.lane.b32.xlu1 %v3728_v11, %s3270_s11 }
 0x1a1   :  { %688 = vrot.lane.b32.xlu0 %v2866_v37, %s3273_s13 }
 0x1a4   :  { %684 = vrot.lane.b32.xlu1 %v675_v13, %s3271_s0 }
 0x1d6   :  { %v865_v14 = vpop.permute.xlu1 %864  ;;  %v889_v15 = vpop.permute.xlu0 %888 }
 0x1d7   :  { %v945_v26 = vsel %vm92_vm1, %v802_v23, %v865_v14 }
 0x1da   :  { %v877_v16 = vpop.permute.xlu1 %876  ;;  %v867_v17 = vpop.permute.xlu0 %866 }
 0x1db   :  { %v948_v28 = vsel %vm94_vm4, %v945_v26, %v877_v16  ;;  %v946_v1 = vsel %vm92_vm1, %v803_v56, %v867_v17  ;;  %v804_v17 = vmul.f32 %v3742_v62, %v3564_v8  ;;  %v2840_v56 = vld [vmem:[%s4647_s1 + $0x8] sm:$0xff] }
 0x1dc   :  { %v951_v33 = vsel %vm476_vm6, %v948_v28, %v889_v15 }
 0x1de   :  { %v901_v19 = vpop.permute.xlu1 %900  ;;  %v879_v20 = vpop.permute.xlu0 %878 }
 0x1df   :  { %v954_v36 = vsel %vm478_vm8, %v951_v33, %v901_v19  ;;  %v949_v5 = vsel %vm94_vm4, %v946_v1, %v879_v20 }
 0x1e2   :  { %v913_v24 = vpop.permute.xlu1 %912  ;;  %v891_v25 = vpop.permute.xlu0 %890 }
 0x1e3   :  { %v957_v41 = vsel %vm698_vm9, %v954_v36, %v913_v24  ;;  %v952_v37 = vsel %vm476_vm6, %v949_v5, %v891_v25 }
 0x1e6   :  { %v925_v30 = vpop.permute.xlu1 %924  ;;  %v903_v31 = vpop.permute.xlu0 %902 }
 0x1e7   :  { %v961_v42 = vsel %vm4665_vm15, %v957_v41, %v925_v30  ;;  %v955_v14 = vsel %vm478_vm8, %v952_v37, %v903_v31  ;;  %v3796_v37 = vld [vmem:[%s4650_s4 + $0x8] sm:$0xff] }
 0x1ea   :  { %v937_v46 = vpop.permute.xlu1 %936  ;;  %v915_v52 = vpop.permute.xlu0 %914 }
 0x1eb   :  { %v965_v61 = vsel %vm4664_vm13, %v961_v42, %v937_v46  ;;  %v958_v15 = vsel %vm698_vm9, %v955_v14, %v915_v52 }
 0x1ec   :  { %3036 = vmatmul.mubr.msk.f32.vlgmr.msra.gmra.mxu0 %vm4658_vm14, %v965_v61  ;;  %v3784_v61 = vmul.f32 %v3626_v29, %v2840_v56  ;;  %v3804_v29 = vld [vmem:[%s4650_s4] sm:$0xff] }
 0x1ed   :  { %3038 = vmatprep.mubr.msk.f32.mxu0 %vm3260_vm0, %v4661_v2 }
 0x1ee   :  { %v869_v12 = vpop.permute.xlu1 %868  ;;  %v927_v13 = vpop.permute.xlu0 %926  ;;  %4692 = vst [vmem:[#allocation14_spill] sm:$0xff] %v3784_v61 }
 0x1ef   :  { %v962_v16 = vsel %vm4665_vm15, %v958_v15, %v927_v13  ;;  %v947_v25 = vsel %vm92_vm1, %v804_v17, %v869_v12  ;;  %v3791_v13 = vld [vmem:[%s4650_s4 + $0x10] sm:$0xff] }
 0x1f0   :  { %737 = vmatpush1.msra.mxu1 %v3791_v13 }
 0x1f1   :  { %738 = vmatprep.subr.mxu1 %v3796_v37 }
 0x1f2   :  { %v881_v19 = vpop.permute.xlu1 %880  ;;  %v939_v23 = vpop.permute.xlu0 %938  ;;  %739 = vmatpush1.msra.mxu1 %v3804_v29 }
 0x1f3   :  { %v966_v24 = vsel %vm4664_vm13, %v962_v16, %v939_v23  ;;  %v950_v26 = vsel %vm94_vm4, %v947_v25, %v881_v19  ;;  %v3809_v23 = vmul.f32 %v3665_v57, %v2840_v56  ;;  %3044 = vmatprep.subr.mxu1 %v4661_v2 }
 0x1f4   :  { %3039 = vmatmul.mubr.msk.f32.gmra.mxu0 %vm4658_vm14, %v966_v24 }
 0x1f5   :  { %3041 = vmatprep.mubr.msk.f32.mxu0 %vm3260_vm0, %v4661_v2  ;;  %4693 = vst [vmem:[#allocation15_spill] sm:$0xff] %v3809_v23 }
 0x1f6   :  { %v893_v20 = vpop.permute.xlu1 %892  ;;  %v917_v28 = vpop.permute.xlu0 %916 }
 0x1f7   :  { %v953_v30 = vsel %vm476_vm6, %v950_v26, %v893_v20 }
 0x1fa   :  { %v905_v31 = vpop.permute.xlu1 %904  ;;  %v941_v42 = vpop.permute.xlu0 %940 }
 0x1fb   :  { %v956_v33 = vsel %vm478_vm8, %v953_v30, %v905_v31  ;;  %v3820_v31 = vmul.f32 %v3710_v6, %v2840_v56 }
 0x1fc   :  { %v959_v41 = vsel %vm698_vm9, %v956_v33, %v917_v28 }
 0x1fd   :  { %4694 = vst [vmem:[#allocation16_spill] sm:$0xff] %v3820_v31 }
 0x1fe   :  { %v929_v36 = vpop.permute.xlu1 %928 }
 0x1ff   :  { %v963_v46 = vsel %vm4665_vm15, %v959_v41, %v929_v36  ;;  %v489_v5 = vpop.permute.xlu0 %488 }
 0x200   :  { %v967_v52 = vsel %vm4664_vm13, %v963_v46, %v941_v42 }
 0x201   :  { %3042 = vmatmul.mubr.msk.f32.gmra.mxu0 %vm4658_vm14, %v967_v52 }
 0x202   :  { %3072 = vmatprep.mubr.msk.f32.mxu0 %vm3260_vm0, %v4661_v2  ;;  %v485_v1 = vpop.permute.xlu1 %484 }
 0x203   :  { %v499_v12 = vsel %vm92_vm1, %v3784_v61, %v485_v1  ;;  %v497_v16 = vpop.permute.xlu0 %496 }
 0x204   :  { %v500_v14 = vsel %vm94_vm4, %v499_v12, %v489_v5 }
 0x206   :  { %v493_v15 = vpop.permute.xlu1 %492 }
 0x207   :  { %v501_v19 = vsel %vm476_vm6, %v500_v14, %v493_v15  ;;  %v582_v20 = vpop.permute.xlu0 %581  ;;  %v3838_v14 = vld [vmem:[%s4649_s3 + $0x58] sm:$0xff]  ;;  %v3844_v15 = vld [vmem:[%s4649_s3 + $0x50] sm:$0xff] }
 0x208   :  { %v502_v24 = vsel %vm478_vm8, %v501_v19, %v497_v16  ;;  %3065 = vmatpush3.msra.mxu0 %v3838_v14  ;;  %v3851_v16 = vld [vmem:[%s4649_s3 + $0x48] sm:$0xff]  ;;  %v3858_v19 = vld [vmem:[%s4649_s3 + $0x40] sm:$0xff] }
 0x209   :  { %2868 = vmatmul.mubr.msk.f32.vlgmr.msra.gmra.mxu1 %vm698_vm9, %v502_v24  ;;  %3066 = vmatprep.subr.mxu0 %v4661_v2 }
 0x20a   :  { %v578_v17 = vpop.permute.xlu1 %577  ;;  %778 = vmatprep.mubr.f32.mxu1 %v4661_v2  ;;  %3067 = vmatpush3.msra.mxu0 %v3844_v15 }
 0x20b   :  { %v592_v25 = vsel %vm92_vm1, %v3809_v23, %v578_v17  ;;  %v590_v30 = vpop.permute.xlu0 %589  ;;  %3068 = vmatprep.subr.mxu0 %v4661_v2 }
 0x20c   :  { %v593_v26 = vsel %vm94_vm4, %v592_v25, %v582_v20  ;;  %3069 = vmatpush3.msra.mxu0 %v3851_v16 }
 0x20d   :  { %3070 = vmatprep.subr.mxu0 %v4661_v2 }
 0x20e   :  { %v586_v28 = vpop.permute.xlu1 %585  ;;  %3071 = vmatpush3.msra.mxu0 %v3858_v19 }
 0x20f   :  { %v594_v57 = vsel %vm476_vm6, %v593_v26, %v586_v28  ;;  %v681_v52 = vpop.permute.xlu0 %680  ;;  %v93_v26 = vsel %vm92_vm1, 0, %v3262_v7 }
 0x210   :  { %v595_v36 = vsel %vm478_vm8, %v594_v57, %v590_v30  ;;  %v95_v28 = vsel %vm94_vm4, %v93_v26, 2 }
 0x211   :  { %2869 = vmatmul.mubr.msk.f32.gmra.mxu1 %vm698_vm9, %v595_v36  ;;  %v99_v30 = vrot.slane %v95_v28, %v3414_v34 }
 0x212   :  { %v677_v42 = vpop.permute.xlu1 %676  ;;  %784 = vmatprep.mubr.f32.mxu1 %v4661_v2 }
 0x213   :  { %v691_v46 = vsel %vm92_vm1, %v3820_v31, %v677_v42  ;;  %v689_v56 = vpop.permute.xlu0 %688  ;;  %vm100_vm14 = vcmp.eq.s32.totalorder %v99_v30, %v3341_v3 }
 0x214   :  { %v692_v1 = vsel %vm94_vm4, %v691_v46, %v681_v52 }
 0x216   :  { %v685_v5 = vpop.permute.xlu1 %684 }
 0x217   :  { %v693_v6 = vsel %vm476_vm6, %v692_v1, %v685_v5 }
 0x218   :  { %v694_v12 = vsel %vm478_vm8, %v693_v6, %v689_v56 }
 0x219   :  { %2870 = vmatmul.mubr.msk.f32.gmra.mxu1 %vm698_vm9, %v694_v12  ;;  %v3917_v12 = vld [vmem:[%s4649_s3 + $0x61] sm:$0x1] }
 0x21a   :  { %3050 = vmatprep.mubr.msk.f32.mxu1 %vm3260_vm0, %v4661_v2 }
 0x239   :  { %v3822_v33 = vpop.f32.mrf.mxu0 }
 0x23a   :  { %4695 = vst [vmem:[#allocation17_spill] sm:$0xff] %v3822_v33 }
 0x23b   :  { %v3018_v41 = vpop.f32.mrf.mxu0 }
 0x23c   :  { %v3869_v41 = vsel %vm100_vm14, 1.0, %v4661_v2 }
 0x2ac   :  { %v1044_v24 = vpop.f32.mrf.mxu0 }
 0x2ae   :  { %v3037_v17 = vpop.f32.mrf.mxu0 }
 0x2b4   :  { %v1049_v20 = vpop.f32.mrf.mxu0 }
 0x2b6   :  { %v3040_v25 = vpop.f32.mrf.mxu0 }
 0x2b7   :  { %v3927_v25 = vld [vmem:[%s4649_s3 + $0x60] ss:$0 sm:$0xff] }
 0x2c1   :  { %v1054_v57 = vpop.f32.mrf.mxu0 }
 0x2c2   :  { %3045 = vmatpush3.msra.mxu1 %v1054_v57 }
 0x2c3   :  { %v3043_v36 = vpop.f32.mrf.mxu0  ;;  %3046 = vmatprep.subr.mxu1 %v4661_v2 }
 0x2c4   :  { %3047 = vmatpush3.msra.mxu1 %v1049_v20 }
 0x2c5   :  { %3048 = vmatprep.subr.mxu1 %v4661_v2 }
 0x2c6   :  { %3049 = vmatpush3.msra.mxu1 %v1044_v24 }
 0x2c7   :  { %3051 = vmatmul.mubr.msk.f32.vlgmr.msra.gmra.mxu1 %vm476_vm6, %v3869_v41  ;;  %3053 = vmatprep.subr.mxu1 %v4661_v2 }
 0x2c8   :  { %3054 = vmatpush3.msra.mxu1 %v3838_v14  ;;  %3061 = vmatprep.mubr.msk.f32.mxu1 %vm3260_vm0, %v4661_v2 }
 0x2c9   :  { %3055 = vmatprep.subr.mxu1 %v4661_v2  ;;  %v774_v7 = vpop.f32.mrf.mxu1 }
 0x2ca   :  { %3056 = vmatpush3.msra.mxu1 %v3844_v15  ;;  %791 = vst [vmem:[%s4654_s8] sm:$0xff] %v774_v7 }
 0x2cb   :  { %3057 = vmatprep.subr.mxu1 %v4661_v2  ;;  %v776_v42 = vpop.f32.mrf.mxu1 }
 0x2cc   :  { %3058 = vmatpush3.msra.mxu1 %v3851_v16  ;;  %792 = vst [vmem:[%s4654_s8 + $0x8] sm:$0xff] %v776_v42 }
 0x2cd   :  { %3059 = vmatprep.subr.mxu1 %v4661_v2 }
 0x2ce   :  { %3060 = vmatpush3.msra.mxu1 %v3858_v19 }
 0x2cf   :  { %3062 = vmatmul.mubr.f32.vlgmr.msra.gmra.mxu1 %v4661_v2  ;;  %3075 = vmatprep.subr.mxu1 %v4661_v2 }
 0x2d0   :  { %3076 = vmatpush3.msra.mxu1 %v3838_v14  ;;  %3083 = vmatprep.mubr.msk.f32.mxu1 %vm3260_vm0, %v4661_v2 }
 0x2d1   :  { %3077 = vmatprep.subr.mxu1 %v4661_v2  ;;  %v780_v46 = vpop.f32.mrf.mxu1 }
 0x2d2   :  { %3078 = vmatpush3.msra.mxu1 %v3844_v15  ;;  %793 = vst [vmem:[%s4654_s8 + $0x10] sm:$0xff] %v780_v46 }
 0x2d3   :  { %3079 = vmatprep.subr.mxu1 %v4661_v2  ;;  %v782_v52 = vpop.f32.mrf.mxu1 }
 0x2d4   :  { %3080 = vmatpush3.msra.mxu1 %v3851_v16  ;;  %794 = vst [vmem:[%s4654_s8 + $0x18] sm:$0xff] %v782_v52 }
 0x2d5   :  { %3081 = vmatprep.subr.mxu1 %v4661_v2 }
 0x2d6   :  { %3082 = vmatpush3.msra.mxu1 %v3858_v19 }
 0x2d7   :  { %3086 = vmatprep.subr.mxu1 %v4661_v2 }
 0x2d9   :  { %v786_v1 = vpop.f32.mrf.mxu1 }
 0x2da   :  { %795 = vst [vmem:[%s4654_s8 + $0x20] sm:$0xff] %v786_v1 }
 0x2db   :  { %v788_v5 = vpop.f32.mrf.mxu1 }
 0x2dc   :  { %796 = vst [vmem:[%s4654_s8 + $0x28] sm:$0xff] %v788_v5 }
 0x387   :  { %v1131_v6 = vpop.f32.mrf.mxu1 }
 0x388   :  { %v3930_v26 = vadd.f32 %v3927_v25, %v1131_v6 }
 0x389   :  { %v3052_v56 = vpop.f32.mrf.mxu1 }
 0x38f   :  { %v1204_v24 = vpop.f32.mrf.mxu1 }
 0x390   :  { %v3920_v17 = vadd.f32 %v1204_v24, %v3917_v12 }
 0x391   :  { %v3063_v20 = vpop.f32.mrf.mxu1 }
 0x392   :  { %1216 = vrot.lane.b32.xlu1 %v3920_v17, %s3277_s25  ;;  %v1208_v28 = vadd.f32 %v3920_v17, %v3930_v26 }
 0x394   :  { %v2876_v30 = vmul.f32 -1.442695, %v1208_v28 }
 0x396   :  { %3199 = vpow2.f32 %v2876_v30 }
 0x3a3   :  { %v3200_v57 = vpop.eup %3199 }
 0x3a4   :  { %v1212_v36 = vadd.f32 1.0, %v3200_v57 }
 0x3a6   :  { %3201 = vrcp.f32 %v1212_v36 }
 0x3b3   :  { %v3202_v7 = vpop.eup %3201 }
 0x3b4   :  { %v1226_v6 = vsub.f32 1.0, %v3202_v7  ;;  %v1232_v24 = vmul.f32 0.0, %v3202_v7 }
 0x404   :  { %v3934_v42 = vpop.permute.xlu1 %1216 }
 0x405   :  { %v1219_v46 = vmul.f32 %v3202_v7, %v3934_v42 }
 0x407   :  { %1221 = vrot.lane.b32.xlu0 %v1219_v46, %s3277_s25 }
 0x479   :  { %v1222_v52 = vpop.permute.xlu0 %1221 }
 0x47a   :  { %v1224_v1 = vadd.f32 %v1222_v52, %v3930_v26 }
 0x47c   :  { %3203 = vtanh.f32 %v1224_v1 }
 0x489   :  { %v3204_v5 = vpop.eup %3203 }
 0x48a   :  { %1228 = vrot.lane.b32.xlu1 %v3204_v5, %s3278_s9 }
 0x4fc   :  { %v1229_v56 = vpop.permute.xlu1 %1228 }
 0x4fd   :  { %v1231_v20 = vmul.f32 %v1229_v56, %v1226_v6 }
 0x4ff   :  { %v3940_v28 = vadd.f32 %v1232_v24, %v1231_v20 }
 0x501   :  { %1235 = vrot.lane.b32.xlu0 %v3940_v28, %s3278_s9 }
 0x573   :  { %v1236_v30 = vpop.permute.xlu0 %1235 }
 0x574   :  { %3073 = vmatmul.mubr.msk.f32.vlgmr.msra.gmra.mxu0 %vm478_vm8, %v1236_v30 }
 0x575   :  { %1527 = vmatprep.mubr.f32.mxu0 %v4661_v2 }
 0x634   :  { %v1305_v57 = vpop.f32.mrf.mxu0 }
 0x635   :  { %v1306_v36 = vadd.f32 %v1305_v57, %v3917_v12 }
 0x636   :  { %v3074_v46 = vpop.f32.mrf.mxu0 }
 0x637   :  { %v1310_v52 = vrot.slane %v1306_v36, 7  ;;  %v1335_v46 = vrot.slane %v3940_v28, 7 }
 0x639   :  { %1319 = vrot.lane.b32.xlu1 %v1310_v52, %s3277_s25  ;;  %v1312_v7 = vadd.f32 %v1310_v52, %v3930_v26 }
 0x63b   :  { %v2878_v1 = vmul.f32 -1.442695, %v1312_v7 }
 0x63d   :  { %3205 = vpow2.f32 %v2878_v1 }
 0x64a   :  { %v3206_v5 = vpop.eup %3205 }
 0x64b   :  { %v1316_v6 = vadd.f32 1.0, %v3206_v5 }
 0x64d   :  { %3207 = vrcp.f32 %v1316_v6 }
 0x65a   :  { %v3208_v56 = vpop.eup %3207 }
 0x65b   :  { %v1329_v36 = vsub.f32 1.0, %v3208_v56  ;;  %v1337_v7 = vmul.f32 %v3208_v56, %v1335_v46 }
 0x6ab   :  { %v1320_v24 = vpop.permute.xlu1 %1319 }
 0x6ac   :  { %v1322_v20 = vmul.f32 %v3208_v56, %v1320_v24 }
 0x6ae   :  { %1324 = vrot.lane.b32.xlu0 %v1322_v20, %s3277_s25  ;;  %v4696_v20 = vmov 0.0  }
 0x720   :  { %v1325_v30 = vpop.permute.xlu0 %1324 }
 0x721   :  { %v1327_v2 = vadd.f32 %v1325_v30, %v3930_v26 }
 0x723   :  { %3209 = vtanh.f32 %v1327_v2 }
 0x730   :  { %v3210_v57 = vpop.eup %3209 }
 0x731   :  { %1331 = vrot.lane.b32.xlu1 %v3210_v57, %s3278_s9 }
 0x7a3   :  { %v1332_v52 = vpop.permute.xlu1 %1331 }
 0x7a4   :  { %v1334_v1 = vmul.f32 %v1332_v52, %v1329_v36 }
 0x7a6   :  { %v3953_v5 = vadd.f32 %v1337_v7, %v1334_v1 }
 0x7a8   :  { %v1340_v6 = vrot.slane %v3953_v5, 1  ;;  %v1445_v61 = vsel %vm145_vm2, %v3940_v28, %v3953_v5 }
 0x7aa   :  { %1341 = vrot.lane.b32.xlu0 %v1340_v6, %s3278_s9 }
 0x81c   :  { %v1342_v24 = vpop.permute.xlu0 %1341 }
 0x81d   :  { %3084 = vmatmul.mubr.msk.f32.vlgmr.msra.gmra.mxu1 %vm478_vm8, %v1342_v24  ;;  %v3970_v24 = vld [vmem:[%s4648_s2 + $0x20] sm:$0xff] }
 0x81e   :  { %3088 = vmatprep.mubr.msk.f32.mxu1 %vm3260_vm0, %v4696_v20  ;;  %3087 = vmatpush3.msra.mxu1 %v3970_v24 }
 0x81f   :  { %3096 = vmatprep.subr.mxu1 %v4696_v20 }
 0x8dd   :  { %v1411_v2 = vpop.f32.mrf.mxu1 }
 0x8de   :  { %v1412_v30 = vadd.f32 %v1411_v2, %v3917_v12  ;;  %v1565_v2 = vstv %s3975_s22 }
 0x8df   :  { %v3085_v57 = vpop.f32.mrf.mxu1  ;;  %vm1566_vm13 = vcmp.eq.s32.totalorder %v3346_v4, %v1565_v2 }
 0x8e0   :  { %v1416_v8 = vrot.slane %v1412_v30, 6  ;;  %v1574_v57 = vstv %s3977_s23 }
 0x8e1   :  { %vm1575_vm15 = vcmp.eq.s32.totalorder %v3346_v4, %v1574_v57 }
 0x8e2   :  { %1425 = vrot.lane.b32.xlu1 %v1416_v8, %s3277_s25  ;;  %v1418_v56 = vadd.f32 %v1416_v8, %v3930_v26  ;;  %v1556_v8 = vstv %s3972_s18 }
 0x8e3   :  { %vm1557_vm14 = vcmp.eq.s32.totalorder %v3346_v4, %v1556_v8  ;;  %v4001_v4 = vld [vmem:[%s4650_s4 + $0x88] sm:$0xff] }
 0x8e4   :  { %v2880_v36 = vmul.f32 -1.442695, %v1418_v56  ;;  %v2890_v30 = vsel %vm1557_vm14, 1.0, %v4696_v20  ;;  %v2893_v56 = vsel %vm1566_vm13, 1.0, %v4696_v20  ;;  %1487 = vmatprep.subr.mxu0 %v4001_v4  ;;  %vm1569_vm13 = vcmp.eq.s32.totalorder %v3341_v3, %v1565_v2 }
 0x8e5   :  { %v2894_v32 = vsel %vm1569_vm13, 1.0, %v4696_v20  ;;  %vm4702_vm13 = vcmask 56320  }
 0x8e6   :  { %3211 = vpow2.f32 %v2880_v36  ;;  %v2896_v36 = vsel %vm1575_vm15, 1.0, %v4696_v20  ;;  %vm1578_vm15 = vcmp.eq.s32.totalorder %v3341_v3, %v1574_v57  ;;  %v1441_v57 = vrot.slane %v3953_v5, 7  ;;  %v2885_v5 = vld [vmem:[%s4647_s1 + $0x78] sm:$0xff] }
 0x8e7   :  { %v2897_v22 = vsel %vm1578_vm15, 1.0, %v4696_v20 }
 0x8f3   :  { %v3212_v46 = vpop.eup %3211 }
 0x8f4   :  { %v1422_v52 = vadd.f32 1.0, %v3212_v46  ;;  %v1581_v46 = vsel %vm145_vm2, %v2890_v30, %v2893_v56  ;;  %v4006_v30 = vld [vmem:[%s4650_s4 + $0x80] sm:$0xff]  ;;  %v4023_v56 = vld [vmem:[%s4650_s4 + $0x68] sm:$0xff] }
 0x8f5   :  { %1488 = vmatpush1.msra.mxu0 %v4006_v30 }
 0x8f6   :  { %3213 = vrcp.f32 %v1422_v52  ;;  %v1582_v52 = vsel %vm4682_vm3, %v1581_v46, %v2896_v36  ;;  %v4029_v36 = vld [vmem:[%s4650_s4 + $0x60] sm:$0xff]  ;;  %v4035_v46 = vld [vmem:[%s4650_s4 + $0x58] sm:$0xff] }
 0x8f7   :  { %3089 = vmatmul.mubr.msk.f32.vlgmr.msra.gmra.mxu1 %vm92_vm1, %v1582_v52  ;;  %v4041_v52 = vld [vmem:[%s4650_s4 + $0x50] sm:$0xff] }
 0x8f8   :  { %3097 = vmatpush3.msk.msra.mxu1 %vm323_vm10, %v3476_v54  ;;  %3098 = vmatprep.mubr.msk.f32.mxu1 %vm3260_vm0, %v4696_v20  ;;  %v4011_v54 = vld [vmem:[%s4650_s4 + $0x78] sm:$0xff]  ;;  %vm1560_vm10 = vcmp.eq.s32.totalorder %v3341_v3, %v1556_v8 }
 0x8f9   :  { %3101 = vmatprep.subr.mxu1 %v4696_v20  ;;  %1489 = vmatprep.subr.mxu0 %v4011_v54 }
 0x903   :  { %v3963_v7 = vpop.eup %3213 }
 0x904   :  { %v1435_v2 = vsub.f32 1.0, %v3963_v7 }
 0x954   :  { %v1426_v1 = vpop.permute.xlu1 %1425 }
 0x955   :  { %v1428_v6 = vmul.f32 %v3963_v7, %v1426_v1 }
 0x957   :  { %1430 = vrot.lane.b32.xlu0 %v1428_v6, %s3277_s25 }
 0x9b7   :  { %v4058_v8 = vpop.f32.mrf.mxu1 }
 0x9b8   :  { %v4063_v3 = vrot.slane %v4058_v8, %v3414_v34 }
 0x9c9   :  { %v1431_v1 = vpop.permute.xlu0 %1430 }
 0x9ca   :  { %v1433_v6 = vadd.f32 %v1431_v1, %v3930_v26  ;;  %v4017_v26 = vld [vmem:[%s4650_s4 + $0x70] sm:$0xff] }
 0x9cb   :  { %1490 = vmatpush1.msra.mxu0 %v4017_v26 }
 0x9cc   :  { %3215 = vtanh.f32 %v1433_v6  ;;  %1491 = vmatprep.subr.mxu0 %v4023_v56  ;;  %v2891_v6 = vsel %vm1560_vm10, 1.0, %v4696_v20  ;;  %vm4701_vm10 = vcmask 48128  }
 0x9cd   :  { %1492 = vmatpush1.msra.mxu0 %v4029_v36  ;;  %v1583_v33 = vsel %vm149_vm5, %v2891_v6, %v2894_v32  ;;  %v3090_v32 = vpop.f32.mrf.mxu1  ;;  %vm4703_vm15 = vmmov %vm4701_vm10 }
 0x9ce   :  { %1493 = vmatprep.subr.mxu0 %v4035_v46  ;;  %v1584_v23 = vsel %vm151_vm7, %v1583_v33, %v2897_v22  ;;  %v1443_v22 = vmul.f32 %v3963_v7, %v1441_v57  ;;  %v4077_v32 = vrot.slane %v4058_v8, %v3430_v40  ;;  %v2911_v7 = vld [vmem:[%s4648_s2 + $0x38] sm:$0xff]  ;;  %vm4699_vm7 = vcmask 39936  }
 0x9cf   :  { %1494 = vmatpush1.msra.mxu0 %v4041_v52  ;;  %vm4700_vm14 = vmmov %vm4699_vm7 }
 0x9d0   :  { %3091 = vmatprep.subr.mxu0 %v1584_v23 }
 0x9d9   :  { %v3216_v1 = vpop.eup %3215 }
 0x9da   :  { %1437 = vrot.lane.b32.xlu1 %v3216_v1, %s3278_s9  ;;  %v2905_v1 = vld [vmem:[%s4648_s2 + $0x28] sm:$0xff] }
 0x9de   :  { %1825 = vrot.lane.b32.xlu1 %v2905_v1, %s3261_s16 }
 0x9e2   :  { %1835 = vrot.lane.b32.xlu1 %v4063_v3, %s3261_s16 }
 0x9e6   :  { %1861 = vperm.xlu1 %3197, %v2905_v1  }
 0x9ea   :  { %1931 = vrot.lane.b32.xlu1 %v4077_v32, %s3261_s16 }
 0x9ee   :  { %1852 = vrot.lane.b32.xlu1 %v2905_v1, %s3265_s20 }
 0xa4c   :  { %v1438_v6 = vpop.permute.xlu1 %1437 }
 0xa4d   :  { %v1440_v33 = vmul.f32 %v1438_v6, %v1435_v2 }
 0xa4f   :  { %v1444_v31 = vadd.f32 %v1443_v22, %v1440_v33 }
 0xa51   :  { %v1446_v58 = vsel %vm4682_vm3, %v1445_v61, %v1444_v31  ;;  %v4088_v61 = vrot.slane %v4058_v8, %v3417_v35  ;;  %v2884_v31 = vld [vmem:[%s4647_s1 + $0x70] sm:$0xff]  ;;  %vm4704_vm3 = vmmov %vm4702_vm13 }
 0xa52   :  { %1459 = vrot.lane.b32.xlu0 %v1446_v58, %s3278_s9  ;;  %v2908_v58 = vld [vmem:[%s4648_s2 + $0x30] sm:$0xff] }
 0xa53   :  { %2028 = vrot.lane.b32.xlu1 %v4088_v61, %s3261_s16 }
 0xa56   :  { %2018 = vrot.lane.b32.xlu0 %v2911_v7, %s3264_s19 }
 0xa57   :  { %1945 = vrot.lane.b32.xlu1 %v2908_v58, %s3265_s20 }
 0xa5a   :  { %1840 = vrot.lane.b32.xlu0 %v3970_v24, %s3261_s16 }
 0xa5e   :  { %1954 = vperm.xlu0 %3198, %v2908_v58  }
 0xac4   :  { %v1460_v28 = vpop.permute.xlu0 %1459 }
 0xac5   :  { %2881 = vmatmul.mubr.msk.f32.vlgmr.msra.gmra.mxu0 %vm478_vm8, %v1460_v28 }
 0xac6   :  { %3092 = vmatpush3.msra.mxu0 %v1584_v23  ;;  %3093 = vmatprep.mubr.msk.f32.mxu0 %vm92_vm1, %v2884_v31 }
 0xac7   :  { %2145 = vmatprep.subr.mxu0 %v3676_v0  ;;  %v2830_v0 = vld [vmem:[%s4650_s4 + $0x90] ss:$8 sm:$0x3] }
 0xac8   :  { %v2019_v6 = vpop.permute.xlu0 %2018 }
 0xac9   :  { %3094 = vmatmul.mubr.msk.f32.vlgmr.msra.gmra.mxu0 %vm92_vm1, %v2885_v5 }
 0xaca   :  { %2146 = vmatpush1.msra.mxu0 %v3681_v63  ;;  %2187 = vmatprep.mubr.f32.mxu0 %v4696_v20  ;;  %v4123_v63 = vrot.slane %v2830_v0, %v3414_v34 }
 0xacb   :  { %2147 = vmatprep.subr.mxu0 %v3687_v39  ;;  %v4126_v39 = vrot.slane %v2830_v0, %v3430_v40 }
 0xacc   :  { %2148 = vmatpush1.msra.mxu0 %v3693_v55  ;;  %4697 = vst [vmem:[#allocation18_spill] sm:$0xff] %v4123_v63 }
 0xacd   :  { %2149 = vmatprep.subr.mxu0 %v3702_v59  ;;  %4698 = vst [vmem:[#allocation19_spill] sm:$0xff] %v4126_v39 }
 0xace   :  { %2150 = vmatpush1.msra.mxu0 %v3717_v9 }
 0xacf   :  { %2151 = vmatprep.subr.mxu0 %v3723_v10 }
 0xad0   :  { %2152 = vmatpush1.msra.mxu0 %v3791_v13  ;;  %v1826_v13 = vpop.permute.xlu1 %1825 }
 0xad1   :  { %2153 = vmatprep.subr.mxu0 %v3796_v37 }
 0xad2   :  { %2154 = vmatpush1.msra.mxu0 %v3804_v29 }
 0xad3   :  { %3126 = vmatprep.subr.mxu0 %v4696_v20 }
 0xad4   :  { %v1836_v31 = vpop.permute.xlu1 %1835 }
 0xad8   :  { %v1862_v28 = vpop.permute.xlu1 %1861 }
 0xadc   :  { %v1932_v5 = vpop.permute.xlu1 %1931 }
 0xae0   :  { %v1853_v0 = vpop.permute.xlu1 %1852 }
 0xb85   :  { %v1529_v55 = vpop.f32.mrf.mxu0 }
 0xb86   :  { %v1530_v9 = vadd.f32 %v1529_v55, %v4123_v63  ;;  %v1841_v55 = vpop.permute.xlu0 %1840 }
 0xb87   :  { %v1531_v59 = vpop.f32.mrf.mxu0 }
 0xb88   :  { %v1532_v10 = vadd.f32 %v1531_v59, %v4126_v39 }
 0xb89   :  { %v3095_v37 = vpop.f32.mrf.mxu0 }
 0xb8a   :  { %v1536_v29 = vcombine.low %v1530_v9, %v1532_v10  ;;  %v4130_v23 = vmul.f32 %v3095_v37, %v1826_v13  ;;  %v4139_v57 = vmul.f32 %v3095_v37, %v2908_v58  ;;  %v1955_v59 = vpop.permute.xlu0 %1954  ;;  %v2029_v9 = vpop.permute.xlu1 %2028 }
 0xb8b   :  { %v1730_v1 = vpop.f32.mrf.mxu0 }
 0xb8c   :  { %1538 = vst [vmem:[%s4652_s6] sm:$0x77] %v1536_v29  ;;  %v4135_v2 = vmul.f32 %v2908_v58, %v1730_v1  ;;  %1849 = vrot.lane.b32.xlu0 %v4130_v23, %s3267_s28  ;;  %v4143_v22 = vmul.f32 %v2019_v6, %v1730_v1  ;;  %v4147_v33 = vmul.f32 %v1826_v13, %v1730_v1 }
 0xb8d   :  { %v4154_v58 = vmul.f32 %v3095_v37, %v2019_v6  ;;  %v1838_v29 = vsub.f32 %v3970_v24, %v1836_v31  ;;  %v1843_v37 = vsub.f32 %v4063_v3, %v1841_v55  ;;  %v1935_v1 = vsub.f32 %v4077_v32, %v1841_v55 }
 0xb8e   :  { %1937 = vrot.lane.b32.xlu1 %v4135_v2, %s3269_s30  ;;  %v1946_v10 = vpop.permute.xlu1 %1945 }
 0xb8f   :  { %v1855_v39 = vsel %vm311_vm11, %v3970_v24, %v1838_v29 }
 0xb90   :  { %1941 = vrot.lane.b32.xlu0 %v4139_v57, %s3266_s27  ;;  %v1856_v34 = vsel %vm313_vm12, %v1855_v39, %v1843_v37 }
 0xb92   :  { %2034 = vrot.lane.b32.xlu1 %v4143_v22, %s3268_s29 }
 0xb94   :  { %1845 = vrot.lane.b32.xlu0 %v4147_v33, %s3266_s27 }
 0xb96   :  { %2041 = vrot.lane.b32.xlu1 %v2911_v7, %s3265_s20  ;;  %s4708_s20 = smov 56  }
 0xb98   :  { %2050 = vperm.xlu0 %3198, %v2911_v7   ;;  %v1934_v7 = vsub.f32 %v3970_v24, %v1932_v5 }
 0xb9a   :  { %v1948_v63 = vsel %vm311_vm11, %v3970_v24, %v1934_v7 }
 0xb9b   :  { %v1949_v40 = vsel %vm313_vm12, %v1948_v63, %v1935_v1 }
 0xb9c   :  { %2038 = vrot.lane.b32.xlu0 %v4154_v58, %s3269_s30 }
 0xba0   :  { %1740 = vrot.lane.b32.xlu0 %v4058_v8, %s3261_s16 }
 0xbfe   :  { %v1850_v13 = vpop.permute.xlu0 %1849 }
 0xc00   :  { %v1938_v35 = vpop.permute.xlu1 %1937 }
 0xc01   :  { %v1950_v31 = vsel %vm4699_vm7, %v1949_v40, %v1938_v35 }
 0xc02   :  { %v1942_v6 = vpop.permute.xlu0 %1941 }
 0xc03   :  { %v1951_v43 = vsel %vm4703_vm15, %v1950_v31, %v1942_v6 }
 0xc04   :  { %v1952_v39 = vsel %vm4704_vm3, %v1951_v43, %v1946_v10  ;;  %vm4705_vm3 = vmmov %vm4699_vm7 }
 0xc05   :  { %v4185_v35 = vmul.f32 %v1955_v59, %v1952_v39  ;;  %vm4706_vm7 = vmmov %vm4701_vm10 }
 0xc06   :  { %v1846_v11 = vpop.permute.xlu0 %1845 }
 0xc07   :  { %v1857_v5 = vsel %vm4700_vm14, %v1856_v34, %v1846_v11  ;;  %v2031_v34 = vsub.f32 %v3970_v24, %v2029_v9  ;;  %v2217_v9 = vmul.f32 %v3500_v18, %v4185_v35  ;;  %v2220_v6 = vmul.f32 %v3510_v27, %v4185_v35  ;;  %vm4707_vm14 = vmmov %vm4702_vm13 }
 0xc08   :  { %v1858_v3 = vsel %vm4701_vm10, %v1857_v5, %v1850_v13  ;;  %vm4709_vm10 = vmmov %vm4705_vm3 }
 0xc09   :  { %v1859_v32 = vsel %vm4702_vm13, %v1858_v3, %v1853_v0  ;;  %v2035_v0 = vpop.permute.xlu1 %2034  ;;  %v2044_v43 = vsel %vm311_vm11, %v3970_v24, %v2031_v34  ;;  %v2226_v34 = vmul.f32 %v3526_v38, %v4185_v35  ;;  %vm4712_vm13 = vcmask 523264  }
 0xc0a   :  { %v4175_v29 = vmul.f32 %v1862_v28, %v1859_v32  ;;  %v2032_v28 = vsub.f32 %v4088_v61, %v1841_v55 }
 0xc0c   :  { %v2219_v7 = vmul.f32 %v3510_v27, %v4175_v29  ;;  %v2216_v63 = vmul.f32 %v3500_v18, %v4175_v29  ;;  %v2225_v40 = vmul.f32 %v3526_v38, %v4175_v29  ;;  %v2222_v11 = vmul.f32 %v3504_v21, %v4175_v29 }
 0xc0d   :  { %v2228_v59 = vmul.f32 %v3535_v45, %v4175_v29  ;;  %v2045_v13 = vsel %vm313_vm12, %v2044_v43, %v2032_v28  ;;  %v2042_v61 = vpop.permute.xlu1 %2041  ;;  %v2231_v24 = vmul.f32 %v3549_v60, %v4175_v29  ;;  %v2232_v43 = vmul.f32 %v3549_v60, %v4185_v35 }
 0xc0e   :  { %2252 = vrot.lane.b32.xlu0 %v2219_v7, %s3272_s12  ;;  %2240 = vrot.lane.b32.xlu1 %v2216_v63, %s3270_s11  ;;  %v2046_v55 = vsel %vm4705_vm3, %v2045_v13, %v2035_v0  ;;  %v2234_v7 = vmul.f32 %v4175_v29, %v3541_v50  ;;  %v2223_v63 = vmul.f32 %v3504_v21, %v4185_v35  ;;  %v3237_v0 = vld [vmem:[%s4649_s3 + $0x28] sm:$0xff]  ;;  %v3240_v13 = vld [vmem:[%s4649_s3 + $0x10] sm:$0xff] }
 0xc12   :  { %2276 = vrot.lane.b32.xlu0 %v2225_v40, %s3273_s13  ;;  %2264 = vrot.lane.b32.xlu1 %v2222_v11, %s3271_s0  ;;  %v3235_v40 = vld [vmem:[%s4649_s3 + $0x38] sm:$0xff]  ;;  %v3236_v11 = vld [vmem:[%s4649_s3 + $0x30] sm:$0xff] }
 0xc13   :  { %v2051_v10 = vpop.permute.xlu0 %2050 }
 0xc16   :  { %2288 = vrot.lane.b32.xlu0 %v2228_v59, %s3274_s14  ;;  %2242 = vrot.lane.b32.xlu1 %v2217_v9, %s3270_s11  ;;  %v3239_v59 = vld [vmem:[%s4649_s3 + $0x18] sm:$0xff]  ;;  %v2235_v9 = vmul.f32 %v4185_v35, %v3541_v50 }
 0xc17   :  { %v2039_v37 = vpop.permute.xlu0 %2038 }
 0xc18   :  { %v2047_v1 = vsel %vm4706_vm7, %v2046_v55, %v2039_v37  ;;  %v3242_v37 = vld [vmem:[%s4649_s3] sm:$0xff]  ;;  %vm4715_vm7 = vmmov %vm4712_vm13 }
 0xc19   :  { %v2048_v31 = vsel %vm4707_vm14, %v2047_v1, %v2042_v61  ;;  %v4297_v1 = vld [vmem:[%s4647_s1 + $0x90] sm:$0xff] }
 0xc1a   :  { %2300 = vrot.lane.b32.xlu0 %v2231_v24, %s3275_s15  ;;  %2254 = vrot.lane.b32.xlu1 %v2220_v6, %s3272_s12  ;;  %v4212_v3 = vmul.f32 %v2051_v10, %v2048_v31  ;;  %v2887_v31 = vld [vmem:[%s4647_s1 + $0x88] sm:$0xff] }
 0xc1b   :  { %v1741_v5 = vpop.permute.xlu0 %1740 }
 0xc1c   :  { %v1743_v32 = vsel %vm311_vm11, %v4058_v8, %v1741_v5  ;;  %v2218_v8 = vmul.f32 %v3500_v18, %v4212_v3  ;;  %v2229_v18 = vmul.f32 %v3535_v45, %v4185_v35  ;;  %v2221_v28 = vmul.f32 %v3510_v27, %v4212_v3  ;;  %v3238_v27 = vld [vmem:[%s4649_s3 + $0x20] sm:$0xff] }
 0xc1d   :  { %v1744_v39 = vsel %vm313_vm12, %v1743_v32, %v1741_v5  ;;  %v2224_v10 = vmul.f32 %v3504_v21, %v4212_v3  ;;  %v2227_v21 = vmul.f32 %v3526_v38, %v4212_v3  ;;  %v2230_v61 = vmul.f32 %v3535_v45, %v4212_v3  ;;  %v3241_v38 = vld [vmem:[%s4649_s3 + $0x8] sm:$0xff]  ;;  %v4315_v5 = vld [vmem:[%s4647_s1 + $0x98] sm:$0xff] }
 0xc1e   :  { %2312 = vrot.lane.b32.xlu0 %v2234_v7, %s4708_s20  ;;  %2266 = vrot.lane.b32.xlu1 %v2223_v63, %s3271_s0  ;;  %v2233_v55 = vmul.f32 %v3549_v60, %v4212_v3  ;;  %v2236_v45 = vmul.f32 %v4212_v3, %v3541_v50  ;;  %v2882_v60 = vld [vmem:[%s4647_s1 + $0x60] sm:$0xff]  ;;  %v1898_v32 = vmul.f32 %v4297_v1, %v2887_v31  ;;  %v2904_v7 = vld [vmem:[%s4647_s1 + $0xa8] sm:$0xff]  ;;  %vm4710_vm11 = vcmask 392192  }
 0xc1f   :  { %3099 = vmatmul.mubr.msk.f32.vlgmr.msra.gmra.mxu1 %vm4709_vm10, %v1744_v39  ;;  %v4300_v24 = vmul.f32 %v4297_v1, %v2882_v60  ;;  %v2886_v50 = vld [vmem:[%s4647_s1 + $0x80] sm:$0xff]  ;;  %v4323_v63 = vmul.f32 %v4315_v5, %v2882_v60  ;;  %vm4711_vm12 = vcmask 457728   ;;  %vm4713_vm15 = vmmov %vm4710_vm11 }
 0xc20   :  { %3102 = vmatpush3.msra.mxu1 %v3235_v40  ;;  %3117 = vmatprep.mubr.msk.f32.mxu1 %vm3260_vm0, %v4696_v20  ;;  %v1897_v6 = vmul.f32 %v4297_v1, %v2886_v50  ;;  %v1990_v39 = vmul.f32 %v4315_v5, %v2886_v50  ;;  %v2907_v40 = vld [vmem:[%s4647_s1 + $0xb0] sm:$0xff]  ;;  %vm4714_vm3 = vmmov %vm4711_vm12 }
 0xc21   :  { %3103 = vmatprep.subr.mxu1 %v4696_v20  ;;  %vm4716_vm14 = vmmov %vm4710_vm11 }
 0xc22   :  { %2278 = vrot.lane.b32.xlu1 %v2226_v34, %s3273_s13  ;;  %2244 = vrot.lane.b32.xlu0 %v2218_v8, %s3270_s11  ;;  %v1991_v34 = vmul.f32 %v4315_v5, %v2887_v31  ;;  %v4334_v8 = vld [vmem:[%s4647_s1 + $0xa0] sm:$0xff]  ;;  %vm4717_vm10 = vmmov %vm4714_vm3 }
 0xc23   :  { %3104 = vmatpush3.msra.mxu1 %v3236_v11  ;;  %v4341_v11 = vmul.f32 %v4334_v8, %v2882_v60 }
 0xc24   :  { %3105 = vmatprep.subr.mxu1 %v4696_v20 }
 0xc25   :  { %3106 = vmatpush3.msra.mxu1 %v3237_v0  ;;  %v2910_v0 = vld [vmem:[%s4647_s1 + $0xb8] sm:$0xff] }
 0xc26   :  { %2290 = vrot.lane.b32.xlu1 %v2229_v18, %s3274_s14  ;;  %2256 = vrot.lane.b32.xlu0 %v2221_v28, %s3272_s12  ;;  %v2089_v18 = vmul.f32 %v4334_v8, %v2886_v50  ;;  %v2090_v28 = vmul.f32 %v4334_v8, %v2887_v31 }
 0xc27   :  { %3107 = vmatprep.subr.mxu1 %v4696_v20 }
 0xc28   :  { %3108 = vmatpush3.msra.mxu1 %v3238_v27 }
 0xc29   :  { %3109 = vmatprep.subr.mxu1 %v4696_v20 }
 0xc2a   :  { %2302 = vrot.lane.b32.xlu1 %v2232_v43, %s3275_s15  ;;  %2268 = vrot.lane.b32.xlu0 %v2224_v10, %s3271_s0 }
 0xc2b   :  { %3110 = vmatpush3.msra.mxu1 %v3239_v59 }
 0xc2c   :  { %3111 = vmatprep.subr.mxu1 %v4696_v20 }
 0xc2d   :  { %3112 = vmatpush3.msra.mxu1 %v3240_v13 }
 0xc2e   :  { %2314 = vrot.lane.b32.xlu1 %v2235_v9, %s4708_s20  ;;  %2280 = vrot.lane.b32.xlu0 %v2227_v21, %s3273_s13  ;;  %v2213_v9 = vmul.f32 %v4175_v29, %v3742_v62 }
 0xc2f   :  { %3113 = vmatprep.subr.mxu1 %v4696_v20 }
 0xc30   :  { %3114 = vmatpush3.msra.mxu1 %v3241_v38 }
 0xc31   :  { %3115 = vmatprep.subr.mxu1 %v4696_v20 }
 0xc32   :  { %2292 = vrot.lane.b32.xlu1 %v2230_v61, %s3274_s14  ;;  %2304 = vrot.lane.b32.xlu0 %v2233_v55, %s3275_s15 }
 0xc33   :  { %3116 = vmatpush3.msra.mxu1 %v3242_v37 }
 0xc34   :  { %3146 = vmatprep.subr.mxu1 %v4696_v20 }
 0xc36   :  { %2316 = vrot.lane.b32.xlu1 %v2236_v45, %s4708_s20  ;;  %1899 = vrot.lane.b32.xlu0 %v4300_v24, %s3270_s11 }
 0xc3a   :  { %1903 = vrot.lane.b32.xlu1 %v1897_v6, %s3272_s12  ;;  %1907 = vrot.lane.b32.xlu0 %v1898_v32, %s3271_s0 }
 0xc3e   :  { %1911 = vrot.lane.b32.xlu1 %v2904_v7, %s3273_s13  ;;  %1992 = vrot.lane.b32.xlu0 %v4323_v63, %s3270_s11 }
 0xc42   :  { %1996 = vrot.lane.b32.xlu1 %v1990_v39, %s3272_s12  ;;  %2000 = vrot.lane.b32.xlu0 %v1991_v34, %s3271_s0 }
 0xc46   :  { %2004 = vrot.lane.b32.xlu1 %v2907_v40, %s3273_s13  ;;  %2091 = vrot.lane.b32.xlu0 %v4341_v11, %s3270_s11 }
 0xc4a   :  { %2095 = vrot.lane.b32.xlu1 %v2089_v18, %s3272_s12  ;;  %2099 = vrot.lane.b32.xlu0 %v2090_v28, %s3271_s0  ;;  %v2214_v28 = vmul.f32 %v4185_v35, %v3742_v62 }
 0xc4e   :  { %2103 = vrot.lane.b32.xlu1 %v2910_v0, %s3273_s13 }
 0xc80   :  { %v2241_v43 = vpop.permute.xlu1 %2240  ;;  %v2253_v10 = vpop.permute.xlu0 %2252 }
 0xc81   :  { %v2321_v21 = vsel %vm92_vm1, %v2213_v9, %v2241_v43 }
 0xc82   :  { %v2324_v55 = vsel %vm94_vm4, %v2321_v21, %v2253_v10  ;;  %v2215_v21 = vmul.f32 %v4212_v3, %v3742_v62 }
 0xc84   :  { %v2265_v27 = vpop.permute.xlu1 %2264  ;;  %v2277_v59 = vpop.permute.xlu0 %2276 }
 0xc85   :  { %v2327_v38 = vsel %vm476_vm6, %v2324_v55, %v2265_v27 }
 0xc86   :  { %v2330_v60 = vsel %vm478_vm8, %v2327_v38, %v2277_v59 }
 0xc88   :  { %v2243_v13 = vpop.permute.xlu1 %2242  ;;  %v2289_v61 = vpop.permute.xlu0 %2288 }
 0xc89   :  { %v2333_v50 = vsel %vm698_vm9, %v2330_v60, %v2289_v61  ;;  %v2322_v0 = vsel %vm92_vm1, %v2214_v28, %v2243_v13 }
 0xc8c   :  { %v2255_v37 = vpop.permute.xlu1 %2254  ;;  %v2301_v45 = vpop.permute.xlu0 %2300 }
 0xc8d   :  { %v2336_v6 = vsel %vm4710_vm11, %v2333_v50, %v2301_v45  ;;  %v2325_v43 = vsel %vm94_vm4, %v2322_v0, %v2255_v37  ;;  %vm4718_vm11 = vmmov %vm4715_vm7 }
 0xc90   :  { %v2267_v31 = vpop.permute.xlu1 %2266  ;;  %v2313_v32 = vpop.permute.xlu0 %2312 }
 0xc91   :  { %v2339_v7 = vsel %vm4711_vm12, %v2336_v6, %v2313_v32  ;;  %v2328_v59 = vsel %vm476_vm6, %v2325_v43, %v2267_v31 }
 0xc92   :  { %3118 = vmatmul.mubr.msk.f32.vlgmr.msra.gmra.mxu1 %vm4712_vm13, %v2339_v7 }
 0xc93   :  { %3120 = vmatprep.mubr.msk.f32.mxu1 %vm3260_vm0, %v4696_v20  ;;  %3147 = vmatpush3.msra.mxu1 %v3838_v14 }
 0xc94   :  { %v2279_v39 = vpop.permute.xlu1 %2278  ;;  %v2245_v34 = vpop.permute.xlu0 %2244  ;;  %3148 = vmatprep.subr.mxu1 %v4696_v20 }
 0xc95   :  { %3149 = vmatpush3.msra.mxu1 %v3844_v15  ;;  %v2331_v9 = vsel %vm478_vm8, %v2328_v59, %v2279_v39  ;;  %v2323_v60 = vsel %vm92_vm1, %v2215_v21, %v2245_v34 }
 0xc96   :  { %3150 = vmatprep.subr.mxu1 %v4696_v20 }
 0xc97   :  { %3151 = vmatpush3.msra.mxu1 %v3851_v16 }
 0xc98   :  { %v2291_v40 = vpop.permute.xlu1 %2290  ;;  %v2257_v18 = vpop.permute.xlu0 %2256  ;;  %3152 = vmatprep.subr.mxu1 %v4696_v20 }
 0xc99   :  { %3153 = vmatpush3.msra.mxu1 %v3858_v19  ;;  %v2334_v61 = vsel %vm698_vm9, %v2331_v9, %v2291_v40  ;;  %v2326_v37 = vsel %vm94_vm4, %v2323_v60, %v2257_v18  ;;  %v2883_v40 = vld [vmem:[%s4647_s1 + $0x68] sm:$0xff] }
 0xc9a   :  { %v4401_v28 = vmul.f32 %v4297_v1, %v2883_v40  ;;  %v4408_v21 = vmul.f32 %v4315_v5, %v2883_v40 }
 0xc9c   :  { %v2303_v10 = vpop.permute.xlu1 %2302  ;;  %v2269_v27 = vpop.permute.xlu0 %2268 }
 0xc9d   :  { %v2337_v55 = vsel %vm4713_vm15, %v2334_v61, %v2303_v10  ;;  %v2329_v50 = vsel %vm476_vm6, %v2326_v37, %v2269_v27 }
 0xca0   :  { %v2315_v38 = vpop.permute.xlu1 %2314  ;;  %v2281_v45 = vpop.permute.xlu0 %2280 }
 0xca1   :  { %v2340_v13 = vsel %vm4714_vm3, %v2337_v55, %v2315_v38  ;;  %v2332_v62 = vsel %vm478_vm8, %v2329_v50, %v2281_v45 }
 0xca2   :  { %3121 = vmatmul.mubr.msk.f32.gmra.mxu1 %vm4715_vm7, %v2340_v13 }
 0xca3   :  { %3123 = vmatprep.mubr.msk.f32.mxu1 %vm3260_vm0, %v4696_v20 }
 0xca4   :  { %v2293_v6 = vpop.permute.xlu1 %2292  ;;  %v2305_v32 = vpop.permute.xlu0 %2304 }
 0xca5   :  { %v2335_v31 = vsel %vm698_vm9, %v2332_v62, %v2293_v6 }
 0xca6   :  { %v2338_v7 = vsel %vm4716_vm14, %v2335_v31, %v2305_v32  ;;  %v4423_v31 = vmul.f32 %v4334_v8, %v2883_v40 }
 0xca8   :  { %v2317_v39 = vpop.permute.xlu1 %2316  ;;  %v1900_v18 = vpop.permute.xlu0 %1899 }
 0xca9   :  { %v2341_v34 = vsel %vm4717_vm10, %v2338_v7, %v2317_v39  ;;  %v1914_v43 = vsel %vm92_vm1, %v4401_v28, %v1900_v18 }
 0xcaa   :  { %3124 = vmatmul.mubr.msk.f32.gmra.mxu1 %vm4718_vm11, %v2341_v34 }
 0xcab   :  { %3154 = vmatprep.mubr.msk.f32.mxu1 %vm3260_vm0, %v4696_v20 }
 0xcac   :  { %v1904_v0 = vpop.permute.xlu1 %1903  ;;  %v1908_v27 = vpop.permute.xlu0 %1907 }
 0xcad   :  { %v1915_v10 = vsel %vm94_vm4, %v1914_v43, %v1904_v0 }
 0xcae   :  { %v1916_v59 = vsel %vm476_vm6, %v1915_v10, %v1908_v27 }
 0xcb0   :  { %v1912_v9 = vpop.permute.xlu1 %1911  ;;  %v1993_v55 = vpop.permute.xlu0 %1992 }
 0xcb1   :  { %v1917_v61 = vsel %vm478_vm8, %v1916_v59, %v1912_v9  ;;  %v2007_v1 = vsel %vm92_vm1, %v4408_v21, %v1993_v55 }
 0xcb2   :  { %2915 = vmatmul.mubr.msk.f32.vlgmr.msra.gmra.mxu0 %vm698_vm9, %v1917_v61 }
 0xcb3   :  { %2193 = vmatprep.mubr.f32.mxu0 %v4696_v20 }
 0xcb4   :  { %v1997_v38 = vpop.permute.xlu1 %1996  ;;  %v2001_v13 = vpop.permute.xlu0 %2000 }
 0xcb5   :  { %v2008_v45 = vsel %vm94_vm4, %v2007_v1, %v1997_v38 }
 0xcb6   :  { %v2009_v37 = vsel %vm476_vm6, %v2008_v45, %v2001_v13 }
 0xcb8   :  { %v2005_v5 = vpop.permute.xlu1 %2004  ;;  %v2092_v6 = vpop.permute.xlu0 %2091 }
 0xcb9   :  { %v2010_v62 = vsel %vm478_vm8, %v2009_v37, %v2005_v5  ;;  %v2106_v7 = vsel %vm92_vm1, %v4423_v31, %v2092_v6 }
 0xcba   :  { %2916 = vmatmul.mubr.msk.f32.gmra.mxu0 %vm698_vm9, %v2010_v62 }
 0xcbb   :  { %2199 = vmatprep.mubr.f32.mxu0 %v4696_v20 }
 0xcbc   :  { %v2096_v32 = vpop.permute.xlu1 %2095  ;;  %v2100_v34 = vpop.permute.xlu0 %2099 }
 0xcbd   :  { %v2107_v39 = vsel %vm94_vm4, %v2106_v7, %v2096_v32 }
 0xcbe   :  { %v2108_v18 = vsel %vm476_vm6, %v2107_v39, %v2100_v34 }
 0xcc0   :  { %v2104_v0 = vpop.permute.xlu1 %2103 }
 0xcc1   :  { %v2109_v43 = vsel %vm478_vm8, %v2108_v18, %v2104_v0 }
 0xcc2   :  { %2917 = vmatmul.mubr.msk.f32.gmra.mxu0 %vm698_vm9, %v2109_v43 }
 0xcc3   :  { %3132 = vmatprep.mubr.msk.f32.mxu0 %vm3260_vm0, %v4696_v20 }
 0xcdf   :  { %v4416_v60 = vpop.f32.mrf.mxu1 }
 0xce1   :  { %v3100_v50 = vpop.f32.mrf.mxu1 }
 0xd52   :  { %v2417_v10 = vpop.f32.mrf.mxu1 }
 0xd54   :  { %v3119_v8 = vpop.f32.mrf.mxu1 }
 0xd62   :  { %v2422_v40 = vpop.f32.mrf.mxu1 }
 0xd64   :  { %v3122_v27 = vpop.f32.mrf.mxu1 }
 0xd6a   :  { %v2427_v59 = vpop.f32.mrf.mxu1 }
 0xd6b   :  { %3127 = vmatpush3.msra.mxu0 %v2427_v59 }
 0xd6c   :  { %v3125_v9 = vpop.f32.mrf.mxu1  ;;  %3128 = vmatprep.subr.mxu0 %v4696_v20 }
 0xd6d   :  { %3129 = vmatpush3.msra.mxu0 %v2422_v40 }
 0xd6e   :  { %3130 = vmatprep.subr.mxu0 %v4696_v20 }
 0xd6f   :  { %3131 = vmatpush3.msra.mxu0 %v2417_v10 }
 0xd70   :  { %3133 = vmatmul.mubr.msk.f32.vlgmr.msra.gmra.mxu0 %vm476_vm6, %v3869_v41  ;;  %3135 = vmatprep.subr.mxu0 %v4696_v20 }
 0xd71   :  { %3136 = vmatpush3.msra.mxu0 %v3838_v14  ;;  %3143 = vmatprep.mubr.msk.f32.mxu0 %vm3260_vm0, %v4696_v20  ;;  %vm4719_vm0 = vcmask 1041408  }
 0xd72   :  { %3137 = vmatprep.subr.mxu0 %v4696_v20  ;;  %v2189_v41 = vpop.f32.mrf.mxu0 }
 0xd73   :  { %3138 = vmatpush3.msra.mxu0 %v3844_v15  ;;  %2918 = vst [vmem:[%s4654_s8 + $0x30] sm:$0xff] %v2189_v41 }
 0xd74   :  { %3139 = vmatprep.subr.mxu0 %v4696_v20  ;;  %v2191_v14 = vpop.f32.mrf.mxu0 }
 0xd75   :  { %3140 = vmatpush3.msra.mxu0 %v3851_v16  ;;  %2919 = vst [vmem:[%s4654_s8 + $0x38] sm:$0xff] %v2191_v14 }
 0xd76   :  { %3141 = vmatprep.subr.mxu0 %v4696_v20 }
 0xd77   :  { %3142 = vmatpush3.msra.mxu0 %v3858_v19 }
 0xd78   :  { %2765 = vmatprep.subr.mxu0 %v4001_v4 }
 0xd7a   :  { %v2195_v15 = vpop.f32.mrf.mxu0 }
 0xd7b   :  { %2920 = vst [vmem:[%s4654_s8 + $0x40] sm:$0xff] %v2195_v15 }
 0xd7c   :  { %v2197_v16 = vpop.f32.mrf.mxu0 }
 0xd7d   :  { %2921 = vst [vmem:[%s4654_s8 + $0x48] sm:$0xff] %v2197_v16 }
 0xd82   :  { %v2201_v19 = vpop.f32.mrf.mxu0 }
 0xd83   :  { %2922 = vst [vmem:[%s4654_s8 + $0x50] sm:$0xff] %v2201_v19 }
 0xd84   :  { %v2203_v4 = vpop.f32.mrf.mxu0 }
 0xd85   :  { %2923 = vst [vmem:[%s4654_s8 + $0x58] sm:$0xff] %v2203_v4  ;;  %v3243_v4 = vld [vmem:[%s4649_s3 + $0x61] sm:$0x1]  ;;  %s3279_s3 = smov 126  }
 0xe30   :  { %v2497_v61 = vpop.f32.mrf.mxu0 }
 0xe31   :  { %v4467_v55 = vadd.f32 %v3927_v25, %v2497_v61 }
 0xe32   :  { %v3134_v1 = vpop.f32.mrf.mxu0 }
 0xe33   :  { %v2501_v38 = vadd.f32 %v4467_v55, %v3920_v17 }
 0xe35   :  { %v2928_v45 = vmul.f32 -1.442695, %v2501_v38 }
 0xe37   :  { %3217 = vpow2.f32 %v2928_v45 }
 0xe44   :  { %v3218_v13 = vpop.eup %3217 }
 0xe45   :  { %v2505_v37 = vadd.f32 1.0, %v3218_v13 }
 0xe47   :  { %3219 = vrcp.f32 %v2505_v37 }
 0xe54   :  { %v3220_v5 = vpop.eup %3219 }
 0xe55   :  { %v2508_v50 = vmul.f32 %v3220_v5, %v3934_v42  ;;  %v2515_v32 = vsub.f32 1.0, %v3220_v5  ;;  %v2521_v17 = vmul.f32 0.0, %v3220_v5 }
 0xe57   :  { %2510 = vrot.lane.b32.xlu0 %v2508_v50, %s3277_s25 }
 0xec9   :  { %v2511_v62 = vpop.permute.xlu0 %2510 }
 0xeca   :  { %v2513_v6 = vadd.f32 %v2511_v62, %v4467_v55 }
 0xecc   :  { %3221 = vtanh.f32 %v2513_v6 }
 0xed9   :  { %v3222_v25 = vpop.eup %3221 }
 0xeda   :  { %2517 = vrot.lane.b32.xlu1 %v3222_v25, %s3278_s9 }
 0xf4c   :  { %v2518_v7 = vpop.permute.xlu1 %2517 }
 0xf4d   :  { %v2520_v39 = vmul.f32 %v2518_v7, %v2515_v32 }
 0xf4f   :  { %v4475_v34 = vadd.f32 %v2521_v17, %v2520_v39 }
 0xf51   :  { %2524 = vrot.lane.b32.xlu0 %v4475_v34, %s3278_s9  ;;  %v2624_v27 = vrot.slane %v4475_v34, 7 }
 0xfc3   :  { %v2525_v18 = vpop.permute.xlu0 %2524 }
 0xfc4   :  { %3144 = vmatmul.mubr.msk.f32.vlgmr.msra.gmra.mxu0 %vm478_vm8, %v2525_v18 }
 0xfc5   :  { %2766 = vmatpush1.msra.mxu0 %v4006_v30  ;;  %2805 = vmatprep.mubr.f32.mxu0 %v4696_v20 }
 0xfc6   :  { %2767 = vmatprep.subr.mxu0 %v4011_v54 }
 0xfc7   :  { %2768 = vmatpush1.msra.mxu0 %v4017_v26 }
 0xfc8   :  { %2769 = vmatprep.subr.mxu0 %v4023_v56 }
 0xfc9   :  { %2770 = vmatpush1.msra.mxu0 %v4029_v36 }
 0xfca   :  { %2771 = vmatprep.subr.mxu0 %v4035_v46 }
 0xfcb   :  { %2772 = vmatpush1.msra.mxu0 %v4041_v52 }
0x1084   :  { %v2594_v42 = vpop.f32.mrf.mxu0 }
0x1085   :  { %v2595_v0 = vadd.f32 %v2594_v42, %v3917_v12 }
0x1086   :  { %v3145_v43 = vpop.f32.mrf.mxu0 }
0x1087   :  { %v2599_v10 = vrot.slane %v2595_v0, 7 }
0x1089   :  { %2608 = vrot.lane.b32.xlu1 %v2599_v10, %s3277_s25  ;;  %v2601_v20 = vadd.f32 %v2599_v10, %v4467_v55 }
0x108b   :  { %v2930_v30 = vmul.f32 -1.442695, %v2601_v20 }
0x108d   :  { %3223 = vpow2.f32 %v2930_v30 }
0x109a   :  { %v3224_v54 = vpop.eup %3223 }
0x109b   :  { %v2605_v26 = vadd.f32 1.0, %v3224_v54 }
0x109d   :  { %3225 = vrcp.f32 %v2605_v26 }
0x10aa   :  { %v3226_v56 = vpop.eup %3225 }
0x10ab   :  { %v2618_v40 = vsub.f32 1.0, %v3226_v56  ;;  %v2626_v9 = vmul.f32 %v3226_v56, %v2624_v27 }
0x10fb   :  { %v2609_v36 = vpop.permute.xlu1 %2608 }
0x10fc   :  { %v2611_v8 = vmul.f32 %v3226_v56, %v2609_v36  ;;  %v4720_v56 = vld [vmem:[#allocation11_spill] sm:$0xff]  ;;  %v4722_v36 = vld [vmem:[#allocation12_spill] sm:$0xff] }
0x10fe   :  { %2613 = vrot.lane.b32.xlu0 %v2611_v8, %s3277_s25  ;;  %v2856_v8 = vld [vmem:[%s4651_s5 + $0x5] ss:$0 sm:$0xff] }
0x1170   :  { %v2614_v46 = vpop.permute.xlu0 %2613 }
0x1171   :  { %v2616_v52 = vadd.f32 %v2614_v46, %v4467_v55  ;;  %v4724_v46 = vld [vmem:[#allocation16_spill] sm:$0xff] }
0x1173   :  { %3227 = vtanh.f32 %v2616_v52  ;;  %v4725_v52 = vld [vmem:[#allocation15_spill] sm:$0xff] }
0x1180   :  { %v3228_v12 = vpop.eup %3227 }
0x1181   :  { %2620 = vrot.lane.b32.xlu1 %v3228_v12, %s3278_s9 }
0x11f3   :  { %v2621_v59 = vpop.permute.xlu1 %2620 }
0x11f4   :  { %v2623_v41 = vmul.f32 %v2621_v59, %v2618_v40  ;;  %v4728_v40 = vld [vmem:[#allocation7_spill] sm:$0xff]  ;;  %v4729_v59 = vld [vmem:[#allocation6_spill] sm:$0xff] }
0x11f6   :  { %v2627_v14 = vadd.f32 %v2626_v9, %v2623_v41  ;;  %v1815_v41 = vadd.f32 %v2856_v8, %v4416_v60 }
0x11f8   :  { %v2629_v15 = vrot.slane %v2627_v14, 1  ;;  %v2730_v39 = vrot.slane %v2627_v14, 7  ;;  %v2734_v10 = vsel %vm145_vm2, %v4475_v34, %v2627_v14  ;;  %vm473_vm2 = vcmask 80896  }
0x11fa   :  { %2630 = vrot.lane.b32.xlu0 %v2629_v15, %s3278_s9 }
0x126c   :  { %v2631_v16 = vpop.permute.xlu0 %2630 }
0x126d   :  { %3155 = vmatmul.mubr.msk.f32.vlgmr.msra.gmra.mxu1 %vm478_vm8, %v2631_v16 }
0x132d   :  { %v2700_v19 = vpop.f32.mrf.mxu1 }
0x132e   :  { %v2701_v61 = vadd.f32 %v3243_v4, %v2700_v19 }
0x132f   :  { %v3156_v1 = vpop.f32.mrf.mxu1 }
0x1330   :  { %v2705_v38 = vrot.slane %v2701_v61, 6 }
0x1332   :  { %2714 = vrot.lane.b32.xlu1 %v2705_v38, %s3277_s25  ;;  %v2707_v45 = vadd.f32 %v2705_v38, %v4467_v55 }
0x1334   :  { %v2932_v13 = vmul.f32 -1.442695, %v2707_v45 }
0x1336   :  { %3229 = vpow2.f32 %v2932_v13 }
0x1343   :  { %v3230_v37 = vpop.eup %3229 }
0x1344   :  { %v2711_v5 = vadd.f32 1.0, %v3230_v37 }
0x1346   :  { %3231 = vrcp.f32 %v2711_v5 }
0x1353   :  { %v3232_v50 = vpop.eup %3231 }
0x1354   :  { %v2724_v17 = vsub.f32 1.0, %v3232_v50  ;;  %v2732_v42 = vmul.f32 %v3232_v50, %v2730_v39  ;;  %v4731_v39 = vld [vmem:[#allocation9_spill] sm:$0xff] }
0x13a4   :  { %v2715_v62 = vpop.permute.xlu1 %2714 }
0x13a5   :  { %v2717_v6 = vmul.f32 %v3232_v50, %v2715_v62 }
0x13a7   :  { %2719 = vrot.lane.b32.xlu0 %v2717_v6, %s3277_s25  ;;  %v4730_v6 = vld [vmem:[#allocation8_spill] sm:$0xff] }
0x1419   :  { %v2720_v25 = vpop.permute.xlu0 %2719 }
0x141a   :  { %v2722_v32 = vadd.f32 %v2720_v25, %v4467_v55 }
0x141c   :  { %3233 = vtanh.f32 %v2722_v32 }
0x1429   :  { %v3234_v7 = vpop.eup %3233 }
0x142a   :  { %2726 = vrot.lane.b32.xlu1 %v3234_v7, %s3278_s9 }
0x142e   :  { %446 = vrot.lane.b32.xlu1 %v3442_v47, %s3264_s19 }
0x1432   :  { %639 = vrot.lane.b32.xlu1 %v3448_v48, %s3279_s3 }
0x1436   :  { %1865 = vrot.lane.b32.xlu1 %v4130_v23, %s3264_s19 }
0x143a   :  { %2054 = vrot.lane.b32.xlu1 %v4143_v22, %s3279_s3 }
0x149c   :  { %v2727_v18 = vpop.permute.xlu1 %2726 }
0x149d   :  { %v2729_v55 = vmul.f32 %v2727_v18, %v2724_v17 }
0x149f   :  { %v2733_v0 = vadd.f32 %v2732_v42, %v2729_v55  ;;  %v4732_v42 = vld [vmem:[#allocation10_spill] sm:$0xff] }
0x14a0   :  { %v447_v43 = vpop.permute.xlu1 %446 }
0x14a1   :  { %v449_v47 = vsel %vm149_vm5, %v3454_v49, %v447_v43  ;;  %v2735_v48 = vsel %vm4719_vm0, %v2734_v10, %v2733_v0 }
0x14a2   :  { %2737 = vrot.lane.b32.xlu0 %v2735_v48, %s3278_s9  ;;  %457 = vrot.lane.b32.xlu1 %v449_v47, %s3270_s11 }
0x14a4   :  { %v640_v23 = vpop.permute.xlu1 %639 }
0x14a6   :  { %543 = vrot.lane.b32.xlu0 %v3462_v51, %s3261_s16 }
0x14a8   :  { %v1866_v20 = vpop.permute.xlu1 %1865 }
0x14aa   :  { %642 = vrot.lane.b32.xlu0 %v3469_v53, %s3261_s16  ;;  %v1868_v53 = vsel %vm149_vm5, %v4147_v33, %v1866_v20  ;;  %v4721_v33 = vld [vmem:[#allocation13_spill] sm:$0xff] }
0x14ae   :  { %1958 = vrot.lane.b32.xlu0 %v4135_v2, %s3261_s16 }
0x14b2   :  { %2057 = vrot.lane.b32.xlu0 %v4154_v58, %s3261_s16 }
0x1514   :  { %v2738_v49 = vpop.permute.xlu0 %2737 }
0x1515   :  { %2933 = vmatmul.mubr.msk.f32.vlgmr.msra.gmra.mxu0 %vm478_vm8, %v2738_v49 }
0x1518   :  { %v544_v22 = vpop.permute.xlu0 %543 }
0x1519   :  { %v546_v34 = vsel %vm149_vm5, %v544_v22, %v3436_v44  ;;  %v2055_v44 = vpop.permute.xlu1 %2054 }
0x151a   :  { %554 = vrot.lane.b32.xlu0 %v546_v34, %s3270_s11 }
0x151c   :  { %v643_v51 = vpop.permute.xlu0 %642 }
0x151d   :  { %v645_v2 = vsel %vm149_vm5, %v640_v23, %v643_v51  ;;  %v458_v14 = vpop.permute.xlu1 %457 }
0x151e   :  { %653 = vrot.lane.b32.xlu1 %v645_v2, %s3270_s11  ;;  %1876 = vrot.lane.b32.xlu0 %v1868_v53, %s3270_s11  ;;  %v472_v25 = vsel %vm92_vm1, %v4730_v6, %v458_v14 }
0x151f   :  { %v474_v17 = vsel %vm473_vm2, %v472_v25, 0.0 }
0x1520   :  { %v1959_v58 = vpop.permute.xlu0 %1958 }
0x1521   :  { %v1961_v30 = vsel %vm149_vm5, %v1959_v58, %v4139_v57  ;;  %v4723_v57 = vld [vmem:[#allocation14_spill] sm:$0xff] }
0x1522   :  { %1969 = vrot.lane.b32.xlu1 %v1961_v30, %s3270_s11 }
0x1524   :  { %v2058_v54 = vpop.permute.xlu0 %2057 }
0x1525   :  { %v2060_v26 = vsel %vm149_vm5, %v2055_v44, %v2058_v54  ;;  %vm480_vm5 = vcmask 605184  }
0x1526   :  { %461 = vrot.lane.b32.xlu1 %v4720_v56, %s3272_s12  ;;  %2068 = vrot.lane.b32.xlu0 %v2060_v26, %s3270_s11 }
0x152a   :  { %657 = vrot.lane.b32.xlu1 %v4721_v33, %s3272_s12  ;;  %558 = vrot.lane.b32.xlu0 %v4722_v36, %s3272_s12 }
0x152e   :  { %1973 = vrot.lane.b32.xlu1 %v4323_v63, %s3272_s12  ;;  %1880 = vrot.lane.b32.xlu0 %v4300_v24, %s3272_s12  ;;  %v4726_v63 = vld [vmem:[#allocation17_spill] sm:$0xff] }
0x152f   :  { %v394_v12 = vadd.f32 %v2856_v8, %v4726_v63  ;;  %v4727_v24 = vld [vmem:[#allocation5_spill] sm:$0xff] }
0x1531   :  { %v552_v27 = vrot.slane %v394_v12, %v4728_v40  ;;  %v651_v9 = vrot.slane %v394_v12, %v4729_v59 }
0x1532   :  { %465 = vrot.lane.b32.xlu1 %v4723_v57, %s3271_s0  ;;  %2072 = vrot.lane.b32.xlu0 %v4341_v11, %s3272_s12  ;;  %v455_v11 = vrot.slane %v394_v12, %v4727_v24 }
0x1536   :  { %661 = vrot.lane.b32.xlu1 %v4724_v46, %s3271_s0  ;;  %562 = vrot.lane.b32.xlu0 %v4725_v52, %s3271_s0 }
0x153a   :  { %1977 = vrot.lane.b32.xlu1 %v4408_v21, %s3271_s0  ;;  %1884 = vrot.lane.b32.xlu0 %v4401_v28, %s3271_s0  ;;  %v1874_v21 = vrot.slane %v1815_v41, %v4727_v24  ;;  %v1967_v28 = vrot.slane %v1815_v41, %v4728_v40 }
0x153e   :  { %469 = vrot.lane.b32.xlu1 %v455_v11, %s3273_s13  ;;  %2076 = vrot.lane.b32.xlu0 %v4423_v31, %s3271_s0  ;;  %v2066_v31 = vrot.slane %v1815_v41, %v4729_v59 }
0x1542   :  { %665 = vrot.lane.b32.xlu1 %v651_v9, %s3273_s13  ;;  %566 = vrot.lane.b32.xlu0 %v552_v27, %s3273_s13 }
0x1546   :  { %1981 = vrot.lane.b32.xlu1 %v1967_v28, %s3273_s13  ;;  %1888 = vrot.lane.b32.xlu0 %v1874_v21, %s3273_s13 }
0x154a   :  { %2080 = vrot.lane.b32.xlu0 %v2066_v31, %s3273_s13 }
0x158c   :  { %v555_v15 = vpop.permute.xlu0 %554 }
0x158d   :  { %v569_v18 = vsel %vm92_vm1, %v4731_v39, %v555_v15  ;;  %v4733_v15 = vld [vmem:[#allocation18_spill] sm:$0xff] }
0x158e   :  { %v570_v23 = vsel %vm473_vm2, %v569_v18, 0.0 }
0x1590   :  { %v654_v16 = vpop.permute.xlu1 %653  ;;  %v1877_v60 = vpop.permute.xlu0 %1876 }
0x1591   :  { %v668_v55 = vsel %vm92_vm1, %v4732_v42, %v654_v16  ;;  %v1891_v34 = vsel %vm92_vm1, %v4175_v29, %v1877_v60  ;;  %v4734_v60 = vld [vmem:[#allocation19_spill] sm:$0xff] }
0x1592   :  { %v669_v49 = vsel %vm473_vm2, %v668_v55, 0.0 }
0x1594   :  { %v1970_v19 = vpop.permute.xlu1 %1969 }
0x1595   :  { %v1984_v20 = vsel %vm92_vm1, %v4185_v35, %v1970_v19  ;;  %v1892_v35 = vsel %vm473_vm2, %v1891_v34, 0.0 }
0x1596   :  { %v1985_v26 = vsel %vm473_vm2, %v1984_v20, 0.0 }
0x1598   :  { %v2069_v4 = vpop.permute.xlu0 %2068  ;;  %v462_v61 = vpop.permute.xlu1 %461 }
0x1599   :  { %v475_v0 = vsel %vm94_vm4, %v474_v17, %v462_v61  ;;  %v2083_v36 = vsel %vm92_vm1, %v4212_v3, %v2069_v4 }
0x159a   :  { %v2084_v11 = vsel %vm473_vm2, %v2083_v36, 0.0 }
0x159c   :  { %v559_v1 = vpop.permute.xlu0 %558  ;;  %v658_v38 = vpop.permute.xlu1 %657 }
0x159d   :  { %v571_v51 = vsel %vm94_vm4, %v570_v23, %v559_v1  ;;  %v670_v53 = vsel %vm94_vm4, %v669_v49, %v658_v38 }
0x15a0   :  { %v1881_v45 = vpop.permute.xlu0 %1880  ;;  %v1974_v13 = vpop.permute.xlu1 %1973 }
0x15a1   :  { %v1893_v57 = vsel %vm94_vm4, %v1892_v35, %v1881_v45  ;;  %v1986_v8 = vsel %vm94_vm4, %v1985_v26, %v1974_v13 }
0x15a4   :  { %v2073_v37 = vpop.permute.xlu0 %2072  ;;  %v466_v5 = vpop.permute.xlu1 %465 }
0x15a5   :  { %v477_v43 = vsel %vm476_vm6, %v475_v0, %v466_v5  ;;  %v2085_v59 = vsel %vm94_vm4, %v2084_v11, %v2073_v37 }
0x15a8   :  { %v563_v50 = vpop.permute.xlu0 %562  ;;  %v662_v62 = vpop.permute.xlu1 %661 }
0x15a9   :  { %v572_v2 = vsel %vm476_vm6, %v571_v51, %v563_v50  ;;  %v671_v58 = vsel %vm476_vm6, %v670_v53, %v662_v62 }
0x15ac   :  { %v1885_v32 = vpop.permute.xlu0 %1884  ;;  %v1978_v7 = vpop.permute.xlu1 %1977 }
0x15ad   :  { %v1894_v46 = vsel %vm476_vm6, %v1893_v57, %v1885_v32  ;;  %v1987_v52 = vsel %vm476_vm6, %v1986_v8, %v1978_v7 }
0x15b0   :  { %v2077_v10 = vpop.permute.xlu0 %2076  ;;  %v470_v47 = vpop.permute.xlu1 %469 }
0x15b1   :  { %v479_v48 = vsel %vm478_vm8, %v477_v43, %v470_v47  ;;  %v2086_v9 = vsel %vm476_vm6, %v2085_v59, %v2077_v10 }
0x15b2   :  { %v481_v22 = vsel %vm480_vm5, %v479_v48, 0.0 }
0x15b3   :  { %695 = vst [vmem:[%s4653_s7] sm:$0xff] %v481_v22 }
0x15b4   :  { %v567_v30 = vpop.permute.xlu0 %566  ;;  %v666_v44 = vpop.permute.xlu1 %665 }
0x15b5   :  { %v573_v54 = vsel %vm478_vm8, %v572_v2, %v567_v30  ;;  %v672_v29 = vsel %vm478_vm8, %v671_v58, %v666_v44 }
0x15b6   :  { %v574_v56 = vsel %vm480_vm5, %v573_v54, 0.0  ;;  %v673_v33 = vsel %vm480_vm5, %v672_v29, 0.0 }
0x15b7   :  { %696 = vst [vmem:[%s4653_s7 + $0x8] sm:$0xff] %v574_v56  ;;  %697 = vst [vmem:[%s4653_s7 + $0x10] sm:$0xff] %v673_v33 }
0x15b8   :  { %v1889_v63 = vpop.permute.xlu0 %1888  ;;  %v1982_v12 = vpop.permute.xlu1 %1981 }
0x15b9   :  { %v1895_v3 = vsel %vm478_vm8, %v1894_v46, %v1889_v63  ;;  %v1988_v24 = vsel %vm478_vm8, %v1987_v52, %v1982_v12 }
0x15ba   :  { %v1896_v40 = vsel %vm480_vm5, %v1895_v3, 0.0  ;;  %v1989_v27 = vsel %vm480_vm5, %v1988_v24, 0.0 }
0x15bb   :  { %2912 = vst [vmem:[%s4653_s7 + $0x18] sm:$0xff] %v1896_v40  ;;  %2913 = vst [vmem:[%s4653_s7 + $0x20] sm:$0xff] %v1989_v27 }
0x15bc   :  { %v2081_v41 = vpop.permute.xlu0 %2080 }
0x15bd   :  { %v2087_v21 = vsel %vm478_vm8, %v2086_v9, %v2081_v41 }
0x15be   :  { %v2088_v28 = vsel %vm480_vm5, %v2087_v21, 0.0 }
0x15bf   :  { %2914 = vst [vmem:[%s4653_s7 + $0x28] sm:$0xff] %v2088_v28 }
0x15d5   :  { %v2807_v31 = vpop.f32.mrf.mxu0 }
0x15d6   :  { %v2808_v16 = vadd.f32 %v2807_v31, %v4733_v15 }
0x15d7   :  { %v2809_v14 = vpop.f32.mrf.mxu0 }
0x15d8   :  { %v2810_v19 = vadd.f32 %v2809_v14, %v4734_v60 }
0x15da   :  { %v2814_v4 = vcombine.low %v2808_v16, %v2810_v19 }
0x15dc   :  { %2934 = vst [vmem:[%s4652_s6 + $0x8] sm:$0x77] %v2814_v4 }

</bundles_post_ra>
